<compile_context>
chip_gen: v5e
topology: v5e:2x2
jax: 0.10.0
libtpu: 0.0.40
codegen_flags: <defaults>
</compile_context>

<pallas_src>
import functools
import math

import jax
import jax.numpy as jnp
from jax import lax
from jax.experimental import pallas as pl
from jax.experimental.pallas import tpu as pltpu

NUM_GROUPS = 32
EPS = 1e-5
_VMEM_LIMIT = 48 * 1024 * 1024


def _pick_tile(total, target, quantum=128):
    """Largest tile <= target that divides `total` and is a multiple of `quantum`,
    falling back to the full extent (always legal as a full-dim block)."""
    if total <= target:
        return total
    t = (min(target, total) // quantum) * quantum
    while t >= quantum:
        if total % t == 0:
            return t
        t -= quantum
    return total


# --------------------------------------------------------------------------------------
# Kernel 1: GroupNorm statistics -> per-(batch, channel) scale/shift (affine folded in).
# --------------------------------------------------------------------------------------
def _gn_stats_kernel(x_ref, ggc_ref, gcg_ref, beta_ref, o_ref, sum_ref, sumsq_ref, *,
                     inv_n):
    si = pl.program_id(1)

    @pl.when(si == 0)
    def _():
        sum_ref[...] = jnp.zeros(sum_ref.shape, jnp.float32)
        sumsq_ref[...] = jnp.zeros(sumsq_ref.shape, jnp.float32)

    x = x_ref[0].astype(jnp.float32)                               # (C, TS)
    sum_ref[...] += jnp.sum(x, axis=1, keepdims=True)              # (C, 1)
    sumsq_ref[...] += jnp.sum(x * x, axis=1, keepdims=True)        # (C, 1)

    @pl.when(si == pl.num_programs(1) - 1)
    def _():
        # Combined (G, C) @ (C, 2) reduction of [sum | sumsq] to groups.
        s2 = jnp.concatenate([sum_ref[...], sumsq_ref[...]], axis=1)          # (C, 2)
        g2 = jnp.dot(ggc_ref[...], s2, preferred_element_type=jnp.float32)    # (G, 2)
        mean_g = g2[:, 0:1] * inv_n
        var_g = g2[:, 1:2] * inv_n - mean_g * mean_g                # biased var (torch GN)
        rstd_g = lax.rsqrt(var_g + EPS)
        # Broadcast back per channel with gamma folded into the one-hot matrix:
        #   col0 = gamma_c * rstd_g(c),  col1 = gamma_c * rstd_g(c) * mean_g(c)
        mr_g = jnp.concatenate([rstd_g, rstd_g * mean_g], axis=1)             # (G, 2)
        mr_c = jnp.dot(gcg_ref[...], mr_g, preferred_element_type=jnp.float32)  # (C, 2)
        scale = mr_c[:, 0:1]
        shift = beta_ref[...] - mr_c[:, 1:2]
        o_ref[0] = jnp.concatenate([scale, shift], axis=1)          # (C, 2)


# --------------------------------------------------------------------------------------
# Kernel 2: GroupNorm apply + fused QKV projection (bf16 MXU, f32 accumulation).
# --------------------------------------------------------------------------------------
def _qkv_kernel(x_ref, ss_ref, w_ref, b_ref, o_ref):
    x_ct = x_ref[0].astype(jnp.float32)                             # (C, TS)
    ss = ss_ref[0]                                                  # (C, 2)
    xn_ct = x_ct * ss[:, 0:1] + ss[:, 1:2]                          # normalized, affine folded
    xn = jnp.transpose(xn_ct).astype(jnp.bfloat16)                  # (TS, C)
    qkv = jnp.dot(xn, w_ref[...], preferred_element_type=jnp.float32) + b_ref[...]
    o_ref[0] = qkv.astype(o_ref.dtype)                              # (TS, 3C) bf16


# --------------------------------------------------------------------------------------
# Kernel 3: flash attention (online softmax over key tiles) + out_proj + residual.
# --------------------------------------------------------------------------------------
def _flash_kernel(q_ref, k_ref, v_ref, wo_ref, bo_ref, xres_ref, o_ref,
                  m_ref, l_ref, acc_ref):
    ki = pl.program_id(2)

    @pl.when(ki == 0)
    def _():
        m_ref[...] = jnp.full(m_ref.shape, -jnp.inf, jnp.float32)
        l_ref[...] = jnp.zeros(l_ref.shape, jnp.float32)
        acc_ref[...] = jnp.zeros(acc_ref.shape, jnp.float32)

    q = q_ref[0]                                                    # (TQ, C) bf16, pre-scaled
    k = k_ref[0]                                                    # (TK, C) bf16
    s = lax.dot_general(q, k, (((1,), (1,)), ((), ())),
                        preferred_element_type=jnp.float32)          # (TQ, TK)

    m_prev = m_ref[...]
    m_new = jnp.maximum(m_prev, jnp.max(s, axis=-1, keepdims=True))  # (TQ, 1)
    alpha = jnp.exp(m_prev - m_new)
    p = jnp.exp(s - m_new)                                           # (TQ, TK) f32
    l_ref[...] = alpha * l_ref[...] + jnp.sum(p, axis=-1, keepdims=True)
    acc_ref[...] = alpha * acc_ref[...] + jnp.dot(
        p.astype(jnp.bfloat16), v_ref[0], preferred_element_type=jnp.float32)
    m_ref[...] = m_new

    @pl.when(ki == pl.num_programs(2) - 1)
    def _():
        attn = acc_ref[...] * pl.reciprocal(l_ref[...], approx=True)  # (TQ, C) f32
        out = jnp.dot(attn.astype(jnp.bfloat16), wo_ref[...],
                      preferred_element_type=jnp.float32) + bo_ref[...]   # (TQ, C)
        out_ct = jnp.transpose(out) + xres_ref[0].astype(jnp.float32)     # (C, TQ) + residual
        o_ref[0] = out_ct.astype(o_ref.dtype)


# --------------------------------------------------------------------------------------
# Wrapper
# --------------------------------------------------------------------------------------
def vae_attention_block(x_nchw, params, *, tq=256, tk=256, ts=512):
    """Pallas implementation of VAE_AttentionBlock.forward.  x_nchw: (B, C, H, W)."""
    B, C, H, W = x_nchw.shape
    assert C % NUM_GROUPS == 0, "GroupNorm(32, C) requires C % 32 == 0"
    assert C % 128 == 0, "kernel requires lane-aligned channels (C % 128 == 0)"
    S = H * W
    x_bcs = x_nchw.reshape(B, C, S)                     # free reshape, no transpose

    TS = _pick_tile(S, ts)
    TQ = _pick_tile(S, tq)
    TK = _pick_tile(S, tk)
    NS, NQ, NK = S // TS, S // TQ, S // TK
    gsize = C // NUM_GROUPS

    # --- GroupNorm helper matrices (gamma folded into the channel<-group broadcast) ---
    gidx = jnp.arange(C) // gsize
    onehot_cg = (gidx[:, None] == jnp.arange(NUM_GROUPS)[None, :]).astype(jnp.float32)
    gmat_gc = onehot_cg.T                                                   # (G, C)
    gmat_cg_gamma = onehot_cg * params["gn_weight"].astype(jnp.float32)[:, None]  # (C, G)
    beta_col = params["gn_bias"].reshape(C, 1).astype(jnp.float32)

    # --- fused QKV weights (torch Linear: y = x @ W.T + b); 1/sqrt(C) folded into q ---
    w_in = params["in_proj_weight"].astype(jnp.float32)   # (3C, C)
    b_in = params["in_proj_bias"].astype(jnp.float32)     # (3C,)
    qscale = jnp.concatenate([jnp.full((C,), 1.0 / math.sqrt(C), jnp.float32),
                              jnp.ones((2 * C,), jnp.float32)])
    w_qkv = (w_in.T * qscale[None, :]).astype(jnp.bfloat16)          # (C, 3C) bf16
    b_qkv = (b_in * qscale).reshape(1, 3 * C).astype(jnp.float32)
    wo = params["out_proj_weight"].astype(jnp.float32).T.astype(jnp.bfloat16)  # (C, C)
    bo = params["out_proj_bias"].reshape(1, C).astype(jnp.float32)

    # ---------------- 1) GroupNorm statistics -> (B, C, 2) scale/shift ----------------
    scale_shift = pl.pallas_call(
        functools.partial(_gn_stats_kernel, inv_n=1.0 / float(S * gsize)),
        out_shape=jax.ShapeDtypeStruct((B, C, 2), jnp.float32),
        grid=(B, NS),
        in_specs=[
            pl.BlockSpec((1, C, TS), lambda b, si: (b, 0, si)),
            pl.BlockSpec((NUM_GROUPS, C), lambda b, si: (0, 0)),
            pl.BlockSpec((C, NUM_GROUPS), lambda b, si: (0, 0)),
            pl.BlockSpec((C, 1), lambda b, si: (0, 0)),
        ],
        out_specs=pl.BlockSpec((1, C, 2), lambda b, si: (b, 0, 0)),
        scratch_shapes=[pltpu.VMEM((C, 1), jnp.float32),
                        pltpu.VMEM((C, 1), jnp.float32)],
        compiler_params=pltpu.CompilerParams(
            dimension_semantics=("parallel", "arbitrary"),
            vmem_limit_bytes=_VMEM_LIMIT),
    )(x_bcs, gmat_gc, gmat_cg_gamma, beta_col)

    # ---------------- 2) GN apply + fused QKV projection -> (B, S, 3C) bf16 -----------
    qkv = pl.pallas_call(
        _qkv_kernel,
        out_shape=jax.ShapeDtypeStruct((B, S, 3 * C), jnp.bfloat16),
        grid=(B, NS),
        in_specs=[
            pl.BlockSpec((1, C, TS), lambda b, si: (b, 0, si)),
            pl.BlockSpec((1, C, 2), lambda b, si: (b, 0, 0)),
            pl.BlockSpec((C, 3 * C), lambda b, si: (0, 0)),
            pl.BlockSpec((1, 3 * C), lambda b, si: (0, 0)),
        ],
        out_specs=pl.BlockSpec((1, TS, 3 * C), lambda b, si: (b, si, 0)),
        compiler_params=pltpu.CompilerParams(
            dimension_semantics=("parallel", "parallel"),
            vmem_limit_bytes=_VMEM_LIMIT),
    )(x_bcs, scale_shift, w_qkv, b_qkv)

    # ---------------- 3) flash attention + out_proj + residual -> (B, C, S) -----------
    out_bcs = pl.pallas_call(
        _flash_kernel,
        out_shape=jax.ShapeDtypeStruct((B, C, S), x_nchw.dtype),
        grid=(B, NQ, NK),
        in_specs=[
            pl.BlockSpec((1, TQ, C), lambda b, qi, ki: (b, qi, 0)),   # q slice of qkv
            pl.BlockSpec((1, TK, C), lambda b, qi, ki: (b, ki, 1)),   # k slice of qkv
            pl.BlockSpec((1, TK, C), lambda b, qi, ki: (b, ki, 2)),   # v slice of qkv
            pl.BlockSpec((C, C), lambda b, qi, ki: (0, 0)),           # Wo (bf16)
            pl.BlockSpec((1, C), lambda b, qi, ki: (0, 0)),           # bo
            pl.BlockSpec((1, C, TQ), lambda b, qi, ki: (b, 0, qi)),   # residual x tile
        ],
        out_specs=pl.BlockSpec((1, C, TQ), lambda b, qi, ki: (b, 0, qi)),
        scratch_shapes=[pltpu.VMEM((TQ, 1), jnp.float32),             # running max
                        pltpu.VMEM((TQ, 1), jnp.float32),             # running sum
                        pltpu.VMEM((TQ, C), jnp.float32)],            # output accumulator
        compiler_params=pltpu.CompilerParams(
            dimension_semantics=("parallel", "parallel", "arbitrary"),
            vmem_limit_bytes=_VMEM_LIMIT),
    )(qkv, qkv, qkv, wo, bo, x_bcs)

    return out_bcs.reshape(B, C, H, W)


# --------------------------------------------------------------------------------------
# Pure-JAX f32 reference mirroring the PyTorch forward.
# --------------------------------------------------------------------------------------
def vae_attention_block_ref(x, params):
    B, C, H, W = x.shape
    S = H * W
    xg = x.reshape(B, NUM_GROUPS, C // NUM_GROUPS, H, W)
    mean = xg.mean(axis=(2, 3, 4), keepdims=True)
    var = xg.var(axis=(2, 3, 4), keepdims=True)
    xn = (xg - mean) / jnp.sqrt(var + EPS)
    xn = xn.reshape(B, C, H, W)
    xn = xn * params["gn_weight"].reshape(1, C, 1, 1) + params["gn_bias"].reshape(1, C, 1, 1)
    h = jnp.transpose(xn.reshape(B, C, S), (0, 2, 1))                 # (B, S, C)
    qkv = jnp.einsum("bsc,dc->bsd", h, params["in_proj_weight"]) + params["in_proj_bias"]
    q, k, v = jnp.split(qkv, 3, axis=-1)
    s = jnp.einsum("bqc,bkc->bqk", q, k) / math.sqrt(C)
    p = jax.nn.softmax(s, axis=-1)
    o = jnp.einsum("bqk,bkc->bqc", p, v)
    o = jnp.einsum("bsc,dc->bsd", o, params["out_proj_weight"]) + params["out_proj_bias"]
    o = jnp.transpose(o, (0, 2, 1)).reshape(B, C, H, W)
    return o + x


if __name__ == "__main__":
    B, C, H, W = 2, 128, 16, 16          # S = 256 -> exercises multi-tile flash path
    key = jax.random.PRNGKey(0)
    k0, k1, k2, k3, k4, k5, k6 = jax.random.split(key, 7)

    params = {
        "gn_weight": 1.0 + 0.1 * jax.random.normal(k0, (C,), jnp.float32),
        "gn_bias": 0.1 * jax.random.normal(k1, (C,), jnp.float32),
        "in_proj_weight": jax.random.normal(k2, (3 * C, C), jnp.float32) / math.sqrt(C),
        "in_proj_bias": 0.02 * jax.random.normal(k3, (3 * C,), jnp.float32),
        "out_proj_weight": jax.random.normal(k4, (C, C), jnp.float32) / math.sqrt(C),
        "out_proj_bias": 0.02 * jax.random.normal(k5, (C,), jnp.float32),
    }
    x = jax.random.normal(k6, (B, C, H, W), jnp.float32)

    fn = jax.jit(lambda xx, pp: vae_attention_block(xx, pp, tq=128, tk=128, ts=128))
    out = jax.block_until_ready(fn(x, params))
    ref = jax.block_until_ready(vae_attention_block_ref(x, params))

    assert out.shape == x.shape and out.dtype == x.dtype
    max_err = float(jnp.max(jnp.abs(out - ref)))
    # Kernel uses bf16 MXU operands (f32 accumulation); reference is pure f32.
    assert jnp.allclose(out, ref, atol=5e-2, rtol=5e-2), max_err
    print("KERNEL_OK")
</pallas_src>

<mosaic_0001>
module attributes {stable_mosaic.version = 11 : i64} {
  func.func @_gn_stats_kernel(%arg0: i32, %arg1: i32, %arg2: memref<1x128x128xf32, #tpu.memory_space<vmem>>, %arg3: memref<32x128xf32, #tpu.memory_space<vmem>>, %arg4: memref<128x32xf32, #tpu.memory_space<vmem>>, %arg5: memref<128x1xf32, #tpu.memory_space<vmem>>, %arg6: memref<1x128x2xf32, #tpu.memory_space<vmem>>, %arg7: memref<128x1xf32, #tpu.memory_space<vmem>>, %arg8: memref<128x1xf32, #tpu.memory_space<vmem>>) attributes {dimension_semantics = [#tpu.dimension_semantics<parallel>, #tpu.dimension_semantics<arbitrary>], iteration_bounds = array<i64: 2, 2>, scalar_prefetch = 0 : i64, scratch_operands = 2 : i64, tpu.core_type = #tpu.core_type<tc>, window_params = [{transform_indices = @transform_0, window_bounds = array<i64: 1, 128, 128>}, {pipeline_mode = #tpu.pipeline_mode<synchronous>, transform_indices = @transform_1, window_bounds = array<i64: 32, 128>}, {pipeline_mode = #tpu.pipeline_mode<synchronous>, transform_indices = @transform_2, window_bounds = array<i64: 128, 32>}, {pipeline_mode = #tpu.pipeline_mode<synchronous>, transform_indices = @transform_3, window_bounds = array<i64: 128, 1>}, {transform_indices = @transform_4, window_bounds = array<i64: 1, 128, 2>}]} {
    %c0_i32 = arith.constant 0 : i32
    %0 = arith.cmpi eq, %arg1, %c0_i32 : i32
    %1 = arith.extui %0 : i1 to i32
    %c0_i32_0 = arith.constant 0 : i32
    %2 = arith.cmpi ne, %1, %c0_i32_0 : i32
    scf.if %2 {
      %cst_13 = arith.constant 0.000000e+00 : f32
      %19 = vector.broadcast %cst_13 : f32 to vector<128x1xf32>
      %c0_14 = arith.constant 0 : index
      %c0_15 = arith.constant 0 : index
      %20 = vector.load %arg7[%c0_14, %c0_15] : memref<128x1xf32, #tpu.memory_space<vmem>>, vector<128x1xf32>
      tpu.vector_store %arg7[%c0_14, %c0_15], %19 {strides = array<i32>} : memref<128x1xf32, #tpu.memory_space<vmem>>, vector<128x1xf32>,
      %cst_16 = arith.constant 0.000000e+00 : f32
      %21 = vector.broadcast %cst_16 : f32 to vector<128x1xf32>
      %c0_17 = arith.constant 0 : index
      %c0_18 = arith.constant 0 : index
      %22 = vector.load %arg8[%c0_17, %c0_18] : memref<128x1xf32, #tpu.memory_space<vmem>>, vector<128x1xf32>
      tpu.vector_store %arg8[%c0_17, %c0_18], %21 {strides = array<i32>} : memref<128x1xf32, #tpu.memory_space<vmem>>, vector<128x1xf32>,
    } else {
    }
    %c0 = arith.constant 0 : index
    %c0_1 = arith.constant 0 : index
    %c0_2 = arith.constant 0 : index
    %3 = vector.load %arg2[%c0, %c0_1, %c0_2] : memref<1x128x128xf32, #tpu.memory_space<vmem>>, vector<1x128x128xf32>
    %4 = vector.shape_cast %3 : vector<1x128x128xf32> to vector<128x128xf32>
    %c0_3 = arith.constant 0 : index
    %c0_4 = arith.constant 0 : index
    %5 = vector.load %arg7[%c0_3, %c0_4] : memref<128x1xf32, #tpu.memory_space<vmem>>, vector<128x1xf32>
    %cst = arith.constant dense<0.000000e+00> : vector<128xf32>
    %6 = vector.multi_reduction <add>, %4, %cst [1] : vector<128x128xf32> to vector<128xf32>
    %7 = vector.shape_cast %6 : vector<128xf32> to vector<128x1xf32>
    %8 = arith.addf %5, %7 : vector<128x1xf32>
    %c0_5 = arith.constant 0 : index
    %c0_6 = arith.constant 0 : index
    %9 = vector.load %arg7[%c0_5, %c0_6] : memref<128x1xf32, #tpu.memory_space<vmem>>, vector<128x1xf32>
    tpu.vector_store %arg7[%c0_5, %c0_6], %8 {strides = array<i32>} : memref<128x1xf32, #tpu.memory_space<vmem>>, vector<128x1xf32>,
    %c0_7 = arith.constant 0 : index
    %c0_8 = arith.constant 0 : index
    %10 = vector.load %arg8[%c0_7, %c0_8] : memref<128x1xf32, #tpu.memory_space<vmem>>, vector<128x1xf32>
    %11 = arith.mulf %4, %4 : vector<128x128xf32>
    %cst_9 = arith.constant dense<0.000000e+00> : vector<128xf32>
    %12 = vector.multi_reduction <add>, %11, %cst_9 [1] : vector<128x128xf32> to vector<128xf32>
    %13 = vector.shape_cast %12 : vector<128xf32> to vector<128x1xf32>
    %14 = arith.addf %10, %13 : vector<128x1xf32>
    %c0_10 = arith.constant 0 : index
    %c0_11 = arith.constant 0 : index
    %15 = vector.load %arg8[%c0_10, %c0_11] : memref<128x1xf32, #tpu.memory_space<vmem>>, vector<128x1xf32>
    tpu.vector_store %arg8[%c0_10, %c0_11], %14 {strides = array<i32>} : memref<128x1xf32, #tpu.memory_space<vmem>>, vector<128x1xf32>,
    %c1_i32 = arith.constant 1 : i32
    %16 = arith.cmpi eq, %arg1, %c1_i32 : i32
    %17 = arith.extui %16 : i1 to i32
    %c0_i32_12 = arith.constant 0 : i32
    %18 = arith.cmpi ne, %17, %c0_i32_12 : i32
    scf.if %18 {
      %c0_13 = arith.constant 0 : index
      %c0_14 = arith.constant 0 : index
      %19 = vector.load %arg7[%c0_13, %c0_14] : memref<128x1xf32, #tpu.memory_space<vmem>>, vector<128x1xf32>
      %c0_15 = arith.constant 0 : index
      %c0_16 = arith.constant 0 : index
      %20 = vector.load %arg8[%c0_15, %c0_16] : memref<128x1xf32, #tpu.memory_space<vmem>>, vector<128x1xf32>
      %21 = tpu.concatenate %19, %20 in 1 : vector<128x1xf32>, vector<128x1xf32> -> vector<128x2xf32>
      %c0_17 = arith.constant 0 : index
      %c0_18 = arith.constant 0 : index
      %22 = vector.load %arg3[%c0_17, %c0_18] : memref<32x128xf32, #tpu.memory_space<vmem>>, vector<32x128xf32>
      %cst_19 = arith.constant dense<0.000000e+00> : vector<32x2xf32>
      %23 = tpu.matmul %22, %21, %cst_19 {dimension_numbers = #tpu.dot_dimension_numbers<[1], [0], [0], [1], [0, 0, 1, 1], [], []>} : vector<32x128xf32>, vector<128x2xf32>, vector<32x2xf32> -> vector<32x2xf32>
      %24 = vector.extract_strided_slice %23 {offsets = [0, 0], sizes = [32, 1], strides = [1, 1]} : vector<32x2xf32> to vector<32x1xf32>
      %cst_20 = arith.constant 9.765625E-4 : f32
      %25 = vector.broadcast %cst_20 : f32 to vector<32x1xf32>
      %26 = arith.mulf %24, %25 : vector<32x1xf32>
      %27 = vector.extract_strided_slice %23 {offsets = [0, 1], sizes = [32, 1], strides = [1, 1]} : vector<32x2xf32> to vector<32x1xf32>
      %cst_21 = arith.constant 9.765625E-4 : f32
      %28 = vector.broadcast %cst_21 : f32 to vector<32x1xf32>
      %29 = arith.mulf %27, %28 : vector<32x1xf32>
      %30 = arith.mulf %26, %26 : vector<32x1xf32>
      %31 = arith.subf %29, %30 : vector<32x1xf32>
      %cst_22 = arith.constant 9.99999974E-6 : f32
      %32 = vector.broadcast %cst_22 : f32 to vector<32x1xf32>
      %33 = arith.addf %31, %32 : vector<32x1xf32>
      %34 = math.rsqrt %33 : vector<32x1xf32>
      %35 = arith.mulf %34, %26 : vector<32x1xf32>
      %36 = tpu.concatenate %34, %35 in 1 : vector<32x1xf32>, vector<32x1xf32> -> vector<32x2xf32>
      %c0_23 = arith.constant 0 : index
      %c0_24 = arith.constant 0 : index
      %37 = vector.load %arg4[%c0_23, %c0_24] : memref<128x32xf32, #tpu.memory_space<vmem>>, vector<128x32xf32>
      %cst_25 = arith.constant dense<0.000000e+00> : vector<128x2xf32>
      %38 = tpu.matmul %37, %36, %cst_25 {dimension_numbers = #tpu.dot_dimension_numbers<[1], [0], [0], [1], [0, 0, 1, 1], [], []>} : vector<128x32xf32>, vector<32x2xf32>, vector<128x2xf32> -> vector<128x2xf32>
      %39 = vector.extract_strided_slice %38 {offsets = [0, 0], sizes = [128, 1], strides = [1, 1]} : vector<128x2xf32> to vector<128x1xf32>
      %c0_26 = arith.constant 0 : index
      %c0_27 = arith.constant 0 : index
      %40 = vector.load %arg5[%c0_26, %c0_27] : memref<128x1xf32, #tpu.memory_space<vmem>>, vector<128x1xf32>
      %41 = vector.extract_strided_slice %38 {offsets = [0, 1], sizes = [128, 1], strides = [1, 1]} : vector<128x2xf32> to vector<128x1xf32>
      %42 = arith.subf %40, %41 : vector<128x1xf32>
      %43 = tpu.concatenate %39, %42 in 1 : vector<128x1xf32>, vector<128x1xf32> -> vector<128x2xf32>
      %c0_28 = arith.constant 0 : index
      %c0_29 = arith.constant 0 : index
      %c0_30 = arith.constant 0 : index
      %44 = vector.load %arg6[%c0_28, %c0_29, %c0_30] : memref<1x128x2xf32, #tpu.memory_space<vmem>>, vector<1x128x2xf32>
      %45 = vector.shape_cast %44 : vector<1x128x2xf32> to vector<128x2xf32>
      %46 = vector.shape_cast %43 : vector<128x2xf32> to vector<1x128x2xf32>
      tpu.vector_store %arg6[%c0_28, %c0_29, %c0_30], %46 {strides = array<i32>} : memref<1x128x2xf32, #tpu.memory_space<vmem>>, vector<1x128x2xf32>,
    } else {
    }
    return
  }
  func.func @transform_0(%arg0: i32, %arg1: i32) -> (i32, i32, i32) {
    %c0_i32 = arith.constant 0 : i32
    %c0_i32_0 = arith.constant 0 : i32
    return %arg0, %c0_i32, %arg1 : i32, i32, i32
  }
  func.func @transform_1(%arg0: i32, %arg1: i32) -> (i32, i32) {
    %c0_i32 = arith.constant 0 : i32
    %c0_i32_0 = arith.constant 0 : i32
    %c0_i32_1 = arith.constant 0 : i32
    return %c0_i32, %c0_i32_0 : i32, i32
  }
  func.func @transform_2(%arg0: i32, %arg1: i32) -> (i32, i32) {
    %c0_i32 = arith.constant 0 : i32
    %c0_i32_0 = arith.constant 0 : i32
    %c0_i32_1 = arith.constant 0 : i32
    return %c0_i32, %c0_i32_0 : i32, i32
  }
  func.func @transform_3(%arg0: i32, %arg1: i32) -> (i32, i32) {
    %c0_i32 = arith.constant 0 : i32
    %c0_i32_0 = arith.constant 0 : i32
    %c0_i32_1 = arith.constant 0 : i32
    return %c0_i32, %c0_i32_0 : i32, i32
  }
  func.func @transform_4(%arg0: i32, %arg1: i32) -> (i32, i32, i32) {
    %c0_i32 = arith.constant 0 : i32
    %c0_i32_0 = arith.constant 0 : i32
    %c0_i32_1 = arith.constant 0 : i32
    return %arg0, %c0_i32, %c0_i32_0 : i32, i32, i32
  }
}

module attributes {stable_mosaic.version = 11 : i64} {
  func.func @_qkv_kernel(%arg0: i32, %arg1: i32, %arg2: memref<1x128x128xf32, #tpu.memory_space<vmem>>, %arg3: memref<1x128x2xf32, #tpu.memory_space<vmem>>, %arg4: memref<128x384xbf16, #tpu.memory_space<vmem>>, %arg5: memref<1x384xf32, #tpu.memory_space<vmem>>, %arg6: memref<1x128x384xbf16, #tpu.memory_space<vmem>>) attributes {dimension_semantics = [#tpu.dimension_semantics<parallel>, #tpu.dimension_semantics<parallel>], iteration_bounds = array<i64: 2, 2>, scalar_prefetch = 0 : i64, scratch_operands = 0 : i64, tpu.core_type = #tpu.core_type<tc>, window_params = [{transform_indices = @transform_0, window_bounds = array<i64: 1, 128, 128>}, {transform_indices = @transform_1, window_bounds = array<i64: 1, 128, 2>}, {pipeline_mode = #tpu.pipeline_mode<synchronous>, transform_indices = @transform_2, window_bounds = array<i64: 128, 384>}, {pipeline_mode = #tpu.pipeline_mode<synchronous>, transform_indices = @transform_3, window_bounds = array<i64: 1, 384>}, {transform_indices = @transform_4, window_bounds = array<i64: 1, 128, 384>}]} {
    %c0 = arith.constant 0 : index
    %c0_0 = arith.constant 0 : index
    %c0_1 = arith.constant 0 : index
    %0 = vector.load %arg2[%c0, %c0_0, %c0_1] : memref<1x128x128xf32, #tpu.memory_space<vmem>>, vector<1x128x128xf32>
    %1 = vector.shape_cast %0 : vector<1x128x128xf32> to vector<128x128xf32>
    %c0_2 = arith.constant 0 : index
    %c0_3 = arith.constant 0 : index
    %c0_4 = arith.constant 0 : index
    %2 = vector.load %arg3[%c0_2, %c0_3, %c0_4] : memref<1x128x2xf32, #tpu.memory_space<vmem>>, vector<1x128x2xf32>
    %3 = vector.shape_cast %2 : vector<1x128x2xf32> to vector<128x2xf32>
    %4 = vector.extract_strided_slice %3 {offsets = [0, 0], sizes = [128, 1], strides = [1, 1]} : vector<128x2xf32> to vector<128x1xf32>
    %5 = vector.broadcast %4 : vector<128x1xf32> to vector<128x128xf32>
    %6 = arith.mulf %1, %5 : vector<128x128xf32>
    %7 = vector.extract_strided_slice %3 {offsets = [0, 1], sizes = [128, 1], strides = [1, 1]} : vector<128x2xf32> to vector<128x1xf32>
    %8 = vector.broadcast %7 : vector<128x1xf32> to vector<128x128xf32>
    %9 = arith.addf %6, %8 : vector<128x128xf32>
    %10 = tpu.transpose %9, [1, 0] : vector<128x128xf32> -> vector<128x128xf32>
    %11 = arith.truncf %10 : vector<128x128xf32> to vector<128x128xbf16>
    %c0_5 = arith.constant 0 : index
    %c0_6 = arith.constant 0 : index
    %12 = vector.load %arg4[%c0_5, %c0_6] : memref<128x384xbf16, #tpu.memory_space<vmem>>, vector<128x384xbf16>
    %cst = arith.constant dense<0.000000e+00> : vector<128x384xf32>
    %13 = tpu.matmul %11, %12, %cst {dimension_numbers = #tpu.dot_dimension_numbers<[1], [0], [0], [1], [0, 0, 1, 1], [], []>} : vector<128x128xbf16>, vector<128x384xbf16>, vector<128x384xf32> -> vector<128x384xf32>
    %c0_7 = arith.constant 0 : index
    %c0_8 = arith.constant 0 : index
    %14 = vector.load %arg5[%c0_7, %c0_8] : memref<1x384xf32, #tpu.memory_space<vmem>>, vector<1x384xf32>
    %15 = vector.broadcast %14 : vector<1x384xf32> to vector<128x384xf32>
    %16 = arith.addf %13, %15 : vector<128x384xf32>
    %17 = arith.truncf %16 : vector<128x384xf32> to vector<128x384xbf16>
    %c0_9 = arith.constant 0 : index
    %c0_10 = arith.constant 0 : index
    %c0_11 = arith.constant 0 : index
    %18 = vector.load %arg6[%c0_9, %c0_10, %c0_11] : memref<1x128x384xbf16, #tpu.memory_space<vmem>>, vector<1x128x384xbf16>
    %19 = vector.shape_cast %18 : vector<1x128x384xbf16> to vector<128x384xbf16>
    %20 = vector.shape_cast %17 : vector<128x384xbf16> to vector<1x128x384xbf16>
    tpu.vector_store %arg6[%c0_9, %c0_10, %c0_11], %20 {strides = array<i32>} : memref<1x128x384xbf16, #tpu.memory_space<vmem>>, vector<1x128x384xbf16>,
    return
  }
  func.func @transform_0(%arg0: i32, %arg1: i32) -> (i32, i32, i32) {
    %c0_i32 = arith.constant 0 : i32
    %c0_i32_0 = arith.constant 0 : i32
    return %arg0, %c0_i32, %arg1 : i32, i32, i32
  }
  func.func @transform_1(%arg0: i32, %arg1: i32) -> (i32, i32, i32) {
    %c0_i32 = arith.constant 0 : i32
    %c0_i32_0 = arith.constant 0 : i32
    %c0_i32_1 = arith.constant 0 : i32
    return %arg0, %c0_i32, %c0_i32_0 : i32, i32, i32
  }
  func.func @transform_2(%arg0: i32, %arg1: i32) -> (i32, i32) {
    %c0_i32 = arith.constant 0 : i32
    %c0_i32_0 = arith.constant 0 : i32
    %c0_i32_1 = arith.constant 0 : i32
    return %c0_i32, %c0_i32_0 : i32, i32
  }
  func.func @transform_3(%arg0: i32, %arg1: i32) -> (i32, i32) {
    %c0_i32 = arith.constant 0 : i32
    %c0_i32_0 = arith.constant 0 : i32
    %c0_i32_1 = arith.constant 0 : i32
    return %c0_i32, %c0_i32_0 : i32, i32
  }
  func.func @transform_4(%arg0: i32, %arg1: i32) -> (i32, i32, i32) {
    %c0_i32 = arith.constant 0 : i32
    %c0_i32_0 = arith.constant 0 : i32
    return %arg0, %arg1, %c0_i32 : i32, i32, i32
  }
}

module attributes {stable_mosaic.version = 11 : i64} {
  func.func @_flash_kernel(%arg0: i32, %arg1: i32, %arg2: i32, %arg3: memref<1x128x128xbf16, #tpu.memory_space<vmem>>, %arg4: memref<1x128x128xbf16, #tpu.memory_space<vmem>>, %arg5: memref<1x128x128xbf16, #tpu.memory_space<vmem>>, %arg6: memref<128x128xbf16, #tpu.memory_space<vmem>>, %arg7: memref<1x128xf32, #tpu.memory_space<vmem>>, %arg8: memref<1x128x128xf32, #tpu.memory_space<vmem>>, %arg9: memref<1x128x128xf32, #tpu.memory_space<vmem>>, %arg10: memref<128x1xf32, #tpu.memory_space<vmem>>, %arg11: memref<128x1xf32, #tpu.memory_space<vmem>>, %arg12: memref<128x128xf32, #tpu.memory_space<vmem>>) attributes {dimension_semantics = [#tpu.dimension_semantics<parallel>, #tpu.dimension_semantics<parallel>, #tpu.dimension_semantics<arbitrary>], iteration_bounds = array<i64: 2, 2, 2>, scalar_prefetch = 0 : i64, scratch_operands = 3 : i64, tpu.core_type = #tpu.core_type<tc>, window_params = [{transform_indices = @transform_0, window_bounds = array<i64: 1, 128, 128>}, {transform_indices = @transform_1, window_bounds = array<i64: 1, 128, 128>}, {transform_indices = @transform_2, window_bounds = array<i64: 1, 128, 128>}, {pipeline_mode = #tpu.pipeline_mode<synchronous>, transform_indices = @transform_3, window_bounds = array<i64: 128, 128>}, {pipeline_mode = #tpu.pipeline_mode<synchronous>, transform_indices = @transform_4, window_bounds = array<i64: 1, 128>}, {transform_indices = @transform_5, window_bounds = array<i64: 1, 128, 128>}, {transform_indices = @transform_6, window_bounds = array<i64: 1, 128, 128>}]} {
    %c0_i32 = arith.constant 0 : i32
    %0 = arith.cmpi eq, %arg2, %c0_i32 : i32
    %1 = arith.extui %0 : i1 to i32
    %c0_i32_0 = arith.constant 0 : i32
    %2 = arith.cmpi ne, %1, %c0_i32_0 : i32
    scf.if %2 {
      %cst_25 = arith.constant 0xFF800000 : f32
      %36 = vector.broadcast %cst_25 : f32 to vector<128x1xf32>
      %c0_26 = arith.constant 0 : index
      %c0_27 = arith.constant 0 : index
      %37 = vector.load %arg10[%c0_26, %c0_27] : memref<128x1xf32, #tpu.memory_space<vmem>>, vector<128x1xf32>
      tpu.vector_store %arg10[%c0_26, %c0_27], %36 {strides = array<i32>} : memref<128x1xf32, #tpu.memory_space<vmem>>, vector<128x1xf32>,
      %cst_28 = arith.constant 0.000000e+00 : f32
      %38 = vector.broadcast %cst_28 : f32 to vector<128x1xf32>
      %c0_29 = arith.constant 0 : index
      %c0_30 = arith.constant 0 : index
      %39 = vector.load %arg11[%c0_29, %c0_30] : memref<128x1xf32, #tpu.memory_space<vmem>>, vector<128x1xf32>
      tpu.vector_store %arg11[%c0_29, %c0_30], %38 {strides = array<i32>} : memref<128x1xf32, #tpu.memory_space<vmem>>, vector<128x1xf32>,
      %cst_31 = arith.constant 0.000000e+00 : f32
      %40 = vector.broadcast %cst_31 : f32 to vector<128x128xf32>
      %c0_32 = arith.constant 0 : index
      %c0_33 = arith.constant 0 : index
      %41 = vector.load %arg12[%c0_32, %c0_33] : memref<128x128xf32, #tpu.memory_space<vmem>>, vector<128x128xf32>
      tpu.vector_store %arg12[%c0_32, %c0_33], %40 {strides = array<i32>} : memref<128x128xf32, #tpu.memory_space<vmem>>, vector<128x128xf32>,
    } else {
    }
    %c0 = arith.constant 0 : index
    %c0_1 = arith.constant 0 : index
    %c0_2 = arith.constant 0 : index
    %3 = vector.load %arg3[%c0, %c0_1, %c0_2] : memref<1x128x128xbf16, #tpu.memory_space<vmem>>, vector<1x128x128xbf16>
    %4 = vector.shape_cast %3 : vector<1x128x128xbf16> to vector<128x128xbf16>
    %c0_3 = arith.constant 0 : index
    %c0_4 = arith.constant 0 : index
    %c0_5 = arith.constant 0 : index
    %5 = vector.load %arg4[%c0_3, %c0_4, %c0_5] : memref<1x128x128xbf16, #tpu.memory_space<vmem>>, vector<1x128x128xbf16>
    %6 = vector.shape_cast %5 : vector<1x128x128xbf16> to vector<128x128xbf16>
    %cst = arith.constant dense<0.000000e+00> : vector<128x128xf32>
    %7 = tpu.matmul %4, %6, %cst {dimension_numbers = #tpu.dot_dimension_numbers<[1], [1], [0], [0], [0, 0, 1, 0], [], []>} : vector<128x128xbf16>, vector<128x128xbf16>, vector<128x128xf32> -> vector<128x128xf32>
    %c0_6 = arith.constant 0 : index
    %c0_7 = arith.constant 0 : index
    %8 = vector.load %arg10[%c0_6, %c0_7] : memref<128x1xf32, #tpu.memory_space<vmem>>, vector<128x1xf32>
    %cst_8 = arith.constant dense<0xFF800000> : vector<128xf32>
    %9 = vector.multi_reduction <maximumf>, %7, %cst_8 [1] : vector<128x128xf32> to vector<128xf32>
    %10 = vector.shape_cast %9 : vector<128xf32> to vector<128x1xf32>
    %11 = arith.maximumf %8, %10 : vector<128x1xf32>
    %12 = arith.subf %8, %11 : vector<128x1xf32>
    %13 = math.exp %12 : vector<128x1xf32>
    %14 = vector.broadcast %11 : vector<128x1xf32> to vector<128x128xf32>
    %15 = arith.subf %7, %14 : vector<128x128xf32>
    %16 = math.exp %15 : vector<128x128xf32>
    %c0_9 = arith.constant 0 : index
    %c0_10 = arith.constant 0 : index
    %17 = vector.load %arg11[%c0_9, %c0_10] : memref<128x1xf32, #tpu.memory_space<vmem>>, vector<128x1xf32>
    %18 = arith.mulf %13, %17 : vector<128x1xf32>
    %cst_11 = arith.constant dense<0.000000e+00> : vector<128xf32>
    %19 = vector.multi_reduction <add>, %16, %cst_11 [1] : vector<128x128xf32> to vector<128xf32>
    %20 = vector.shape_cast %19 : vector<128xf32> to vector<128x1xf32>
    %21 = arith.addf %18, %20 : vector<128x1xf32>
    %c0_12 = arith.constant 0 : index
    %c0_13 = arith.constant 0 : index
    %22 = vector.load %arg11[%c0_12, %c0_13] : memref<128x1xf32, #tpu.memory_space<vmem>>, vector<128x1xf32>
    tpu.vector_store %arg11[%c0_12, %c0_13], %21 {strides = array<i32>} : memref<128x1xf32, #tpu.memory_space<vmem>>, vector<128x1xf32>,
    %c0_14 = arith.constant 0 : index
    %c0_15 = arith.constant 0 : index
    %23 = vector.load %arg12[%c0_14, %c0_15] : memref<128x128xf32, #tpu.memory_space<vmem>>, vector<128x128xf32>
    %24 = vector.broadcast %13 : vector<128x1xf32> to vector<128x128xf32>
    %25 = arith.mulf %24, %23 : vector<128x128xf32>
    %26 = arith.truncf %16 : vector<128x128xf32> to vector<128x128xbf16>
    %c0_16 = arith.constant 0 : index
    %c0_17 = arith.constant 0 : index
    %c0_18 = arith.constant 0 : index
    %27 = vector.load %arg5[%c0_16, %c0_17, %c0_18] : memref<1x128x128xbf16, #tpu.memory_space<vmem>>, vector<1x128x128xbf16>
    %28 = vector.shape_cast %27 : vector<1x128x128xbf16> to vector<128x128xbf16>
    %cst_19 = arith.constant dense<0.000000e+00> : vector<128x128xf32>
    %29 = tpu.matmul %26, %28, %cst_19 {dimension_numbers = #tpu.dot_dimension_numbers<[1], [0], [0], [1], [0, 0, 1, 1], [], []>} : vector<128x128xbf16>, vector<128x128xbf16>, vector<128x128xf32> -> vector<128x128xf32>
    %30 = arith.addf %25, %29 : vector<128x128xf32>
    %c0_20 = arith.constant 0 : index
    %c0_21 = arith.constant 0 : index
    %31 = vector.load %arg12[%c0_20, %c0_21] : memref<128x128xf32, #tpu.memory_space<vmem>>, vector<128x128xf32>
    tpu.vector_store %arg12[%c0_20, %c0_21], %30 {strides = array<i32>} : memref<128x128xf32, #tpu.memory_space<vmem>>, vector<128x128xf32>,
    %c0_22 = arith.constant 0 : index
    %c0_23 = arith.constant 0 : index
    %32 = vector.load %arg10[%c0_22, %c0_23] : memref<128x1xf32, #tpu.memory_space<vmem>>, vector<128x1xf32>
    tpu.vector_store %arg10[%c0_22, %c0_23], %11 {strides = array<i32>} : memref<128x1xf32, #tpu.memory_space<vmem>>, vector<128x1xf32>,
    %c1_i32 = arith.constant 1 : i32
    %33 = arith.cmpi eq, %arg2, %c1_i32 : i32
    %34 = arith.extui %33 : i1 to i32
    %c0_i32_24 = arith.constant 0 : i32
    %35 = arith.cmpi ne, %34, %c0_i32_24 : i32
    scf.if %35 {
      %c0_25 = arith.constant 0 : index
      %c0_26 = arith.constant 0 : index
      %36 = vector.load %arg12[%c0_25, %c0_26] : memref<128x128xf32, #tpu.memory_space<vmem>>, vector<128x128xf32>
      %c0_27 = arith.constant 0 : index
      %c0_28 = arith.constant 0 : index
      %37 = vector.load %arg11[%c0_27, %c0_28] : memref<128x1xf32, #tpu.memory_space<vmem>>, vector<128x1xf32>
      %38 = tpu.reciprocal %37 {approx = true} : vector<128x1xf32> -> vector<128x1xf32>
      %39 = vector.broadcast %38 : vector<128x1xf32> to vector<128x128xf32>
      %40 = arith.mulf %36, %39 : vector<128x128xf32>
      %41 = arith.truncf %40 : vector<128x128xf32> to vector<128x128xbf16>
      %c0_29 = arith.constant 0 : index
      %c0_30 = arith.constant 0 : index
      %42 = vector.load %arg6[%c0_29, %c0_30] : memref<128x128xbf16, #tpu.memory_space<vmem>>, vector<128x128xbf16>
      %cst_31 = arith.constant dense<0.000000e+00> : vector<128x128xf32>
      %43 = tpu.matmul %41, %42, %cst_31 {dimension_numbers = #tpu.dot_dimension_numbers<[1], [0], [0], [1], [0, 0, 1, 1], [], []>} : vector<128x128xbf16>, vector<128x128xbf16>, vector<128x128xf32> -> vector<128x128xf32>
      %c0_32 = arith.constant 0 : index
      %c0_33 = arith.constant 0 : index
      %44 = vector.load %arg7[%c0_32, %c0_33] : memref<1x128xf32, #tpu.memory_space<vmem>>, vector<1x128xf32>
      %45 = vector.broadcast %44 : vector<1x128xf32> to vector<128x128xf32>
      %46 = arith.addf %43, %45 : vector<128x128xf32>
      %47 = tpu.transpose %46, [1, 0] : vector<128x128xf32> -> vector<128x128xf32>
      %c0_34 = arith.constant 0 : index
      %c0_35 = arith.constant 0 : index
      %c0_36 = arith.constant 0 : index
      %48 = vector.load %arg8[%c0_34, %c0_35, %c0_36] : memref<1x128x128xf32, #tpu.memory_space<vmem>>, vector<1x128x128xf32>
      %49 = vector.shape_cast %48 : vector<1x128x128xf32> to vector<128x128xf32>
      %50 = arith.addf %47, %49 : vector<128x128xf32>
      %c0_37 = arith.constant 0 : index
      %c0_38 = arith.constant 0 : index
      %c0_39 = arith.constant 0 : index
      %51 = vector.load %arg9[%c0_37, %c0_38, %c0_39] : memref<1x128x128xf32, #tpu.memory_space<vmem>>, vector<1x128x128xf32>
      %52 = vector.shape_cast %51 : vector<1x128x128xf32> to vector<128x128xf32>
      %53 = vector.shape_cast %50 : vector<128x128xf32> to vector<1x128x128xf32>
      tpu.vector_store %arg9[%c0_37, %c0_38, %c0_39], %53 {strides = array<i32>} : memref<1x128x128xf32, #tpu.memory_space<vmem>>, vector<1x128x128xf32>,
    } else {
    }
    return
  }
  func.func @transform_0(%arg0: i32, %arg1: i32, %arg2: i32) -> (i32, i32, i32) {
    %c0_i32 = arith.constant 0 : i32
    %c0_i32_0 = arith.constant 0 : i32
    return %arg0, %arg1, %c0_i32 : i32, i32, i32
  }
  func.func @transform_1(%arg0: i32, %arg1: i32, %arg2: i32) -> (i32, i32, i32) {
    %c1_i32 = arith.constant 1 : i32
    %c0_i32 = arith.constant 0 : i32
    return %arg0, %arg2, %c1_i32 : i32, i32, i32
  }
  func.func @transform_2(%arg0: i32, %arg1: i32, %arg2: i32) -> (i32, i32, i32) {
    %c2_i32 = arith.constant 2 : i32
    %c0_i32 = arith.constant 0 : i32
    return %arg0, %arg2, %c2_i32 : i32, i32, i32
  }
  func.func @transform_3(%arg0: i32, %arg1: i32, %arg2: i32) -> (i32, i32) {
    %c0_i32 = arith.constant 0 : i32
    %c0_i32_0 = arith.constant 0 : i32
    %c0_i32_1 = arith.constant 0 : i32
    return %c0_i32, %c0_i32_0 : i32, i32
  }
  func.func @transform_4(%arg0: i32, %arg1: i32, %arg2: i32) -> (i32, i32) {
    %c0_i32 = arith.constant 0 : i32
    %c0_i32_0 = arith.constant 0 : i32
    %c0_i32_1 = arith.constant 0 : i32
    return %c0_i32, %c0_i32_0 : i32, i32
  }
  func.func @transform_5(%arg0: i32, %arg1: i32, %arg2: i32) -> (i32, i32, i32) {
    %c0_i32 = arith.constant 0 : i32
    %c0_i32_0 = arith.constant 0 : i32
    return %arg0, %c0_i32, %arg1 : i32, i32, i32
  }
  func.func @transform_6(%arg0: i32, %arg1: i32, %arg2: i32) -> (i32, i32, i32) {
    %c0_i32 = arith.constant 0 : i32
    %c0_i32_0 = arith.constant 0 : i32
    return %arg0, %c0_i32, %arg1 : i32, i32, i32
  }
}

</mosaic_0001>

<bundles_post_ra>
// kernel: mul.17
= control target key start
LH: loop header
LB: loop body
LE: loop exit
PB: predicated region body
PF: predicated region fallthrough
CT: control target
= control target key end

     0   :  { %3 = vsyncpa [#allocation1], 0  ;;  %s50_s11 = smov [#allocation0]   ;;  %s75_s0 = inlined_call_operand.hbm [shape: f32[384], index: 0, kind: input, shape index: {}]   ;;  %s76_s1 = inlined_call_operand.vmem [shape: f32[384], index: 1, kind: input, shape index: {}]   ;;  %s77_s2 = inlined_call_operand.vmem [shape: f32[384], index: 2, kind: output, shape index: {}]  }
   0x1   :  { %s7_s0 = sshll.u32 %s75_s0, 4  ;;  %s9_s12 = sshll.u32 %s50_s11, 4  ;;  %s8_s0 = int_to_ptr.hbm [resolvable:$true] %s7_s0  ;;  %s10_s12 = int_to_ptr.vmem [resolvable:$true] %s9_s12 }
   0x2   :  { %12 = dma.hbm_to_vmem [thread:$0]  %s8_s0, 64, %s10_s12, [#allocation1]  }
   0x3   :  { %48 = dma.done.wait [#allocation1], 64  }
   0x4   :  { %49 = vsyncadd [#allocation1], 4294967232  ;;  %v15_v0 = vld [vmem:[#allocation0] sm:$0x7] }
   0x5   :  { %v16_v1 = vld [vmem:[%s76_s1] sm:$0x7] }
   0x6   :  { %v19_v2 = vmul.f32 %v16_v1, %v15_v0 }
   0x8   :  { %21 = vst [vmem:[%s77_s2] sm:$0xf] %v19_v2 }
   0x9   :  { %22 = vsyncpa [#allocation1], 1 }

// kernel: _lambda_.3
= control target key start
LH: loop header
LB: loop body
LE: loop exit
PB: predicated region body
PF: predicated region fallthrough
CT: control target
= control target key end

     0   :  { %s1438_s15 = smov 0   ;;  %s1440_s16 = smov 0   ;;  %s1937_s0 = inlined_call_operand.vmem [shape: f32[2,128,256], index: 0, kind: input, shape index: {}]   ;;  %s1938_s1 = inlined_call_operand.vmem [shape: f32[32,128], index: 1, kind: input, shape index: {}]   ;;  %s1939_s2 = inlined_call_operand.vmem [shape: f32[128,32], index: 2, kind: input, shape index: {}]   ;;  %s1940_s3 = inlined_call_operand.vmem [shape: f32[128,1], index: 3, kind: input, shape index: {}]   ;;  %s1941_s4 = inlined_call_operand.vmem [shape: f32[2,128,2], index: 4, kind: output, shape index: {}]  }
   0x1   :  { %s1442_s17 = smov 0   ;;  %s1444_s18 = smov 0  }
   0x2   :  { %s1446_s19 = smov 0   ;;  %s1448_s20 = smov 0  }
   0x3   :  { %s1450_s21 = smov 0  }
   0x4 LB: > { %s23_s22 = sadd.s32 1, %s1400_s19  ;;  %s26_s23 = sadd.s32 1, %s1404_s20  ;;  %s1408_s21 = sphi %s1450_s21, %s14_s21   ;;  %s1404_s20 = sphi %s1448_s20, %s1947_s20   ;;  %s1400_s19 = sphi %s1446_s19, %s1946_s19   ;;  %s1396_s18 = sphi %s1444_s18, %s1945_s18   ;;  %s1392_s17 = sphi %s1442_s17, %s1944_s17   ;;  %s1388_s16 = sphi %s1440_s16, %s1943_s16   ;;  %s1384_s15 = sphi %s1438_s15, %s1942_s15  }
   0x5   : > { %p24_p0 = scmp.ge.s32.totalorder %s23_s22, 2  ;;  %p42_p1 = scmp.ne.s32.totalorder %s1388_s16, %s1384_s15 }
   0x6   : > { %p43_p2 = scmp.eq.s32.totalorder %s1408_s21, 0  ;;  %s35_s27 = sadd.s32 1, %s1388_s16 }
   0x7   : > { %s1949_s22 = smov (%p24_p0, %s23_s22), 0  ;;  %s1951_s23 = smov (!%p24_p0, %s26_s23), %s1404_s20 }
   0x8   : > { %p44_p3 = por %p43_p2, %p42_p1  ;;  %p28_p4 = scmp.ge.s32.totalorder %s1951_s23, 2 }
   0x9   : > { %s31_s24 = ssub.s32 %s1400_s19, %s1949_s22  ;;  %p1200_p6 = scmp.ge.s32.totalorder %s1408_s21, 4 }
   0xa   : > { %s1953_s23 = smov (%p28_p4, %s1951_s23), 0 }
   0xb   : > { %s30_s25 = ssub.s32 %s1404_s20, %s1953_s23  ;;  %166 = sbr.rel (%p1200_p6) target bundleno = 38 (0x26), region = 28 }
   0xc   : > { %s32_s26 = sor.u32 %s31_s24, %s30_s25 }
   0xd   : > { %p33_p5 = scmp.eq.s32.totalorder %s32_s26, 0 }
   0xf   : > { %s1489_s28 = scalar_select %p33_p5, %s1388_s16, %s35_s27  }
  0x10   : > { %169 = sbr.rel (!%p44_p3) target bundleno = 38 (0x26), region = 32  ;;  %s171_s29 = sand.u32 (%p44_p3), 1, %s1388_s16  }
  0x11   : > { %s1202_s30 = sshll.u32 (%p44_p3), %s1404_s20, 5  ;;  %s1201_s5 = sshll.u32 (%p44_p3), %s171_s29, 7 }
  0x12   : > { %s175_s6 = sadd.s32 (%p44_p3), %s1400_s19, %s1202_s30  ;;  %s173_s11 = scalar_lea.vmem (%p44_p3), [#allocation4], %s1201_s5 }
  0x13   : > { %s1203_s7 = sshll.u32 (%p44_p3), %s175_s6, 3 }
  0x14   : > { %s1498_s10 = scalar_lea.vmem (%p44_p3), %s1937_s0, %s1203_s7 }
  0x15   : > { %v236_v0 = vld [vmem:[%s1498_s10] sm:$0xff]  ;;  %v238_v1 = vld [vmem:[%s1498_s10 + $0x10] sm:$0xff] }
  0x16   : > { %v240_v2 = vld [vmem:[%s1498_s10 + $0x20] sm:$0xff]  ;;  %237 = vst [vmem:[%s173_s11] sm:$0xff] %v236_v0  ;;  %v242_v3 = vld [vmem:[%s1498_s10 + $0x30] sm:$0xff] }
  0x17   : > { %239 = vst [vmem:[%s173_s11 + $0x8] sm:$0xff] %v238_v1  ;;  %v244_v4 = vld [vmem:[%s1498_s10 + $0x40] sm:$0xff]  ;;  %v246_v5 = vld [vmem:[%s1498_s10 + $0x50] sm:$0xff] }
  0x18   : > { %241 = vst [vmem:[%s173_s11 + $0x10] sm:$0xff] %v240_v2  ;;  %v248_v6 = vld [vmem:[%s1498_s10 + $0x60] sm:$0xff]  ;;  %v250_v7 = vld [vmem:[%s1498_s10 + $0x70] sm:$0xff] }
  0x19   : > { %243 = vst [vmem:[%s173_s11 + $0x18] sm:$0xff] %v242_v3  ;;  %v252_v8 = vld [vmem:[%s1498_s10 + $0x80] sm:$0xff]  ;;  %v254_v9 = vld [vmem:[%s1498_s10 + $0x90] sm:$0xff] }
  0x1a   : > { %245 = vst [vmem:[%s173_s11 + $0x20] sm:$0xff] %v244_v4  ;;  %v256_v10 = vld [vmem:[%s1498_s10 + $0xa0] sm:$0xff]  ;;  %v258_v11 = vld [vmem:[%s1498_s10 + $0xb0] sm:$0xff] }
  0x1b   : > { %247 = vst [vmem:[%s173_s11 + $0x28] sm:$0xff] %v246_v5  ;;  %v260_v12 = vld [vmem:[%s1498_s10 + $0xc0] sm:$0xff]  ;;  %v262_v13 = vld [vmem:[%s1498_s10 + $0xd0] sm:$0xff] }
  0x1c   : > { %249 = vst [vmem:[%s173_s11 + $0x30] sm:$0xff] %v248_v6  ;;  %v264_v14 = vld [vmem:[%s1498_s10 + $0xe0] sm:$0xff]  ;;  %v266_v15 = vld [vmem:[%s1498_s10 + $0xf0] sm:$0xff] }
  0x1d   : > { %251 = vst [vmem:[%s173_s11 + $0x38] sm:$0xff] %v250_v7 }
  0x1e   : > { %253 = vst [vmem:[%s173_s11 + $0x40] sm:$0xff] %v252_v8 }
  0x1f   : > { %255 = vst [vmem:[%s173_s11 + $0x48] sm:$0xff] %v254_v9 }
  0x20   : > { %257 = vst [vmem:[%s173_s11 + $0x50] sm:$0xff] %v256_v10 }
  0x21   : > { %259 = vst [vmem:[%s173_s11 + $0x58] sm:$0xff] %v258_v11 }
  0x22   : > { %261 = vst [vmem:[%s173_s11 + $0x60] sm:$0xff] %v260_v12 }
  0x23   : > { %263 = vst [vmem:[%s173_s11 + $0x68] sm:$0xff] %v262_v13 }
  0x24   : > { %265 = vst [vmem:[%s173_s11 + $0x70] sm:$0xff] %v264_v14 }
  0x25   : > { %267 = vst [vmem:[%s173_s11 + $0x78] sm:$0xff] %v266_v15 }
  0x26 PF: > { %p1204_p7 = scmp.ge.s32.totalorder %s1408_s21, 1  ;;  %p272_p8 = scmp.lt.s32.totalorder %s1408_s21, 5 }
  0x28   : > { %p273_p9 = pnand %p1204_p7, %p272_p8 }
  0x29   : > { %s279_s12 = sand.u32 (!%p273_p9), 1, %s1384_s15   ;;  %p304_p10 = scmp.lt.s32.totalorder (!%p273_p9), %s1396_s18, 1 }
  0x2a   : > { %276 = sbr.rel (%p273_p9) target bundleno = 1238 (0x4d6), region = 70  ;;  %s1205_s13 = sshll.u32 (!%p273_p9), %s279_s12, 7 }
  0x2b   : > { %s1526_s27 = scalar_lea.vmem (!%p273_p9), [#allocation4], %s1205_s13  ;;  %p1208_p11 = scmp.ne.s32.totalorder (!%p273_p9), %s1392_s17, 0 }
  0x2f   : > { %s1955_s18 = smov (!%p304_p10, %s1396_s18), 1  ;;  %312 = sbr.rel (%p1208_p11) target bundleno = 85 (0x55), region = 78 }
  0x30   : > { %s1228_s14 = sshll.u32 %s1955_s18, 7 }
  0x31   : > { %s1524_s26 = scalar_lea.vmem %s1941_s4, %s1228_s14 }
  0x34   : > { %vm313_vm0 = vcmask 7168   ;;  %v1410_v16 = vmov 0.0  }
  0x35   : > { %314 = vst.msk [vmem:[#allocation2] sm:$0xff] %vm313_vm0, %v1410_v16 }
  0x36   : > { %315 = vst.msk [vmem:[#allocation2 + $0x8] sm:$0xff] %vm313_vm0, %v1410_v16 }
  0x37   : > { %316 = vst.msk [vmem:[#allocation2 + $0x10] sm:$0xff] %vm313_vm0, %v1410_v16 }
  0x38   : > { %317 = vst.msk [vmem:[#allocation2 + $0x18] sm:$0xff] %vm313_vm0, %v1410_v16 }
  0x39   : > { %318 = vst.msk [vmem:[#allocation2 + $0x20] sm:$0xff] %vm313_vm0, %v1410_v16 }
  0x3a   : > { %319 = vst.msk [vmem:[#allocation2 + $0x28] sm:$0xff] %vm313_vm0, %v1410_v16 }
  0x3b   : > { %320 = vst.msk [vmem:[#allocation2 + $0x30] sm:$0xff] %vm313_vm0, %v1410_v16 }
  0x3c   : > { %321 = vst.msk [vmem:[#allocation2 + $0x38] sm:$0xff] %vm313_vm0, %v1410_v16 }
  0x3d   : > { %322 = vst.msk [vmem:[#allocation2 + $0x40] sm:$0xff] %vm313_vm0, %v1410_v16 }
  0x3e   : > { %323 = vst.msk [vmem:[#allocation2 + $0x48] sm:$0xff] %vm313_vm0, %v1410_v16 }
  0x3f   : > { %324 = vst.msk [vmem:[#allocation2 + $0x50] sm:$0xff] %vm313_vm0, %v1410_v16 }
  0x40   : > { %325 = vst.msk [vmem:[#allocation2 + $0x58] sm:$0xff] %vm313_vm0, %v1410_v16 }
  0x41   : > { %326 = vst.msk [vmem:[#allocation2 + $0x60] sm:$0xff] %vm313_vm0, %v1410_v16 }
  0x42   : > { %327 = vst.msk [vmem:[#allocation2 + $0x68] sm:$0xff] %vm313_vm0, %v1410_v16 }
  0x43   : > { %328 = vst.msk [vmem:[#allocation2 + $0x70] sm:$0xff] %vm313_vm0, %v1410_v16 }
  0x44   : > { %329 = vst.msk [vmem:[#allocation2 + $0x78] sm:$0xff] %vm313_vm0, %v1410_v16 }
  0x45   : > { %330 = vst.msk [vmem:[#allocation3] sm:$0xff] %vm313_vm0, %v1410_v16 }
  0x46   : > { %331 = vst.msk [vmem:[#allocation3 + $0x8] sm:$0xff] %vm313_vm0, %v1410_v16 }
  0x47   : > { %332 = vst.msk [vmem:[#allocation3 + $0x10] sm:$0xff] %vm313_vm0, %v1410_v16 }
  0x48   : > { %333 = vst.msk [vmem:[#allocation3 + $0x18] sm:$0xff] %vm313_vm0, %v1410_v16 }
  0x49   : > { %334 = vst.msk [vmem:[#allocation3 + $0x20] sm:$0xff] %vm313_vm0, %v1410_v16 }
  0x4a   : > { %335 = vst.msk [vmem:[#allocation3 + $0x28] sm:$0xff] %vm313_vm0, %v1410_v16 }
  0x4b   : > { %336 = vst.msk [vmem:[#allocation3 + $0x30] sm:$0xff] %vm313_vm0, %v1410_v16 }
  0x4c   : > { %337 = vst.msk [vmem:[#allocation3 + $0x38] sm:$0xff] %vm313_vm0, %v1410_v16 }
  0x4d   : > { %338 = vst.msk [vmem:[#allocation3 + $0x40] sm:$0xff] %vm313_vm0, %v1410_v16 }
  0x4e   : > { %339 = vst.msk [vmem:[#allocation3 + $0x48] sm:$0xff] %vm313_vm0, %v1410_v16 }
  0x4f   : > { %340 = vst.msk [vmem:[#allocation3 + $0x50] sm:$0xff] %vm313_vm0, %v1410_v16 }
  0x50   : > { %341 = vst.msk [vmem:[#allocation3 + $0x58] sm:$0xff] %vm313_vm0, %v1410_v16 }
  0x51   : > { %342 = vst.msk [vmem:[#allocation3 + $0x60] sm:$0xff] %vm313_vm0, %v1410_v16 }
  0x52   : > { %343 = vst.msk [vmem:[#allocation3 + $0x68] sm:$0xff] %vm313_vm0, %v1410_v16 }
  0x53   : > { %344 = vst.msk [vmem:[#allocation3 + $0x70] sm:$0xff] %vm313_vm0, %v1410_v16 }
  0x54   : > { %345 = vst.msk [vmem:[#allocation3 + $0x78] sm:$0xff] %vm313_vm0, %v1410_v16 }
  0x55 PF: > { %v348_v17 = vld [vmem:[%s1526_s27 + $0x10] sm:$0xff]  ;;  %v346_v18 = vld [vmem:[%s1526_s27] sm:$0xff]  ;;  %v349_v20 = vld [vmem:[%s1526_s27 + $0x18] sm:$0xff]  ;;  %vm426_vm1 = vcmask 7168   ;;  %p1209_p12 = scmp.ne.s32.totalorder %s1392_s17, 1 }
  0x56   : > { %v350_v19 = vld [vmem:[%s1526_s27 + $0x20] sm:$0xff]  ;;  %382 = vadd.xlane.f32.xlu1 %v348_v17  ;;  %378 = vadd.xlane.f32.xlu0 %v346_v18  ;;  %v347_v21 = vld [vmem:[%s1526_s27 + $0x8] sm:$0xff]  ;;  %v353_v23 = vld [vmem:[%s1526_s27 + $0x38] sm:$0xff]  ;;  %v459_v32 = vmul.f32 %v346_v18, %v346_v18  ;;  %v461_v35 = vmul.f32 %v348_v17, %v348_v17  ;;  %v462_v36 = vmul.f32 %v349_v20, %v349_v20  ;;  %s1411_s15 = smov (!%p1209_p12), 1   ;;  %s1412_s9 = smov (!%p1209_p12), 127  }
  0x57   : > { %386 = vadd.xlane.f32.xlu2 %v350_v19  ;;  %v351_v22 = vld [vmem:[%s1526_s27 + $0x28] sm:$0xff]  ;;  %v352_v24 = vld [vmem:[%s1526_s27 + $0x30] sm:$0xff]  ;;  %v354_v25 = vld [vmem:[%s1526_s27 + $0x40] sm:$0xff]  ;;  %v460_v34 = vmul.f32 %v347_v21, %v347_v21  ;;  %v463_v37 = vmul.f32 %v350_v19, %v350_v19  ;;  %v466_v40 = vmul.f32 %v353_v23, %v353_v23 }
  0x58   : > { %v356_v26 = vld [vmem:[%s1526_s27 + $0x50] sm:$0xff]  ;;  %v355_v27 = vld [vmem:[%s1526_s27 + $0x48] sm:$0xff]  ;;  %v357_v28 = vld [vmem:[%s1526_s27 + $0x58] sm:$0xff]  ;;  %v464_v38 = vmul.f32 %v351_v22, %v351_v22  ;;  %v465_v39 = vmul.f32 %v352_v24, %v352_v24  ;;  %v467_v41 = vmul.f32 %v354_v25, %v354_v25 }
  0x59   : > { %v359_v29 = vld [vmem:[%s1526_s27 + $0x68] sm:$0xff]  ;;  %v358_v30 = vld [vmem:[%s1526_s27 + $0x60] sm:$0xff]  ;;  %v360_v31 = vld [vmem:[%s1526_s27 + $0x70] sm:$0xff]  ;;  %v468_v42 = vmul.f32 %v355_v27, %v355_v27  ;;  %v469_v43 = vmul.f32 %v356_v26, %v356_v26  ;;  %v470_v44 = vmul.f32 %v357_v28, %v357_v28 }
  0x5a   : > { %v361_v33 = vld [vmem:[%s1526_s27 + $0x78] sm:$0xff]  ;;  %v471_v45 = vmul.f32 %v358_v30, %v358_v30  ;;  %v472_v46 = vmul.f32 %v359_v29, %v359_v29  ;;  %v473_v47 = vmul.f32 %v360_v31, %v360_v31  ;;  %v364_v49 = vld [vmem:[#allocation2 + $0x10] sm:$0xff]  ;;  %v362_v50 = vld [vmem:[#allocation2] sm:$0xff] }
  0x5b   : > { %v474_v48 = vmul.f32 %v361_v33, %v361_v33  ;;  %v366_v51 = vld [vmem:[#allocation2 + $0x20] sm:$0xff]  ;;  %v365_v58 = vld [vmem:[#allocation2 + $0x18] sm:$0xff]  ;;  %v363_v59 = vld [vmem:[#allocation2 + $0x8] sm:$0xff] }
  0x5c   : > { %v367_v60 = vld [vmem:[#allocation2 + $0x28] sm:$0xff]  ;;  %v369_v3 = vld [vmem:[#allocation2 + $0x38] sm:$0xff]  ;;  %v368_v4 = vld [vmem:[#allocation2 + $0x30] sm:$0xff] }
  0x5d   : > { %v370_v5 = vld [vmem:[#allocation2 + $0x40] sm:$0xff]  ;;  %v372_v12 = vld [vmem:[#allocation2 + $0x50] sm:$0xff]  ;;  %v371_v13 = vld [vmem:[#allocation2 + $0x48] sm:$0xff] }
  0x5e   : > { %384 = vadd.xlane.f32.xlu1 %v349_v20  ;;  %380 = vadd.xlane.f32.xlu0 %v347_v21  ;;  %v373_v14 = vld [vmem:[#allocation2 + $0x58] sm:$0xff]  ;;  %v375_v21 = vld [vmem:[#allocation2 + $0x68] sm:$0xff] }
  0x5f   : > { %388 = vadd.xlane.f32.xlu2 %v351_v22  ;;  %v374_v22 = vld [vmem:[#allocation2 + $0x60] sm:$0xff] }
  0x66   : > { %392 = vadd.xlane.f32.xlu1 %v353_v23  ;;  %390 = vadd.xlane.f32.xlu0 %v352_v24  ;;  %v376_v23 = vld [vmem:[#allocation2 + $0x70] sm:$0xff] }
  0x67   : > { %394 = vadd.xlane.f32.xlu2 %v354_v25 }
  0x6e   : > { %398 = vadd.xlane.f32.xlu1 %v356_v26  ;;  %396 = vadd.xlane.f32.xlu0 %v355_v27 }
  0x6f   : > { %400 = vadd.xlane.f32.xlu2 %v357_v28 }
  0x76   : > { %404 = vadd.xlane.f32.xlu1 %v359_v29  ;;  %402 = vadd.xlane.f32.xlu0 %v358_v30  ;;  %v377_v30 = vld [vmem:[#allocation2 + $0x78] sm:$0xff] }
  0x77   : > { %406 = vadd.xlane.f32.xlu2 %v360_v31  ;;  %v443_v31 = vld [vmem:[#allocation3] sm:$0xff] }
  0x7e   : > { %408 = vadd.xlane.f32.xlu0 %v361_v33  ;;  %475 = vadd.xlane.f32.xlu1 %v459_v32  ;;  %v444_v32 = vld [vmem:[#allocation3 + $0x8] sm:$0xff] }
  0x7f   : > { %477 = vadd.xlane.f32.xlu2 %v460_v34 }
  0x86   : > { %479 = vadd.xlane.f32.xlu0 %v461_v35  ;;  %481 = vadd.xlane.f32.xlu1 %v462_v36 }
  0x87   : > { %483 = vadd.xlane.f32.xlu2 %v463_v37 }
  0x8e   : > { %485 = vadd.xlane.f32.xlu0 %v464_v38  ;;  %487 = vadd.xlane.f32.xlu1 %v465_v39  ;;  %v445_v39 = vld [vmem:[#allocation3 + $0x10] sm:$0xff] }
  0x8f   : > { %489 = vadd.xlane.f32.xlu2 %v466_v40  ;;  %v446_v40 = vld [vmem:[#allocation3 + $0x18] sm:$0xff] }
  0x96   : > { %491 = vadd.xlane.f32.xlu0 %v467_v41  ;;  %493 = vadd.xlane.f32.xlu1 %v468_v42  ;;  %v447_v41 = vld [vmem:[#allocation3 + $0x20] sm:$0xff] }
  0x97   : > { %495 = vadd.xlane.f32.xlu2 %v469_v43 }
  0x9e   : > { %497 = vadd.xlane.f32.xlu0 %v470_v44  ;;  %499 = vadd.xlane.f32.xlu1 %v471_v45 }
  0x9f   : > { %501 = vadd.xlane.f32.xlu2 %v472_v46 }
  0xa6   : > { %503 = vadd.xlane.f32.xlu0 %v473_v47  ;;  %505 = vadd.xlane.f32.xlu1 %v474_v48  ;;  %v448_v48 = vld [vmem:[#allocation3 + $0x28] sm:$0xff] }
  0xc9   : > { %v383_v52 = vpop.xlane.xlu1 %382  ;;  %v379_v53 = vpop.xlane.xlu0 %378 }
  0xca   : > { %v412_v54 = vadd.f32 %v383_v52, %v364_v49  ;;  %v410_v55 = vadd.f32 %v379_v53, %v362_v50  ;;  %v387_v56 = vpop.xlane.xlu2 %386  ;;  %v449_v49 = vld [vmem:[#allocation3 + $0x30] sm:$0xff]  ;;  %v450_v50 = vld [vmem:[#allocation3 + $0x38] sm:$0xff] }
  0xcb   : > { %v414_v57 = vadd.f32 %v387_v56, %v366_v51 }
  0xcc   : > { %429 = vst.msk [vmem:[#allocation2 + $0x10] sm:$0xff] %vm426_vm1, %v412_v54 }
  0xcd   : > { %427 = vst.msk [vmem:[#allocation2] sm:$0xff] %vm426_vm1, %v410_v55 }
  0xce   : > { %431 = vst.msk [vmem:[#allocation2 + $0x20] sm:$0xff] %vm426_vm1, %v414_v57  ;;  %v451_v57 = vld [vmem:[#allocation3 + $0x40] sm:$0xff] }
  0xd1   : > { %v385_v61 = vpop.xlane.xlu1 %384  ;;  %v381_v62 = vpop.xlane.xlu0 %380 }
  0xd2   : > { %v413_v63 = vadd.f32 %v385_v61, %v365_v58  ;;  %v411_v0 = vadd.f32 %v381_v62, %v363_v59  ;;  %v389_v1 = vpop.xlane.xlu2 %388  ;;  %v452_v58 = vld [vmem:[#allocation3 + $0x48] sm:$0xff]  ;;  %v453_v59 = vld [vmem:[#allocation3 + $0x50] sm:$0xff] }
  0xd3   : > { %v415_v2 = vadd.f32 %v389_v1, %v367_v60 }
  0xd4   : > { %430 = vst.msk [vmem:[#allocation2 + $0x18] sm:$0xff] %vm426_vm1, %v413_v63 }
  0xd5   : > { %428 = vst.msk [vmem:[#allocation2 + $0x8] sm:$0xff] %vm426_vm1, %v411_v0 }
  0xd6   : > { %432 = vst.msk [vmem:[#allocation2 + $0x28] sm:$0xff] %vm426_vm1, %v415_v2  ;;  %v454_v2 = vld [vmem:[#allocation3 + $0x58] sm:$0xff] }
  0xd9   : > { %v393_v6 = vpop.xlane.xlu1 %392  ;;  %v391_v7 = vpop.xlane.xlu0 %390 }
  0xda   : > { %v417_v8 = vadd.f32 %v393_v6, %v369_v3  ;;  %v416_v9 = vadd.f32 %v391_v7, %v368_v4  ;;  %v395_v10 = vpop.xlane.xlu2 %394  ;;  %v455_v3 = vld [vmem:[#allocation3 + $0x60] sm:$0xff]  ;;  %v456_v4 = vld [vmem:[#allocation3 + $0x68] sm:$0xff] }
  0xdb   : > { %v418_v11 = vadd.f32 %v395_v10, %v370_v5 }
  0xdc   : > { %434 = vst.msk [vmem:[#allocation2 + $0x38] sm:$0xff] %vm426_vm1, %v417_v8 }
  0xdd   : > { %433 = vst.msk [vmem:[#allocation2 + $0x30] sm:$0xff] %vm426_vm1, %v416_v9 }
  0xde   : > { %435 = vst.msk [vmem:[#allocation2 + $0x40] sm:$0xff] %vm426_vm1, %v418_v11  ;;  %v457_v11 = vld [vmem:[#allocation3 + $0x70] sm:$0xff] }
  0xe1   : > { %v399_v15 = vpop.xlane.xlu1 %398  ;;  %v397_v16 = vpop.xlane.xlu0 %396 }
  0xe2   : > { %v420_v17 = vadd.f32 %v399_v15, %v372_v12  ;;  %v419_v18 = vadd.f32 %v397_v16, %v371_v13  ;;  %v401_v19 = vpop.xlane.xlu2 %400  ;;  %v458_v12 = vld [vmem:[#allocation3 + $0x78] sm:$0xff] }
  0xe3   : > { %v421_v20 = vadd.f32 %v401_v19, %v373_v14 }
  0xe4   : > { %437 = vst.msk [vmem:[#allocation2 + $0x50] sm:$0xff] %vm426_vm1, %v420_v17 }
  0xe5   : > { %436 = vst.msk [vmem:[#allocation2 + $0x48] sm:$0xff] %vm426_vm1, %v419_v18 }
  0xe6   : > { %438 = vst.msk [vmem:[#allocation2 + $0x58] sm:$0xff] %vm426_vm1, %v421_v20 }
  0xe9   : > { %v405_v24 = vpop.xlane.xlu1 %404  ;;  %v403_v25 = vpop.xlane.xlu0 %402 }
  0xea   : > { %v423_v26 = vadd.f32 %v405_v24, %v375_v21  ;;  %v422_v27 = vadd.f32 %v403_v25, %v374_v22  ;;  %v407_v28 = vpop.xlane.xlu2 %406 }
  0xeb   : > { %v424_v29 = vadd.f32 %v407_v28, %v376_v23 }
  0xec   : > { %440 = vst.msk [vmem:[#allocation2 + $0x68] sm:$0xff] %vm426_vm1, %v423_v26 }
  0xed   : > { %439 = vst.msk [vmem:[#allocation2 + $0x60] sm:$0xff] %vm426_vm1, %v422_v27 }
  0xee   : > { %441 = vst.msk [vmem:[#allocation2 + $0x70] sm:$0xff] %vm426_vm1, %v424_v29 }
  0xf1   : > { %v409_v33 = vpop.xlane.xlu0 %408  ;;  %v476_v34 = vpop.xlane.xlu1 %475 }
  0xf2   : > { %v425_v35 = vadd.f32 %v409_v33, %v377_v30  ;;  %v507_v36 = vadd.f32 %v476_v34, %v443_v31  ;;  %v478_v37 = vpop.xlane.xlu2 %477 }
  0xf3   : > { %v508_v38 = vadd.f32 %v478_v37, %v444_v32 }
  0xf4   : > { %442 = vst.msk [vmem:[#allocation2 + $0x78] sm:$0xff] %vm426_vm1, %v425_v35 }
  0xf5   : > { %523 = vst.msk [vmem:[#allocation3] sm:$0xff] %vm426_vm1, %v507_v36 }
  0xf6   : > { %524 = vst.msk [vmem:[#allocation3 + $0x8] sm:$0xff] %vm426_vm1, %v508_v38 }
  0xf9   : > { %v480_v42 = vpop.xlane.xlu0 %479  ;;  %v482_v43 = vpop.xlane.xlu1 %481 }
  0xfa   : > { %v509_v44 = vadd.f32 %v480_v42, %v445_v39  ;;  %v510_v45 = vadd.f32 %v482_v43, %v446_v40  ;;  %v484_v46 = vpop.xlane.xlu2 %483 }
  0xfb   : > { %v511_v47 = vadd.f32 %v484_v46, %v447_v41 }
  0xfc   : > { %525 = vst.msk [vmem:[#allocation3 + $0x10] sm:$0xff] %vm426_vm1, %v509_v44 }
  0xfd   : > { %526 = vst.msk [vmem:[#allocation3 + $0x18] sm:$0xff] %vm426_vm1, %v510_v45 }
  0xfe   : > { %527 = vst.msk [vmem:[#allocation3 + $0x20] sm:$0xff] %vm426_vm1, %v511_v47 }
 0x101   : > { %v486_v51 = vpop.xlane.xlu0 %485  ;;  %v488_v52 = vpop.xlane.xlu1 %487 }
 0x102   : > { %v512_v53 = vadd.f32 %v486_v51, %v448_v48  ;;  %v513_v54 = vadd.f32 %v488_v52, %v449_v49  ;;  %v490_v55 = vpop.xlane.xlu2 %489 }
 0x103   : > { %v514_v56 = vadd.f32 %v490_v55, %v450_v50 }
 0x104   : > { %528 = vst.msk [vmem:[#allocation3 + $0x28] sm:$0xff] %vm426_vm1, %v512_v53 }
 0x105   : > { %529 = vst.msk [vmem:[#allocation3 + $0x30] sm:$0xff] %vm426_vm1, %v513_v54 }
 0x106   : > { %530 = vst.msk [vmem:[#allocation3 + $0x38] sm:$0xff] %vm426_vm1, %v514_v56 }
 0x109   : > { %v492_v60 = vpop.xlane.xlu0 %491  ;;  %v494_v61 = vpop.xlane.xlu1 %493 }
 0x10a   : > { %v515_v62 = vadd.f32 %v492_v60, %v451_v57  ;;  %v516_v63 = vadd.f32 %v494_v61, %v452_v58  ;;  %v496_v0 = vpop.xlane.xlu2 %495 }
 0x10b   : > { %v517_v1 = vadd.f32 %v496_v0, %v453_v59 }
 0x10c   : > { %531 = vst.msk [vmem:[#allocation3 + $0x40] sm:$0xff] %vm426_vm1, %v515_v62 }
 0x10d   : > { %532 = vst.msk [vmem:[#allocation3 + $0x48] sm:$0xff] %vm426_vm1, %v516_v63 }
 0x10e   : > { %533 = vst.msk [vmem:[#allocation3 + $0x50] sm:$0xff] %vm426_vm1, %v517_v1 }
 0x111   : > { %v498_v5 = vpop.xlane.xlu0 %497  ;;  %v500_v6 = vpop.xlane.xlu1 %499 }
 0x112   : > { %v518_v7 = vadd.f32 %v498_v5, %v454_v2  ;;  %v519_v8 = vadd.f32 %v500_v6, %v455_v3  ;;  %v502_v9 = vpop.xlane.xlu2 %501 }
 0x113   : > { %v520_v10 = vadd.f32 %v502_v9, %v456_v4 }
 0x114   : > { %534 = vst.msk [vmem:[#allocation3 + $0x58] sm:$0xff] %vm426_vm1, %v518_v7 }
 0x115   : > { %535 = vst.msk [vmem:[#allocation3 + $0x60] sm:$0xff] %vm426_vm1, %v519_v8 }
 0x116   : > { %536 = vst.msk [vmem:[#allocation3 + $0x68] sm:$0xff] %vm426_vm1, %v520_v10 }
 0x119   : > { %v504_v13 = vpop.xlane.xlu0 %503  ;;  %v506_v14 = vpop.xlane.xlu1 %505  ;;  %542 = sbr.rel (%p1209_p12) target bundleno = 1238 (0x4d6), region = 82 }
 0x11a   : > { %v521_v15 = vadd.f32 %v504_v13, %v457_v11  ;;  %v522_v16 = vadd.f32 %v506_v14, %v458_v12 }
 0x11c   : > { %537 = vst.msk [vmem:[#allocation3 + $0x70] sm:$0xff] %vm426_vm1, %v521_v15 }
 0x11d   : > { %538 = vst.msk [vmem:[#allocation3 + $0x78] sm:$0xff] %vm426_vm1, %v522_v16 }
 0x11e   : > { %v569_v20 = vld [vmem:[#allocation3 + $0x50] sm:$0xff]  ;;  %v570_v21 = vld [vmem:[#allocation3 + $0x58] sm:$0xff]  ;;  %v571_v23 = vld [vmem:[#allocation3 + $0x60] sm:$0xff]  ;;  %vm816_vm14 = vcmask 261120   ;;  %vm1106_vm15 = vcmask 15360  }
 0x11f   : > { %v1306_v22 = vpack.i.bf16 %v569_v20, %v570_v21  ;;  %v572_v24 = vld [vmem:[#allocation3 + $0x68] sm:$0xff]  ;;  %v565_v25 = vld [vmem:[#allocation3 + $0x30] sm:$0xff]  ;;  %v566_v26 = vld [vmem:[#allocation3 + $0x38] sm:$0xff] }
 0x120   : > { %v567_v27 = vld [vmem:[#allocation3 + $0x40] sm:$0xff]  ;;  %v568_v28 = vld [vmem:[#allocation3 + $0x48] sm:$0xff]  ;;  %v1316_v29 = vpack.i.bf16 %v565_v25, %v566_v26  ;;  %v1301_v30 = vpack.i.bf16 %v571_v23, %v572_v24  ;;  %v561_v35 = vld [vmem:[#allocation3 + $0x10] sm:$0xff] }
 0x121   : > { %1307 = vrot.lane.b32.xlu1 %v1306_v22, %s1411_s15  ;;  %v1311_v31 = vpack.i.bf16 %v567_v27, %v568_v28  ;;  %v563_v32 = vld [vmem:[#allocation3 + $0x20] sm:$0xff]  ;;  %v564_v33 = vld [vmem:[#allocation3 + $0x28] sm:$0xff]  ;;  %v562_v36 = vld [vmem:[#allocation3 + $0x18] sm:$0xff] }
 0x122   : > { %1317 = vrot.lane.b32.xlu2 %v1316_v29, %s1411_s15  ;;  %v1321_v34 = vpack.i.bf16 %v563_v32, %v564_v33  ;;  %v559_v37 = vld [vmem:[#allocation3] sm:$0xff]  ;;  %v560_v38 = vld [vmem:[#allocation3 + $0x8] sm:$0xff]  ;;  %v1326_v39 = vpack.i.bf16 %v561_v35, %v562_v36  ;;  %v558_v42 = vld [vmem:[#allocation2 + $0x78] sm:$0xff] }
 0x123   : > { %v573_v17 = vld [vmem:[#allocation3 + $0x70] sm:$0xff]  ;;  %v1331_v40 = vpack.i.bf16 %v559_v37, %v560_v38  ;;  %v556_v50 = vld [vmem:[#allocation2 + $0x68] sm:$0xff]  ;;  %v555_v54 = vld [vmem:[#allocation2 + $0x60] sm:$0xff] }
 0x124   : > { %v574_v18 = vld [vmem:[#allocation3 + $0x78] sm:$0xff]  ;;  %v557_v46 = vld [vmem:[#allocation2 + $0x70] sm:$0xff]  ;;  %v552_v63 = vld [vmem:[#allocation2 + $0x48] sm:$0xff] }
 0x125   : > { %v1296_v19 = vpack.i.bf16 %v573_v17, %v574_v18  ;;  %v554_v58 = vld [vmem:[#allocation2 + $0x58] sm:$0xff]  ;;  %v553_v62 = vld [vmem:[#allocation2 + $0x50] sm:$0xff]  ;;  %v551_v4 = vld [vmem:[#allocation2 + $0x40] sm:$0xff] }
 0x126   : > { %v550_v7 = vld [vmem:[#allocation2 + $0x38] sm:$0xff]  ;;  %v549_v11 = vld [vmem:[#allocation2 + $0x30] sm:$0xff]  ;;  %v548_v13 = vld [vmem:[#allocation2 + $0x28] sm:$0xff] }
 0x127   : > { %1297 = vrot.lane.b32.xlu0 %v1296_v19, %s1411_s15  ;;  %v547_v19 = vld [vmem:[#allocation2 + $0x20] sm:$0xff]  ;;  %v546_v21 = vld [vmem:[#allocation2 + $0x18] sm:$0xff]  ;;  %v545_v26 = vld [vmem:[#allocation2 + $0x10] sm:$0xff] }
 0x128   : > { %v544_v27 = vld [vmem:[#allocation2 + $0x8] sm:$0xff]  ;;  %v655_v32 = vld [vmem:[%s1938_s1] sm:$0xff]  ;;  %v657_v35 = vld [vmem:[%s1938_s1 + $0x10] sm:$0xff] }
 0x129   : > { %1312 = vrot.lane.b32.xlu1 %v1311_v31, %s1411_s15  ;;  %v543_v31 = vld [vmem:[#allocation2] sm:$0xff]  ;;  %v658_v36 = vld [vmem:[%s1938_s1 + $0x18] sm:$0xff] }
 0x12a   : > { %1322 = vrot.lane.b32.xlu2 %v1321_v34, %s1411_s15  ;;  %v656_v34 = vld [vmem:[%s1938_s1 + $0x8] sm:$0xff] }
 0x12f   : > { %1302 = vrot.lane.b32.xlu0 %v1301_v30, %s1411_s15 }
 0x131   : > { %1332 = vrot.lane.b32.xlu1 %v1331_v40, %s1411_s15 }
 0x137   : > { %1327 = vrot.lane.b32.xlu0 %v1326_v39, %s1411_s15 }
 0x17c   : > { %v1318_v51 = vpop.permute.xlu2 %1317 }
 0x17d   : > { %v1319_v6 = vunpack.i.l.bf16 %v1318_v51  ;;  %v1320_v8 = vunpack.i.h.bf16 %v1318_v51 }
 0x17f   : > { %v646_v14 = vsel %vm426_vm1, %v550_v7, %v1319_v6  ;;  %v645_v16 = vsel %vm426_vm1, %v549_v11, %v1320_v8 }
 0x184   : > { %v1323_v5 = vpop.permute.xlu2 %1322 }
 0x185   : > { %v1324_v10 = vunpack.i.l.bf16 %v1323_v5  ;;  %v1325_v15 = vunpack.i.h.bf16 %v1323_v5 }
 0x187   : > { %v644_v18 = vsel %vm426_vm1, %v548_v13, %v1324_v10  ;;  %v643_v23 = vsel %vm426_vm1, %v547_v19, %v1325_v15 }
 0x193   : > { %v1308_v45 = vpop.permute.xlu1 %1307 }
 0x194   : > { %v1309_v56 = vunpack.i.l.bf16 %v1308_v45  ;;  %v1310_v59 = vunpack.i.h.bf16 %v1308_v45 }
 0x196   : > { %v650_v0 = vsel %vm426_vm1, %v554_v58, %v1309_v56  ;;  %v649_v2 = vsel %vm426_vm1, %v553_v62, %v1310_v59 }
 0x199   : > { %v1298_v41 = vpop.permute.xlu0 %1297 }
 0x19a   : > { %v1300_v43 = vunpack.i.h.bf16 %v1298_v41  ;;  %v1299_v44 = vunpack.i.l.bf16 %v1298_v41 }
 0x19b   : > { %v1313_v55 = vpop.permute.xlu1 %1312 }
 0x19c   : > { %v654_v47 = vsel %vm426_vm1, %v558_v42, %v1299_v44  ;;  %v653_v48 = vsel %vm426_vm1, %v557_v46, %v1300_v43  ;;  %v1314_v61 = vunpack.i.l.bf16 %v1313_v55  ;;  %v1315_v1 = vunpack.i.h.bf16 %v1313_v55 }
 0x19d   : > { %659 = vmatpush.msra.mxu0 %v654_v47 }
 0x19e   : > { %v648_v3 = vsel %vm426_vm1, %v552_v63, %v1314_v61  ;;  %v647_v9 = vsel %vm426_vm1, %v551_v4, %v1315_v1 }
 0x19f   : > { %660 = vmatpush.msra.mxu0 %v653_v48 }
 0x1a1   : > { %v1303_v49 = vpop.permute.xlu0 %1302 }
 0x1a2   : > { %v1305_v52 = vunpack.i.h.bf16 %v1303_v49  ;;  %v1304_v53 = vunpack.i.l.bf16 %v1303_v49 }
 0x1a3   : > { %v1333_v20 = vpop.permute.xlu1 %1332 }
 0x1a4   : > { %v652_v57 = vsel %vm426_vm1, %v556_v50, %v1304_v53  ;;  %v651_v60 = vsel %vm426_vm1, %v555_v54, %v1305_v52  ;;  %v1334_v24 = vunpack.i.l.bf16 %v1333_v20  ;;  %v1335_v28 = vunpack.i.h.bf16 %v1333_v20 }
 0x1a5   : > { %661 = vmatpush.msra.mxu0 %v652_v57 }
 0x1a6   : > { %v640_v30 = vsel %vm426_vm1, %v544_v27, %v1334_v24  ;;  %v639_v33 = vsel %vm426_vm1, %v543_v31, %v1335_v28 }
 0x1a7   : > { %662 = vmatpush.msra.mxu0 %v651_v60 }
 0x1a9   : > { %663 = vmatpush.msra.mxu0 %v650_v0  ;;  %v1328_v12 = vpop.permute.xlu0 %1327 }
 0x1aa   : > { %v1329_v17 = vunpack.i.l.bf16 %v1328_v12  ;;  %v1330_v22 = vunpack.i.h.bf16 %v1328_v12 }
 0x1ab   : > { %664 = vmatpush.msra.mxu0 %v649_v2 }
 0x1ac   : > { %v642_v25 = vsel %vm426_vm1, %v546_v21, %v1329_v17  ;;  %v641_v29 = vsel %vm426_vm1, %v545_v26, %v1330_v22 }
 0x1ad   : > { %665 = vmatpush.msra.mxu0 %v648_v3 }
 0x1af   : > { %666 = vmatpush.msra.mxu0 %v647_v9 }
 0x1b1   : > { %667 = vmatpush.msra.mxu0 %v646_v14 }
 0x1b3   : > { %668 = vmatpush.msra.mxu0 %v645_v16 }
 0x1b5   : > { %669 = vmatpush.msra.mxu0 %v644_v18 }
 0x1b7   : > { %670 = vmatpush.msra.mxu0 %v643_v23 }
 0x1b9   : > { %671 = vmatpush.msra.mxu0 %v642_v25 }
 0x1bb   : > { %672 = vmatpush.msra.mxu0 %v641_v29 }
 0x1bd   : > { %673 = vmatpush.msra.mxu0 %v640_v30 }
 0x1bf   : > { %674 = vmatpush.msra.mxu0 %v639_v33 }
 0x1c0   : > { %675 = vmatmul.f32.vlgmr.msra.gmra.mxu0 %v655_v32 }
 0x1c8   : > { %678 = vmatmul.f32.gmra.mxu0 %v656_v34 }
 0x1d0   : > { %681 = vmatmul.f32.gmra.mxu0 %v657_v35 }
 0x1d8   : > { %684 = vmatmul.f32.gmra.mxu0 %v658_v36 }
 0x23d   : > { %v676_v37 = vpop.f32.mrf.mxu0 }
 0x23e   : > { %v688_v46 = vmul.f32 0.0009765625, %v676_v37 }
 0x240   : > { %v692_v48 = vmul.f32 %v688_v46, %v688_v46 }
 0x245   : > { %v679_v38 = vpop.f32.mrf.mxu0 }
 0x246   : > { %v689_v39 = vmul.f32 0.0009765625, %v679_v38 }
 0x248   : > { %v693_v40 = vmul.f32 %v689_v39, %v689_v39 }
 0x24a   : > { %702 = vrot.lane.b32.xlu1 %v693_v40, %s1411_s15 }
 0x24d   : > { %v682_v41 = vpop.f32.mrf.mxu0 }
 0x24e   : > { %v690_v42 = vmul.f32 0.0009765625, %v682_v41 }
 0x250   : > { %v694_v43 = vmul.f32 %v690_v42, %v690_v42 }
 0x252   : > { %768 = vrot.lane.b32.xlu1 %v690_v42, %s1411_s15  ;;  %704 = vrot.lane.b32.xlu0 %v694_v43, %s1411_s15 }
 0x255   : > { %v685_v44 = vpop.f32.mrf.mxu0 }
 0x256   : > { %v691_v45 = vmul.f32 0.0009765625, %v685_v44  ;;  %v800_v44 = vld [vmem:[%s1939_s2] sm:$0xff] }
 0x258   : > { %v695_v47 = vmul.f32 %v691_v45, %v691_v45 }
 0x25a   : > { %764 = vrot.lane.b32.xlu1 %v688_v46, %s1411_s15  ;;  %770 = vrot.lane.b32.xlu0 %v691_v45, %s1411_s15 }
 0x25b   : > { %706 = vrot.lane.b32.xlu2 %v695_v47, %s1411_s15  ;;  %v812_v47 = vld [vmem:[%s1939_s2 + $0x60] sm:$0xff] }
 0x262   : > { %766 = vrot.lane.b32.xlu0 %v689_v39, %s1411_s15 }
 0x263   : > { %700 = vrot.lane.b32.xlu2 %v692_v48, %s1411_s15  ;;  %v801_v48 = vld [vmem:[%s1939_s2 + $0x8] sm:$0xff] }
 0x2b5   : > { %v707_v49 = vpop.permute.xlu2 %706 }
 0x2b6   : > { %v715_v50 = vsub.f32 %v691_v45, %v707_v49  ;;  %v807_v49 = vld [vmem:[%s1939_s2 + $0x38] sm:$0xff] }
 0x2b8   : > { %v719_v51 = vadd.f32 1e-05, %v715_v50  ;;  %v813_v50 = vld [vmem:[%s1939_s2 + $0x68] sm:$0xff] }
 0x2ba   : > { %1346 = vrsqrt.f32 %v719_v51  ;;  %vm756_vm4 = vweird.f32 %v719_v51 }
 0x2bc   : > { %v703_v52 = vpop.permute.xlu1 %702 }
 0x2bd   : > { %v713_v53 = vsub.f32 %v689_v39, %v703_v52  ;;  %v701_v54 = vpop.permute.xlu2 %700  ;;  %v808_v52 = vld [vmem:[%s1939_s2 + $0x40] sm:$0xff] }
 0x2be   : > { %v712_v55 = vsub.f32 %v688_v46, %v701_v54  ;;  %v806_v46 = vld [vmem:[%s1939_s2 + $0x30] sm:$0xff]  ;;  %v803_v54 = vld [vmem:[%s1939_s2 + $0x18] sm:$0xff] }
 0x2bf   : > { %v717_v56 = vadd.f32 1e-05, %v713_v53  ;;  %v814_v53 = vld [vmem:[%s1939_s2 + $0x70] sm:$0xff] }
 0x2c0   : > { %v716_v57 = vadd.f32 1e-05, %v712_v55  ;;  %v1347_v58 = vpop.eup %1346  ;;  %v809_v55 = vld [vmem:[%s1939_s2 + $0x48] sm:$0xff] }
 0x2c1   : > { %1348 = vrsqrt.f32 %v717_v56  ;;  %v751_v61 = vmul.f32 %v1347_v58, %v719_v51  ;;  %vm757_vm2 = vweird.f32 %v1347_v58  ;;  %vm736_vm10 = vweird.f32 %v717_v56  ;;  %v802_v51 = vld [vmem:[%s1939_s2 + $0x10] sm:$0xff] }
 0x2c2   : > { %1350 = vrsqrt.f32 %v716_v57  ;;  %vm758_vm6 = vmor %vm756_vm4, %vm757_vm2  ;;  %vm726_vm11 = vweird.f32 %v716_v57 }
 0x2c3   : > { %v752_v1 = vmul.f32 %v1347_v58, %v751_v61 }
 0x2c4   : > { %v705_v59 = vpop.permute.xlu0 %704  ;;  %v769_v28 = vpop.permute.xlu1 %768 }
 0x2c5   : > { %v714_v60 = vsub.f32 %v690_v42, %v705_v59  ;;  %v753_v4 = vmul.f32 0.5, %v752_v1  ;;  %v805_v59 = vld [vmem:[%s1939_s2 + $0x28] sm:$0xff] }
 0x2c7   : > { %v718_v62 = vadd.f32 1e-05, %v714_v60  ;;  %v1349_v63 = vpop.eup %1348  ;;  %v754_v10 = vsub.f32 1.5, %v753_v4  ;;  %v811_v60 = vld [vmem:[%s1939_s2 + $0x58] sm:$0xff] }
 0x2c8   : > { %v1351_v0 = vpop.eup %1350  ;;  %v731_v2 = vmul.f32 %v1349_v63, %v717_v56  ;;  %vm737_vm8 = vweird.f32 %v1349_v63  ;;  %v815_v56 = vld [vmem:[%s1939_s2 + $0x78] sm:$0xff] }
 0x2c9   : > { %1352 = vrsqrt.f32 %v718_v62  ;;  %v721_v3 = vmul.f32 %v1351_v0, %v716_v57  ;;  %v755_v15 = vmul.f32 %v1347_v58, %v754_v10  ;;  %vm746_vm5 = vweird.f32 %v718_v62  ;;  %vm738_vm12 = vmor %vm736_vm10, %vm737_vm8  ;;  %v804_v57 = vld [vmem:[%s1939_s2 + $0x20] sm:$0xff] }
 0x2ca   : > { %v732_v6 = vmul.f32 %v1349_v63, %v731_v2  ;;  %vm727_vm9 = vweird.f32 %v1351_v0 }
 0x2cb   : > { %v722_v7 = vmul.f32 %v1351_v0, %v721_v3  ;;  %v759_v20 = vsel %vm758_vm6, %v1347_v58, %v755_v15  ;;  %vm728_vm13 = vmor %vm726_vm11, %vm727_vm9  ;;  %v810_v58 = vld [vmem:[%s1939_s2 + $0x50] sm:$0xff] }
 0x2cc   : > { %v733_v11 = vmul.f32 0.5, %v732_v6  ;;  %v771_v27 = vpop.permute.xlu0 %770  ;;  %v765_v41 = vpop.permute.xlu1 %764 }
 0x2cd   : > { %v723_v12 = vmul.f32 0.5, %v722_v7  ;;  %v779_v30 = vmul.f32 %v771_v27, %v759_v20 }
 0x2ce   : > { %v734_v18 = vsub.f32 1.5, %v733_v11 }
 0x2cf   : > { %v1353_v5 = vpop.eup %1352  ;;  %v724_v16 = vsub.f32 1.5, %v723_v12 }
 0x2d0   : > { %v741_v8 = vmul.f32 %v1353_v5, %v718_v62  ;;  %vm747_vm3 = vweird.f32 %v1353_v5  ;;  %v735_v23 = vmul.f32 %v1349_v63, %v734_v18 }
 0x2d1   : > { %vm748_vm7 = vmor %vm746_vm5, %vm747_vm3  ;;  %v725_v22 = vmul.f32 %v1351_v0, %v724_v16  ;;  %v930_v16 = vld [vmem:[%s1940_s3] sm:$0xff] }
 0x2d2   : > { %v742_v9 = vmul.f32 %v1353_v5, %v741_v8  ;;  %v739_v25 = vsel %vm738_vm12, %v1349_v63, %v735_v23  ;;  %v931_v23 = vld [vmem:[%s1940_s3 + $0x8] sm:$0xff] }
 0x2d3   : > { %v729_v24 = vsel %vm728_vm13, %v1351_v0, %v725_v22  ;;  %v936_v22 = vld [vmem:[%s1940_s3 + $0x30] sm:$0xff] }
 0x2d4   : > { %v743_v13 = vmul.f32 0.5, %v742_v9  ;;  %v1341_v26 = vpack.i.bf16 %v729_v24, %v739_v25  ;;  %v767_v36 = vpop.permute.xlu0 %766  ;;  %v776_v42 = vmul.f32 %v765_v41, %v729_v24 }
 0x2d5   : > { %v777_v38 = vmul.f32 %v767_v36, %v739_v25 }
 0x2d6   : > { %v744_v14 = vsub.f32 1.5, %v743_v13  ;;  %v932_v13 = vld [vmem:[%s1940_s3 + $0x10] sm:$0xff] }
 0x2d8   : > { %v745_v17 = vmul.f32 %v1353_v5, %v744_v14 }
 0x2da   : > { %v749_v19 = vsel %vm748_vm7, %v1353_v5, %v745_v17  ;;  %v938_v17 = vld [vmem:[%s1940_s3 + $0x40] sm:$0xff] }
 0x2db   : > { %v1336_v21 = vpack.i.bf16 %v749_v19, %v759_v20  ;;  %v778_v34 = vmul.f32 %v769_v28, %v749_v19  ;;  %v942_v28 = vld [vmem:[%s1940_s3 + $0x60] sm:$0xff] }
 0x2dd   : > { %1337 = vrot.lane.b32.xlu2 %v1336_v21, %s1412_s9 }
 0x2e5   : > { %1342 = vrot.lane.b32.xlu2 %v1341_v26, %s1412_s9 }
 0x337   : > { %v1338_v29 = vpop.permute.xlu2 %1337 }
 0x338   : > { %v1340_v31 = vunpack.i.h.bf16 %v1338_v29  ;;  %v1339_v32 = vunpack.i.l.bf16 %v1338_v29  ;;  %v937_v29 = vld [vmem:[%s1940_s3 + $0x38] sm:$0xff] }
 0x33a   : > { %v799_v33 = vsel %vm426_vm1, %v1339_v32, %v779_v30  ;;  %v798_v35 = vsel %vm426_vm1, %v1340_v31, %v778_v34  ;;  %v935_v30 = vld [vmem:[%s1940_s3 + $0x28] sm:$0xff] }
 0x33b   : > { %877 = vmatpush.msra.mxu1 %v799_v33  ;;  %1229 = vmatpush.msra.mxu2 %v799_v33 }
 0x33c   : > { %1230 = vmatpush.msra.mxu3 %v799_v33 }
 0x33d   : > { %878 = vmatpush.msra.mxu1 %v798_v35  ;;  %1231 = vmatpush.msra.mxu2 %v798_v35 }
 0x33e   : > { %1232 = vmatpush.msra.mxu3 %v798_v35 }
 0x33f   : > { %v1343_v37 = vpop.permute.xlu2 %1342 }
 0x340   : > { %v1345_v39 = vunpack.i.h.bf16 %v1343_v37  ;;  %v1344_v40 = vunpack.i.l.bf16 %v1343_v37  ;;  %v933_v37 = vld [vmem:[%s1940_s3 + $0x18] sm:$0xff] }
 0x342   : > { %v797_v43 = vsel %vm426_vm1, %v1344_v40, %v777_v38  ;;  %v796_v45 = vsel %vm426_vm1, %v1345_v39, %v776_v42  ;;  %v941_v38 = vld [vmem:[%s1940_s3 + $0x58] sm:$0xff] }
 0x343   : > { %879 = vmatpush.msra.mxu1 %v797_v43  ;;  %1233 = vmatpush.msra.mxu2 %v797_v43 }
 0x344   : > { %1234 = vmatpush.msra.mxu3 %v797_v43 }
 0x345   : > { %880 = vmatpush.msra.mxu1 %v796_v45  ;;  %1235 = vmatpush.msra.mxu2 %v796_v45 }
 0x346   : > { %1236 = vmatpush.msra.mxu3 %v796_v45  ;;  %1210 = vmatmul.msk.f32.vlgmr.msra.gmra.mxu1 %vm816_vm14, %v800_v44  ;;  %v939_v44 = vld [vmem:[%s1940_s3 + $0x48] sm:$0xff]  ;;  %v934_v45 = vld [vmem:[%s1940_s3 + $0x20] sm:$0xff] }
 0x347   : > { %1216 = vmatmul.msk.f32.vlgmr.msra.gmra.mxu2 %vm816_vm14, %v806_v46  ;;  %1222 = vmatmul.msk.f32.vlgmr.msra.gmra.mxu3 %vm816_vm14, %v812_v47  ;;  %v944_v46 = vld [vmem:[%s1940_s3 + $0x70] sm:$0xff] }
 0x34e   : > { %1211 = vmatmul.msk.f32.gmra.mxu1 %vm816_vm14, %v801_v48 }
 0x34f   : > { %1217 = vmatmul.msk.f32.gmra.mxu2 %vm816_vm14, %v807_v49  ;;  %1223 = vmatmul.msk.f32.gmra.mxu3 %vm816_vm14, %v813_v50 }
 0x356   : > { %1212 = vmatmul.msk.f32.gmra.mxu1 %vm816_vm14, %v802_v51 }
 0x357   : > { %1218 = vmatmul.msk.f32.gmra.mxu2 %vm816_vm14, %v808_v52  ;;  %1224 = vmatmul.msk.f32.gmra.mxu3 %vm816_vm14, %v814_v53  ;;  %v945_v53 = vld [vmem:[%s1940_s3 + $0x78] sm:$0xff] }
 0x35e   : > { %1213 = vmatmul.msk.f32.gmra.mxu1 %vm816_vm14, %v803_v54  ;;  %v940_v54 = vld [vmem:[%s1940_s3 + $0x50] sm:$0xff] }
 0x35f   : > { %1219 = vmatmul.msk.f32.gmra.mxu2 %vm816_vm14, %v809_v55  ;;  %1225 = vmatmul.msk.f32.gmra.mxu3 %vm816_vm14, %v815_v56 }
 0x366   : > { %1214 = vmatmul.msk.f32.gmra.mxu1 %vm816_vm14, %v804_v57 }
 0x367   : > { %1220 = vmatmul.msk.f32.gmra.mxu2 %vm816_vm14, %v810_v58 }
 0x36e   : > { %1215 = vmatmul.msk.f32.gmra.mxu1 %vm816_vm14, %v805_v59  ;;  %v943_v59 = vld [vmem:[%s1940_s3 + $0x68] sm:$0xff] }
 0x36f   : > { %1221 = vmatmul.msk.f32.gmra.mxu2 %vm816_vm14, %v811_v60 }
 0x3c3   : > { %v1724_v61 = vpop.f32.mrf.mxu1 }
 0x3c4   : > { %962 = vrot.lane.b32.xlu0 %v1724_v61, %s1412_s9 }
 0x3ca   : > { %v1728_v62 = vpop.f32.mrf.mxu2  ;;  %v1732_v0 = vpop.f32.mrf.mxu3 }
 0x3cb   : > { %v1730_v63 = vpop.f32.mrf.mxu1 }
 0x3cc   : > { %974 = vrot.lane.b32.xlu0 %v1728_v62, %s1412_s9  ;;  %964 = vrot.lane.b32.xlu1 %v1730_v63, %s1412_s9 }
 0x3d2   : > { %v1738_v1 = vpop.f32.mrf.mxu2  ;;  %v1748_v3 = vpop.f32.mrf.mxu3 }
 0x3d3   : > { %v1740_v2 = vpop.f32.mrf.mxu1 }
 0x3d4   : > { %986 = vrot.lane.b32.xlu0 %v1732_v0, %s1412_s9  ;;  %976 = vrot.lane.b32.xlu1 %v1738_v1, %s1412_s9 }
 0x3d5   : > { %966 = vrot.lane.b32.xlu2 %v1740_v2, %s1412_s9 }
 0x3da   : > { %v1750_v4 = vpop.f32.mrf.mxu2  ;;  %v1760_v6 = vpop.f32.mrf.mxu3 }
 0x3db   : > { %v1752_v5 = vpop.f32.mrf.mxu1 }
 0x3dc   : > { %988 = vrot.lane.b32.xlu1 %v1748_v3, %s1412_s9  ;;  %968 = vrot.lane.b32.xlu0 %v1752_v5, %s1412_s9 }
 0x3dd   : > { %978 = vrot.lane.b32.xlu2 %v1750_v4, %s1412_s9 }
 0x3e2   : > { %v1762_v7 = vpop.f32.mrf.mxu2  ;;  %v1770_v9 = vpop.f32.mrf.mxu3 }
 0x3e3   : > { %v1764_v8 = vpop.f32.mrf.mxu1 }
 0x3e4   : > { %980 = vrot.lane.b32.xlu0 %v1762_v7, %s1412_s9  ;;  %970 = vrot.lane.b32.xlu1 %v1764_v8, %s1412_s9 }
 0x3ea   : > { %v1772_v10 = vpop.f32.mrf.mxu2 }
 0x3eb   : > { %v1774_v11 = vpop.f32.mrf.mxu1 }
 0x3ec   : > { %992 = vrot.lane.b32.xlu0 %v1770_v9, %s1412_s9  ;;  %982 = vrot.lane.b32.xlu1 %v1772_v10, %s1412_s9 }
 0x3ed   : > { %972 = vrot.lane.b32.xlu2 %v1774_v11, %s1412_s9 }
 0x3f2   : > { %v1782_v12 = vpop.f32.mrf.mxu2 }
 0x3f5   : > { %984 = vrot.lane.b32.xlu2 %v1782_v12, %s1412_s9 }
 0x3fd   : > { %990 = vrot.lane.b32.xlu2 %v1760_v6, %s1412_s9 }
 0x42f   : > { %v967_v14 = vpop.permute.xlu2 %966 }
 0x430   : > { %v1012_v15 = vsub.f32 %v932_v13, %v967_v14 }
 0x432   : > { %1046 = vrot.lane.b32.xlu0 %v1012_v15, %s1411_s15 }
 0x436   : > { %v963_v18 = vpop.permute.xlu0 %962 }
 0x437   : > { %v1010_v19 = vsub.f32 %v930_v16, %v963_v18  ;;  %v979_v20 = vpop.permute.xlu2 %978 }
 0x438   : > { %v1018_v21 = vsub.f32 %v938_v17, %v979_v20 }
 0x439   : > { %1042 = vrot.lane.b32.xlu1 %v1010_v19, %s1411_s15 }
 0x43a   : > { %1058 = vrot.lane.b32.xlu0 %v1018_v21, %s1411_s15 }
 0x43e   : > { %v975_v24 = vpop.permute.xlu0 %974  ;;  %v965_v25 = vpop.permute.xlu1 %964 }
 0x43f   : > { %v1016_v26 = vsub.f32 %v936_v22, %v975_v24  ;;  %v1011_v27 = vsub.f32 %v931_v23, %v965_v25 }
 0x441   : > { %1054 = vrot.lane.b32.xlu1 %v1016_v26, %s1411_s15  ;;  %1044 = vrot.lane.b32.xlu2 %v1011_v27, %s1411_s15 }
 0x446   : > { %v987_v31 = vpop.permute.xlu0 %986  ;;  %v977_v32 = vpop.permute.xlu1 %976 }
 0x447   : > { %v1022_v33 = vsub.f32 %v942_v28, %v987_v31  ;;  %v1017_v34 = vsub.f32 %v937_v29, %v977_v32  ;;  %v973_v35 = vpop.permute.xlu2 %972 }
 0x448   : > { %v1015_v36 = vsub.f32 %v935_v30, %v973_v35 }
 0x449   : > { %1066 = vrot.lane.b32.xlu1 %v1022_v33, %s1411_s15  ;;  %1056 = vrot.lane.b32.xlu2 %v1017_v34, %s1411_s15 }
 0x44a   : > { %1052 = vrot.lane.b32.xlu0 %v1015_v36, %s1411_s15 }
 0x44e   : > { %v989_v39 = vpop.permute.xlu1 %988  ;;  %v969_v40 = vpop.permute.xlu0 %968 }
 0x44f   : > { %v1013_v41 = vsub.f32 %v933_v37, %v969_v40  ;;  %v985_v42 = vpop.permute.xlu2 %984  ;;  %v1023_v60 = vsub.f32 %v943_v59, %v989_v39 }
 0x450   : > { %v1021_v43 = vsub.f32 %v941_v38, %v985_v42 }
 0x451   : > { %1048 = vrot.lane.b32.xlu1 %v1013_v41, %s1411_s15 }
 0x452   : > { %1064 = vrot.lane.b32.xlu0 %v1021_v43, %s1411_s15 }
 0x456   : > { %v981_v47 = vpop.permute.xlu0 %980  ;;  %v971_v48 = vpop.permute.xlu1 %970 }
 0x457   : > { %v1019_v49 = vsub.f32 %v939_v44, %v981_v47  ;;  %v1014_v50 = vsub.f32 %v934_v45, %v971_v48  ;;  %v991_v51 = vpop.permute.xlu2 %990 }
 0x458   : > { %v1024_v52 = vsub.f32 %v944_v46, %v991_v51 }
 0x459   : > { %1060 = vrot.lane.b32.xlu1 %v1019_v49, %s1411_s15  ;;  %1050 = vrot.lane.b32.xlu2 %v1014_v50, %s1411_s15 }
 0x45a   : > { %1070 = vrot.lane.b32.xlu0 %v1024_v52, %s1411_s15 }
 0x45e   : > { %v993_v55 = vpop.permute.xlu0 %992  ;;  %v983_v56 = vpop.permute.xlu1 %982 }
 0x45f   : > { %v1025_v57 = vsub.f32 %v945_v53, %v993_v55  ;;  %v1020_v58 = vsub.f32 %v940_v54, %v983_v56 }
 0x461   : > { %1072 = vrot.lane.b32.xlu1 %v1025_v57, %s1411_s15  ;;  %1062 = vrot.lane.b32.xlu2 %v1020_v58, %s1411_s15 }
 0x469   : > { %1068 = vrot.lane.b32.xlu2 %v1023_v60, %s1411_s15 }
 0x49b   : > { %v1045_v13 = vpop.permute.xlu2 %1044 }
 0x49c   : > { %v1091_v14 = vsel %vm426_vm1, %v1730_v63, %v1045_v13 }
 0x49d   : > { %1108 = vst.msk [vmem:[%s1524_s26 + $0x8] sm:$0xff] %vm1106_vm15, %v1091_v14 }
 0x4a3   : > { %v1057_v15 = vpop.permute.xlu2 %1056 }
 0x4a4   : > { %v1047_v16 = vpop.permute.xlu0 %1046  ;;  %v1097_v17 = vsel %vm426_vm1, %v1738_v1, %v1057_v15 }
 0x4a5   : > { %v1092_v18 = vsel %vm426_vm1, %v1740_v2, %v1047_v16  ;;  %1114 = vst.msk [vmem:[%s1524_s26 + $0x38] sm:$0xff] %vm1106_vm15, %v1097_v17 }
 0x4a6   : > { %1109 = vst.msk [vmem:[%s1524_s26 + $0x10] sm:$0xff] %vm1106_vm15, %v1092_v18 }
 0x4ab   : > { %v1043_v19 = vpop.permute.xlu1 %1042 }
 0x4ac   : > { %v1059_v20 = vpop.permute.xlu0 %1058  ;;  %v1090_v63 = vsel %vm426_vm1, %v1724_v61, %v1043_v19 }
 0x4ad   : > { %v1098_v21 = vsel %vm426_vm1, %v1750_v4, %v1059_v20  ;;  %1107 = vst.msk [vmem:[%s1524_s26] sm:$0xff] %vm1106_vm15, %v1090_v63 }
 0x4ae   : > { %1115 = vst.msk [vmem:[%s1524_s26 + $0x40] sm:$0xff] %vm1106_vm15, %v1098_v21 }
 0x4b3   : > { %v1055_v1 = vpop.permute.xlu1 %1054  ;;  %v1051_v2 = vpop.permute.xlu2 %1050 }
 0x4b4   : > { %v1096_v22 = vsel %vm426_vm1, %v1728_v62, %v1055_v1  ;;  %v1094_v23 = vsel %vm426_vm1, %v1764_v8, %v1051_v2 }
 0x4b5   : > { %1113 = vst.msk [vmem:[%s1524_s26 + $0x30] sm:$0xff] %vm1106_vm15, %v1096_v22 }
 0x4b6   : > { %1111 = vst.msk [vmem:[%s1524_s26 + $0x20] sm:$0xff] %vm1106_vm15, %v1094_v23 }
 0x4bb   : > { %v1067_v61 = vpop.permute.xlu1 %1066  ;;  %v1063_v4 = vpop.permute.xlu2 %1062 }
 0x4bc   : > { %v1102_v24 = vsel %vm426_vm1, %v1732_v0, %v1067_v61  ;;  %v1053_v25 = vpop.permute.xlu0 %1052  ;;  %v1100_v26 = vsel %vm426_vm1, %v1772_v10, %v1063_v4 }
 0x4bd   : > { %1119 = vst.msk [vmem:[%s1524_s26 + $0x60] sm:$0xff] %vm1106_vm15, %v1102_v24  ;;  %v1095_v62 = vsel %vm426_vm1, %v1774_v11, %v1053_v25 }
 0x4be   : > { %1112 = vst.msk [vmem:[%s1524_s26 + $0x28] sm:$0xff] %vm1106_vm15, %v1095_v62 }
 0x4bf   : > { %1117 = vst.msk [vmem:[%s1524_s26 + $0x50] sm:$0xff] %vm1106_vm15, %v1100_v26 }
 0x4c3   : > { %v1049_v8 = vpop.permute.xlu1 %1048  ;;  %v1069_v27 = vpop.permute.xlu2 %1068 }
 0x4c4   : > { %v1093_v0 = vsel %vm426_vm1, %v1752_v5, %v1049_v8  ;;  %v1065_v28 = vpop.permute.xlu0 %1064  ;;  %v1103_v10 = vsel %vm426_vm1, %v1748_v3, %v1069_v27 }
 0x4c5   : > { %1110 = vst.msk [vmem:[%s1524_s26 + $0x18] sm:$0xff] %vm1106_vm15, %v1093_v0  ;;  %v1101_v11 = vsel %vm426_vm1, %v1782_v12, %v1065_v28 }
 0x4c6   : > { %1118 = vst.msk [vmem:[%s1524_s26 + $0x58] sm:$0xff] %vm1106_vm15, %v1101_v11 }
 0x4c7   : > { %1120 = vst.msk [vmem:[%s1524_s26 + $0x68] sm:$0xff] %vm1106_vm15, %v1103_v10 }
 0x4cb   : > { %v1061_v29 = vpop.permute.xlu1 %1060 }
 0x4cc   : > { %v1099_v30 = vsel %vm426_vm1, %v1762_v7, %v1061_v29  ;;  %v1071_v31 = vpop.permute.xlu0 %1070 }
 0x4cd   : > { %1116 = vst.msk [vmem:[%s1524_s26 + $0x48] sm:$0xff] %vm1106_vm15, %v1099_v30  ;;  %v1104_v5 = vsel %vm426_vm1, %v1760_v6, %v1071_v31 }
 0x4ce   : > { %1121 = vst.msk [vmem:[%s1524_s26 + $0x70] sm:$0xff] %vm1106_vm15, %v1104_v5 }
 0x4d3   : > { %v1073_v3 = vpop.permute.xlu1 %1072 }
 0x4d4   : > { %v1105_v12 = vsel %vm426_vm1, %v1770_v9, %v1073_v3 }
 0x4d5   : > { %1122 = vst.msk [vmem:[%s1524_s26 + $0x78] sm:$0xff] %vm1106_vm15, %v1105_v12 }
 0x4d6 PF: > { %s14_s21 = sadd.s32 1, %s1408_s21   ;;  %s1942_s15 = smov %s1388_s16 }
 0x4d7   : > { %p11_p13 = scmp.ge.s32.totalorder %s14_s21, 6   ;;  %s1943_s16 = smov %s1489_s28 }
 0x4d8   : > { %s1944_s17 = smov %s1400_s19  ;;  %s1945_s18 = smov %s1404_s20 }
 0x4d9   : > { %s1946_s19 = smov %s1949_s22  ;;  %s1947_s20 = smov %s1953_s23 }
 0x4da   :  { %13 = sbr.rel (!%p11_p13) target bundleno = 4 (0x4), region = 117 }

// kernel: _lambda_.4
= control target key start
LH: loop header
LB: loop body
LE: loop exit
PB: predicated region body
PF: predicated region fallthrough
CT: control target
= control target key end

     0   :  { %s1402_s15 = smov 0   ;;  %s1404_s16 = smov 0   ;;  %s1866_s0 = inlined_call_operand.vmem [shape: f32[2,128,256], index: 0, kind: input, shape index: {}]   ;;  %s1867_s1 = inlined_call_operand.vmem [shape: f32[2,128,2], index: 1, kind: input, shape index: {}]   ;;  %s1868_s2 = inlined_call_operand.vmem [shape: bf16[128,384], index: 2, kind: input, shape index: {}]   ;;  %s1869_s3 = inlined_call_operand.vmem [shape: f32[1,384], index: 3, kind: input, shape index: {}]   ;;  %s1870_s4 = inlined_call_operand.vmem [shape: bf16[2,256,384], index: 4, kind: output, shape index: {}]  }
   0x1   :  { %s1406_s17 = smov 0   ;;  %s1408_s18 = smov 0  }
   0x2   :  { %s1410_s19 = smov 0   ;;  %s1412_s20 = smov 0  }
   0x3   :  { %s1414_s21 = smov 0  }
   0x4 LB: > { %s23_s22 = sadd.s32 1, %s1365_s19  ;;  %s26_s23 = sadd.s32 1, %s1369_s20  ;;  %s1373_s21 = sphi %s1414_s21, %s14_s21   ;;  %s1369_s20 = sphi %s1412_s20, %s1876_s20   ;;  %s1365_s19 = sphi %s1410_s19, %s1875_s19   ;;  %s1361_s18 = sphi %s1408_s18, %s1874_s18   ;;  %s1357_s17 = sphi %s1406_s17, %s1873_s17   ;;  %s1353_s16 = sphi %s1404_s16, %s1872_s16   ;;  %s1349_s15 = sphi %s1402_s15, %s1871_s15  }
   0x5   : > { %p24_p0 = scmp.ge.s32.totalorder %s23_s22, 2  ;;  %p42_p1 = scmp.ne.s32.totalorder %s1353_s16, %s1349_s15 }
   0x6   : > { %p43_p2 = scmp.eq.s32.totalorder %s1373_s21, 0  ;;  %s35_s27 = sadd.s32 1, %s1353_s16 }
   0x7   : > { %s1878_s22 = smov (%p24_p0, %s23_s22), 0  ;;  %s1880_s23 = smov (!%p24_p0, %s26_s23), %s1369_s20 }
   0x8   : > { %p44_p3 = por %p43_p2, %p42_p1  ;;  %p28_p4 = scmp.ge.s32.totalorder %s1880_s23, 2 }
   0x9   : > { %s31_s24 = ssub.s32 %s1365_s19, %s1878_s22  ;;  %p1082_p6 = scmp.ge.s32.totalorder %s1373_s21, 4 }
   0xa   : > { %s1882_s23 = smov (%p28_p4, %s1880_s23), 0 }
   0xb   : > { %s30_s25 = ssub.s32 %s1369_s20, %s1882_s23  ;;  %170 = sbr.rel (%p1082_p6) target bundleno = 38 (0x26), region = 24 }
   0xc   : > { %s32_s26 = sor.u32 %s31_s24, %s30_s25 }
   0xd   : > { %p33_p5 = scmp.eq.s32.totalorder %s32_s26, 0 }
   0xf   : > { %s1453_s28 = scalar_select %p33_p5, %s1353_s16, %s35_s27  }
  0x10   : > { %173 = sbr.rel (!%p44_p3) target bundleno = 38 (0x26), region = 28  ;;  %s175_s29 = sand.u32 (%p44_p3), 1, %s1353_s16  }
  0x11   : > { %s1084_s30 = sshll.u32 (%p44_p3), %s1369_s20, 5  ;;  %s1083_s5 = sshll.u32 (%p44_p3), %s175_s29, 7 }
  0x12   : > { %s179_s6 = sadd.s32 (%p44_p3), %s1365_s19, %s1084_s30  ;;  %s177_s11 = scalar_lea.vmem (%p44_p3), [#allocation2], %s1083_s5 }
  0x13   : > { %s1085_s7 = sshll.u32 (%p44_p3), %s179_s6, 3 }
  0x14   : > { %s1462_s10 = scalar_lea.vmem (%p44_p3), %s1866_s0, %s1085_s7 }
  0x15   : > { %v240_v0 = vld [vmem:[%s1462_s10] sm:$0xff]  ;;  %v242_v1 = vld [vmem:[%s1462_s10 + $0x10] sm:$0xff] }
  0x16   : > { %v244_v2 = vld [vmem:[%s1462_s10 + $0x20] sm:$0xff]  ;;  %241 = vst [vmem:[%s177_s11] sm:$0xff] %v240_v0  ;;  %v246_v3 = vld [vmem:[%s1462_s10 + $0x30] sm:$0xff] }
  0x17   : > { %243 = vst [vmem:[%s177_s11 + $0x8] sm:$0xff] %v242_v1  ;;  %v248_v4 = vld [vmem:[%s1462_s10 + $0x40] sm:$0xff]  ;;  %v250_v5 = vld [vmem:[%s1462_s10 + $0x50] sm:$0xff] }
  0x18   : > { %245 = vst [vmem:[%s177_s11 + $0x10] sm:$0xff] %v244_v2  ;;  %v252_v6 = vld [vmem:[%s1462_s10 + $0x60] sm:$0xff]  ;;  %v254_v7 = vld [vmem:[%s1462_s10 + $0x70] sm:$0xff] }
  0x19   : > { %247 = vst [vmem:[%s177_s11 + $0x18] sm:$0xff] %v246_v3  ;;  %v256_v8 = vld [vmem:[%s1462_s10 + $0x80] sm:$0xff]  ;;  %v258_v9 = vld [vmem:[%s1462_s10 + $0x90] sm:$0xff] }
  0x1a   : > { %249 = vst [vmem:[%s177_s11 + $0x20] sm:$0xff] %v248_v4  ;;  %v260_v10 = vld [vmem:[%s1462_s10 + $0xa0] sm:$0xff]  ;;  %v262_v11 = vld [vmem:[%s1462_s10 + $0xb0] sm:$0xff] }
  0x1b   : > { %251 = vst [vmem:[%s177_s11 + $0x28] sm:$0xff] %v250_v5  ;;  %v264_v12 = vld [vmem:[%s1462_s10 + $0xc0] sm:$0xff]  ;;  %v266_v13 = vld [vmem:[%s1462_s10 + $0xd0] sm:$0xff] }
  0x1c   : > { %253 = vst [vmem:[%s177_s11 + $0x30] sm:$0xff] %v252_v6  ;;  %v268_v14 = vld [vmem:[%s1462_s10 + $0xe0] sm:$0xff]  ;;  %v270_v15 = vld [vmem:[%s1462_s10 + $0xf0] sm:$0xff] }
  0x1d   : > { %255 = vst [vmem:[%s177_s11 + $0x38] sm:$0xff] %v254_v7 }
  0x1e   : > { %257 = vst [vmem:[%s177_s11 + $0x40] sm:$0xff] %v256_v8 }
  0x1f   : > { %259 = vst [vmem:[%s177_s11 + $0x48] sm:$0xff] %v258_v9 }
  0x20   : > { %261 = vst [vmem:[%s177_s11 + $0x50] sm:$0xff] %v260_v10 }
  0x21   : > { %263 = vst [vmem:[%s177_s11 + $0x58] sm:$0xff] %v262_v11 }
  0x22   : > { %265 = vst [vmem:[%s177_s11 + $0x60] sm:$0xff] %v264_v12 }
  0x23   : > { %267 = vst [vmem:[%s177_s11 + $0x68] sm:$0xff] %v266_v13 }
  0x24   : > { %269 = vst [vmem:[%s177_s11 + $0x70] sm:$0xff] %v268_v14 }
  0x25   : > { %271 = vst [vmem:[%s177_s11 + $0x78] sm:$0xff] %v270_v15 }
  0x26 PF: > { %p1086_p7 = scmp.ge.s32.totalorder %s1373_s21, 1  ;;  %p284_p8 = scmp.lt.s32.totalorder %s1373_s21, 5 }
  0x28   : > { %p285_p9 = pnand %p1086_p7, %p284_p8 }
  0x29   : > { %p326_p10 = scmp.lt.s32.totalorder (!%p285_p9), %s1361_s18, 1  ;;  %s291_s25 = sand.u32 (!%p285_p9), 1, %s1349_s15  }
  0x2a   : > { %288 = sbr.rel (%p285_p9) target bundleno = 668 (0x29c), region = 70  ;;  %s1087_s26 = sshll.u32 (!%p285_p9), %s291_s25, 7 }
  0x2b   : > { %s1529_s27 = scalar_lea.vmem (!%p285_p9), [#allocation2], %s1087_s26  ;;  %s1090_s25 = sshll.u32 (!%p285_p9), %s1357_s17, 4 }
  0x2c   : > { %p334_p11 = scmp.lt.s32.totalorder (!%p285_p9), %s1090_s25, 31 }
  0x2f   : > { %v1375_v16 = vmov 1   ;;  %v1376_v17 = vmov 0   ;;  %s1884_s18 = smov (!%p326_p10, %s1361_s18), 1  ;;  %v342_v35 = vld [vmem:[%s1529_s27] sm:$0xff]  ;;  %v343_v41 = vld [vmem:[%s1529_s27 + $0x8] sm:$0xff]  ;;  %v344_v45 = vld [vmem:[%s1529_s27 + $0x10] sm:$0xff] }
  0x30   : > { %1299 = vset.pattern.permute.xlu0 %v1375_v16  ;;  %1303 = vset.pattern.permute.xlu2 %v1376_v17  ;;  %s1190_s12 = sshll.u32 %s1884_s18, 7  ;;  %v345_v50 = vld [vmem:[%s1529_s27 + $0x18] sm:$0xff]  ;;  %v346_v55 = vld [vmem:[%s1529_s27 + $0x20] sm:$0xff]  ;;  %v347_v60 = vld [vmem:[%s1529_s27 + $0x28] sm:$0xff]  ;;  %s1886_s25 = smov (!%p334_p11, %s1090_s25), 31 }
  0x31   : > { %1301 = vset.pattern.permute.xlu1 %v1376_v17  ;;  %s1493_s24 = scalar_lea.vmem %s1867_s1, %s1190_s12  ;;  %v348_v2 = vld [vmem:[%s1529_s27 + $0x30] sm:$0xff]  ;;  %v349_v7 = vld [vmem:[%s1529_s27 + $0x38] sm:$0xff]  ;;  %v350_v12 = vld [vmem:[%s1529_s27 + $0x40] sm:$0xff]  ;;  %s1240_s26 = smul.u32 96, %s1884_s18 }
  0x32   : > { %v360_v18 = vld [vmem:[%s1493_s24 + $0x10] sm:$0xff]  ;;  %v359_v19 = vld [vmem:[%s1493_s24 + $0x8] sm:$0xff]  ;;  %v358_v20 = vld [vmem:[%s1493_s24] sm:$0xff]  ;;  %s1239_s15 = smul.u32 3, %s1886_s25 }
  0x33   : > { %386 = vperm.xlu2 %1303, %v360_v18   ;;  %381 = vperm.xlu1 %1301, %v359_v19   ;;  %v361_v21 = vld [vmem:[%s1493_s24 + $0x18] sm:$0xff]  ;;  %v362_v22 = vld [vmem:[%s1493_s24 + $0x20] sm:$0xff]  ;;  %v367_v23 = vld [vmem:[%s1493_s24 + $0x48] sm:$0xff] }
  0x34   : > { %471 = vperm.xlu0 %1299, %v358_v20   ;;  %v363_v24 = vld [vmem:[%s1493_s24 + $0x28] sm:$0xff]  ;;  %v364_v25 = vld [vmem:[%s1493_s24 + $0x30] sm:$0xff]  ;;  %v365_v26 = vld [vmem:[%s1493_s24 + $0x38] sm:$0xff]  ;;  %s338_s17 = sadd.s32 %s1240_s26, %s1239_s15 }
  0x35   : > { %v369_v27 = vld [vmem:[%s1493_s24 + $0x58] sm:$0xff]  ;;  %v366_v28 = vld [vmem:[%s1493_s24 + $0x40] sm:$0xff]  ;;  %v368_v29 = vld [vmem:[%s1493_s24 + $0x50] sm:$0xff]  ;;  %s1091_s5 = sshll.u32 %s338_s17, 2 }
  0x36   : > { %v372_v30 = vld [vmem:[%s1493_s24 + $0x70] sm:$0xff]  ;;  %v370_v31 = vld [vmem:[%s1493_s24 + $0x60] sm:$0xff]  ;;  %v371_v32 = vld [vmem:[%s1493_s24 + $0x68] sm:$0xff]  ;;  %s1759_s7 = scalar_lea.vmem %s1870_s4, %s1091_s5 }
  0x37   : > { %v373_v33 = vld [vmem:[%s1493_s24 + $0x78] sm:$0xff] }
  0x3b   : > { %1304 = vset.pattern.permute.xlu2 %v1375_v16  ;;  %1302 = vset.pattern.permute.xlu1 %v1375_v16 }
  0x3c   : > { %1300 = vset.pattern.permute.xlu0 %v1376_v17  ;;  %479 = vperm.xlu2 %1304, %v360_v18  }
  0x3d   : > { %475 = vperm.xlu1 %1302, %v359_v19   ;;  %376 = vperm.xlu0 %1300, %v358_v20  }
  0x44   : > { %483 = vperm.xlu2 %1304, %v361_v21  }
  0x45   : > { %1305 = vset.pattern.permute.xlu1 %v1376_v17  ;;  %396 = vperm.xlu0 %1300, %v362_v22  }
  0x46   : > { %391 = vperm.xlu1 %1305, %v361_v21   ;;  %v352_v21 = vld [vmem:[%s1529_s27 + $0x50] sm:$0xff] }
  0x4c   : > { %1307 = vset.pattern.permute.xlu2 %v1376_v17 }
  0x4d   : > { %421 = vperm.xlu0 %1300, %v367_v23   ;;  %401 = vperm.xlu2 %1307, %v363_v24  }
  0x4e   : > { %1306 = vset.pattern.permute.xlu1 %v1375_v16 }
  0x4f   : > { %487 = vperm.xlu1 %1306, %v362_v22  }
  0x55   : > { %1310 = vset.pattern.permute.xlu0 %v1375_v16  ;;  %406 = vperm.xlu2 %1307, %v364_v25  }
  0x56   : > { %495 = vperm.xlu0 %1310, %v364_v25  }
  0x57   : > { %491 = vperm.xlu1 %1306, %v363_v24  }
  0x5d   : > { %1309 = vset.pattern.permute.xlu2 %v1375_v16 }
  0x5e   : > { %499 = vperm.xlu2 %1309, %v365_v26   ;;  %515 = vperm.xlu0 %1310, %v369_v27  }
  0x5f   : > { %1308 = vset.pattern.permute.xlu1 %v1376_v17 }
  0x60   : > { %411 = vperm.xlu1 %1308, %v365_v26   ;;  %v353_v26 = vld [vmem:[%s1529_s27 + $0x58] sm:$0xff] }
  0x66   : > { %503 = vperm.xlu2 %1309, %v366_v28   ;;  %1315 = vset.pattern.permute.xlu0 %v1376_v17 }
  0x67   : > { %446 = vperm.xlu0 %1315, %v372_v30  }
  0x68   : > { %416 = vperm.xlu1 %1308, %v366_v28  }
  0x6e   : > { %1312 = vset.pattern.permute.xlu2 %v1376_v17 }
  0x6f   : > { %426 = vperm.xlu2 %1312, %v368_v29   ;;  %1318 = vset.pattern.permute.xlu0 %v1375_v16 }
  0x70   : > { %1311 = vset.pattern.permute.xlu1 %v1375_v16 }
  0x71   : > { %507 = vperm.xlu1 %1311, %v367_v23  }
  0x77   : > { %431 = vperm.xlu2 %1312, %v369_v27  }
  0x79   : > { %511 = vperm.xlu1 %1311, %v368_v29  }
  0x7f   : > { %1314 = vset.pattern.permute.xlu2 %v1375_v16 }
  0x80   : > { %519 = vperm.xlu2 %1314, %v370_v31  }
  0x81   : > { %1313 = vset.pattern.permute.xlu1 %v1376_v17 }
  0x82   : > { %436 = vperm.xlu1 %1313, %v370_v31   ;;  %v354_v31 = vld [vmem:[%s1529_s27 + $0x60] sm:$0xff] }
  0x88   : > { %523 = vperm.xlu2 %1314, %v371_v32  }
  0x8a   : > { %441 = vperm.xlu1 %1313, %v371_v32   ;;  %v1178_v32 = vld [vmem:[%s1868_s2 + $0xa8] sm:$0xf] }
  0x8d   : > { %v387_v40 = vpop.permute.xlu2 %386 }
  0x8e   : > { %v456_v47 = vmul.f32 %v387_v40, %v344_v45 }
  0x90   : > { %1317 = vset.pattern.permute.xlu2 %v1376_v17 }
  0x91   : > { %451 = vperm.xlu2 %1317, %v373_v33  }
  0x92   : > { %1316 = vset.pattern.permute.xlu1 %v1375_v16  ;;  %v351_v16 = vld [vmem:[%s1529_s27 + $0x48] sm:$0xff] }
  0x93   : > { %527 = vperm.xlu1 %1316, %v372_v30  }
  0x96   : > { %v480_v46 = vpop.permute.xlu2 %479 }
  0x97   : > { %v536_v48 = vadd.f32 %v480_v46, %v456_v47  ;;  %v1168_v47 = vld [vmem:[%s1868_s2 + $0x9c] sm:$0xf0] }
  0x9b   : > { %531 = vperm.xlu1 %1316, %v373_v33   ;;  %v1213_v33 = vld [vmem:[%s1868_s2 + $0xb0] sm:$0xf0] }
  0x9e   : > { %v484_v52 = vpop.permute.xlu2 %483 }
  0xa5   : > { %v382_v38 = vpop.permute.xlu1 %381 }
  0xa6   : > { %v472_v34 = vpop.permute.xlu0 %471  ;;  %v455_v42 = vmul.f32 %v382_v38, %v343_v41  ;;  %v1214_v38 = vld [vmem:[%s1868_s2 + $0xb8] sm:$0xf0] }
  0xa7   : > { %v402_v58 = vpop.permute.xlu2 %401 }
  0xa8   : > { %v459_v63 = vmul.f32 %v402_v58, %v347_v60  ;;  %v1208_v58 = vld [vmem:[%s1868_s2 + $0x88] sm:$0xf0] }
  0xa9   : > { %v355_v60 = vld [vmem:[%s1529_s27 + $0x68] sm:$0xff] }
  0xaf   : > { %v377_v36 = vpop.permute.xlu0 %376  ;;  %v476_v43 = vpop.permute.xlu1 %475 }
  0xb0   : > { %v454_v37 = vmul.f32 %v377_v36, %v342_v35  ;;  %v535_v44 = vadd.f32 %v476_v43, %v455_v42  ;;  %v407_v1 = vpop.permute.xlu2 %406  ;;  %v1179_v35 = vor.u32 %v1213_v33, %v1178_v32  ;;  %v1180_v36 = vld [vmem:[%s1868_s2 + $0xb4] sm:$0xf0]  ;;  %v1166_v42 = vld [vmem:[%s1868_s2 + $0x90] sm:$0xf]  ;;  %v1210_v43 = vld [vmem:[%s1868_s2 + $0x98] sm:$0xf0] }
  0xb1   : > { %v460_v4 = vmul.f32 %v407_v1, %v348_v2  ;;  %v1167_v46 = vor.u32 %v1210_v43, %v1166_v42  ;;  %v1203_v2 = vld [vmem:[%s1868_s2 + $0x64] sm:$0xf]  ;;  %v1106_v42 = vld [vmem:[%s1868_s2 + $0x18] sm:$0xf] }
  0xb2   : > { %v534_v39 = vadd.f32 %v472_v34, %v454_v37  ;;  %v1212_v34 = vld [vmem:[%s1868_s2 + $0xac] sm:$0xf]  ;;  %v1186_v37 = vld [vmem:[%s1868_s2 + $0xb0] sm:$0xf]  ;;  %758 = vmatpush.bf16.msra.mxu0 %v1179_v35  ;;  %1215 = vmatpush.bf16.msra.mxu3 %v1179_v35  ;;  %v1195_v43 = vld [vmem:[%s1868_s2 + $0x20] sm:$0xf0] }
  0xb3   : > { %v1562_v40 = vor.u32 %v1212_v34, %v1180_v36  ;;  %v1564_v41 = vor.u32 %v1214_v38, %v1186_v37  ;;  %v357_v36 = vld [vmem:[%s1529_s27 + $0x78] sm:$0xff] }
  0xb5   : > { %807 = vmatpush.bf16.msra.mxu1 %v1562_v40  ;;  %856 = vmatpush.bf16.msra.mxu2 %v1564_v41 }
  0xb6   : > { %759 = vmatpush.bf16.msra.mxu0 %v1167_v46  ;;  %1216 = vmatpush.bf16.msra.mxu3 %v1167_v46  ;;  %v1108_v46 = vld [vmem:[%s1868_s2 + $0x24] sm:$0xf0] }
  0xb7   : > { %550 = vxpose.xlu2.b32.start [1/16] %v534_v39, 128  ;;  %v397_v54 = vpop.permute.xlu0 %396 }
  0xb8   : > { %v392_v49 = vpop.permute.xlu1 %391  ;;  %v458_v57 = vmul.f32 %v397_v54, %v346_v55  ;;  %v500_v8 = vpop.permute.xlu2 %499  ;;  %v1206_v54 = vld [vmem:[%s1868_s2 + $0x7c] sm:$0xf]  ;;  %v1156_v55 = vld [vmem:[%s1868_s2 + $0x84] sm:$0xf0] }
  0xb9   : > { %v457_v51 = vmul.f32 %v392_v49, %v345_v50  ;;  %v1211_v49 = vld [vmem:[%s1868_s2 + $0xa0] sm:$0xf0] }
  0xbb   : > { %v537_v53 = vadd.f32 %v484_v52, %v457_v51  ;;  %v1154_v51 = vld [vmem:[%s1868_s2 + $0x78] sm:$0xf]  ;;  %v1207_v52 = vld [vmem:[%s1868_s2 + $0x80] sm:$0xf0] }
  0xbf   : > { %551 = vxpose.xlu2.b32.cont [2/16] %v535_v44, 128  ;;  %v422_v61 = vpop.permute.xlu0 %421  ;;  %v1209_v44 = vld [vmem:[%s1868_s2 + $0x94] sm:$0xf] }
  0xc0   : > { %v504_v14 = vpop.permute.xlu2 %503  ;;  %v463_v18 = vmul.f32 %v422_v61, %v351_v16  ;;  %v1586_v50 = vor.u32 %v1209_v44, %v1168_v47  ;;  %v1155_v61 = vor.u32 %v1207_v52, %v1154_v51  ;;  %v1132_v16 = vld [vmem:[%s1868_s2 + $0x54] sm:$0xf0]  ;;  %v1194_v44 = vld [vmem:[%s1868_s2 + $0x1c] sm:$0xf]  ;;  %v1114_v47 = vld [vmem:[%s1868_s2 + $0x20] sm:$0xf] }
  0xc1   : > { %v488_v56 = vpop.permute.xlu1 %487  ;;  %v1094_v52 = vld [vmem:[%s1868_s2] sm:$0xf] }
  0xc2   : > { %v538_v59 = vadd.f32 %v488_v56, %v458_v57  ;;  %v1162_v57 = vld [vmem:[%s1868_s2 + $0x80] sm:$0xf]  ;;  %808 = vmatpush.bf16.msra.mxu1 %v1586_v50  ;;  %760 = vmatpush.bf16.msra.mxu0 %v1155_v61 }
  0xc3   : > { %v1619_v1 = vor.u32 %v1208_v58, %v1162_v57  ;;  %1217 = vmatpush.bf16.msra.mxu3 %v1155_v61  ;;  %v1096_v57 = vld [vmem:[%s1868_s2 + $0xc] sm:$0xf0]  ;;  %v1102_v58 = vld [vmem:[%s1868_s2 + $0x8] sm:$0xf] }
  0xc7   : > { %552 = vxpose.xlu2.b32.cont [3/16] %v536_v48, 128  ;;  %v1174_v48 = vld [vmem:[%s1868_s2 + $0x98] sm:$0xf] }
  0xc8   : > { %v496_v3 = vpop.permute.xlu0 %495 }
  0xc9   : > { %v492_v62 = vpop.permute.xlu1 %491  ;;  %v540_v6 = vadd.f32 %v496_v3, %v460_v4  ;;  %v427_v19 = vpop.permute.xlu2 %426  ;;  %v1144_v3 = vld [vmem:[%s1868_s2 + $0x6c] sm:$0xf0] }
  0xca   : > { %v539_v0 = vadd.f32 %v492_v62, %v459_v63  ;;  %v464_v23 = vmul.f32 %v427_v19, %v352_v21  ;;  %v1610_v62 = vor.u32 %v1206_v54, %v1156_v55  ;;  %v1142_v63 = vld [vmem:[%s1868_s2 + $0x60] sm:$0xf]  ;;  %v1202_v19 = vld [vmem:[%s1868_s2 + $0x58] sm:$0xf0]  ;;  %v1192_v54 = vld [vmem:[%s1868_s2 + $0x8] sm:$0xf0] }
  0xcb   : > { %v1191_v55 = vld [vmem:[%s1868_s2 + $0x4] sm:$0xf] }
  0xcc   : > { %809 = vmatpush.bf16.msra.mxu1 %v1610_v62 }
  0xcf   : > { %553 = vxpose.xlu2.b32.cont [4/16] %v537_v53, 128  ;;  %v1594_v53 = vor.u32 %v1211_v49, %v1174_v48  ;;  %v1196_v48 = vld [vmem:[%s1868_s2 + $0x28] sm:$0xf0]  ;;  %v1111_v49 = vor.u32 %v1194_v44, %v1108_v46 }
  0xd0   : > { %v516_v28 = vpop.permute.xlu0 %515  ;;  %v1703_v51 = vor.u32 %v1196_v48, %v1114_v47 }
  0xd1   : > { %v432_v25 = vpop.permute.xlu2 %431  ;;  %857 = vmatpush.bf16.msra.mxu2 %v1594_v53 }
  0xd2   : > { %v412_v5 = vpop.permute.xlu1 %411  ;;  %v465_v27 = vmul.f32 %v432_v25, %v353_v26 }
  0xd3   : > { %v461_v9 = vmul.f32 %v412_v5, %v349_v7  ;;  %v1150_v5 = vld [vmem:[%s1868_s2 + $0x68] sm:$0xf] }
  0xd4   : > { %v545_v30 = vadd.f32 %v516_v28, %v465_v27  ;;  %v1197_v27 = vld [vmem:[%s1868_s2 + $0x34] sm:$0xf]  ;;  %v1120_v28 = vld [vmem:[%s1868_s2 + $0x3c] sm:$0xf0] }
  0xd5   : > { %v541_v10 = vadd.f32 %v500_v8, %v461_v9  ;;  %v1634_v8 = vor.u32 %v1203_v2, %v1144_v3  ;;  %v1130_v9 = vld [vmem:[%s1868_s2 + $0x48] sm:$0xf]  ;;  %858 = vmatpush.bf16.msra.mxu2 %v1619_v1  ;;  %v1123_v33 = vor.u32 %v1197_v27, %v1120_v28 }
  0xd7   : > { %554 = vxpose.xlu2.b32.cont [5/16] %v538_v59, 128  ;;  %810 = vmatpush.bf16.msra.mxu1 %v1634_v8 }
  0xda   : > { %v417_v11 = vpop.permute.xlu1 %416  ;;  %v520_v45 = vpop.permute.xlu2 %519 }
  0xdb   : > { %v462_v13 = vmul.f32 %v417_v11, %v350_v12  ;;  %v447_v12 = vpop.permute.xlu0 %446 }
  0xdd   : > { %v542_v15 = vadd.f32 %v504_v14, %v462_v13  ;;  %v356_v13 = vld [vmem:[%s1529_s27 + $0x70] sm:$0xff] }
  0xde   : > { %v468_v21 = vmul.f32 %v447_v12, %v356_v13 }
  0xdf   : > { %555 = vxpose.xlu2.b32.cont [6/16] %v539_v0, 128  ;;  %v1204_v0 = vld [vmem:[%s1868_s2 + $0x68] sm:$0xf0] }
  0xe0   : > { %v1143_v7 = vor.u32 %v1204_v0, %v1142_v63 }
  0xe2   : > { %v524_v11 = vpop.permute.xlu2 %523  ;;  %761 = vmatpush.bf16.msra.mxu0 %v1143_v7  ;;  %1218 = vmatpush.bf16.msra.mxu3 %v1143_v7 }
  0xe3   : > { %v508_v17 = vpop.permute.xlu1 %507 }
  0xe4   : > { %v543_v20 = vadd.f32 %v508_v17, %v463_v18  ;;  %v1138_v18 = vld [vmem:[%s1868_s2 + $0x50] sm:$0xf] }
  0xe5   : > { %v1666_v26 = vor.u32 %v1202_v19, %v1138_v18 }
  0xe7   : > { %556 = vxpose.xlu2.b32.cont [7/16] %v540_v6, 128  ;;  %v1205_v6 = vld [vmem:[%s1868_s2 + $0x70] sm:$0xf0] }
  0xe8   : > { %v1644_v14 = vor.u32 %v1205_v6, %v1150_v5 }
  0xea   : > { %859 = vmatpush.bf16.msra.mxu2 %v1644_v14 }
  0xeb   : > { %v512_v22 = vpop.permute.xlu1 %511  ;;  %v452_v35 = vpop.permute.xlu2 %451 }
  0xec   : > { %v544_v24 = vadd.f32 %v512_v22, %v464_v23  ;;  %v1118_v23 = vld [vmem:[%s1868_s2 + $0x30] sm:$0xf]  ;;  %v469_v38 = vmul.f32 %v452_v35, %v357_v36 }
  0xee   : > { %860 = vmatpush.bf16.msra.mxu2 %v1666_v26 }
  0xef   : > { %557 = vxpose.xlu2.b32.cont [8/16] %v541_v10, 128  ;;  %v1201_v10 = vld [vmem:[%s1868_s2 + $0x50] sm:$0xf0] }
  0xf4   : > { %v437_v29 = vpop.permute.xlu1 %436 }
  0xf5   : > { %v466_v39 = vmul.f32 %v437_v29, %v354_v31  ;;  %v1126_v29 = vld [vmem:[%s1868_s2 + $0x38] sm:$0xf] }
  0xf7   : > { %558 = vxpose.xlu2.b32.cont [9/16] %v542_v15, 128  ;;  %v546_v56 = vadd.f32 %v520_v45, %v466_v39  ;;  %v1200_v15 = vld [vmem:[%s1868_s2 + $0x4c] sm:$0xf]  ;;  %v1107_v45 = vor.u32 %v1195_v43, %v1106_v42 }
  0xf8   : > { %v1135_v22 = vor.u32 %v1200_v15, %v1132_v16 }
  0xfa   : > { %811 = vmatpush.bf16.msra.mxu1 %v1135_v22 }
  0xfc   : > { %v442_v59 = vpop.permute.xlu1 %441 }
  0xfd   : > { %v467_v4 = vmul.f32 %v442_v59, %v355_v60  ;;  %v1193_v59 = vld [vmem:[%s1868_s2 + $0x10] sm:$0xf0]  ;;  %v1099_v60 = vor.u32 %v1191_v55, %v1096_v57 }
  0xfe   : > { %812 = vmatpush.bf16.msra.mxu1 %v1123_v33  ;;  %v1724_v61 = vor.u32 %v1193_v59, %v1102_v58 }
  0xff   : > { %559 = vxpose.xlu2.b32.cont [10/16] %v543_v20, 128  ;;  %v547_v17 = vadd.f32 %v524_v11, %v467_v4  ;;  %v1131_v20 = vor.u32 %v1201_v10, %v1130_v9 }
 0x101   : > { %762 = vmatpush.bf16.msra.mxu0 %v1131_v20  ;;  %1219 = vmatpush.bf16.msra.mxu3 %v1131_v20 }
 0x102   : > { %813 = vmatpush.bf16.msra.mxu1 %v1111_v49 }
 0x105   : > { %v528_v25 = vpop.permute.xlu1 %527 }
 0x106   : > { %v548_v32 = vadd.f32 %v528_v25, %v468_v21  ;;  %814 = vmatpush.bf16.msra.mxu1 %v1099_v60 }
 0x107   : > { %560 = vxpose.xlu2.b32.cont [11/16] %v544_v24, 128  ;;  %v1198_v24 = vld [vmem:[%s1868_s2 + $0x38] sm:$0xf0] }
 0x108   : > { %v1119_v31 = vor.u32 %v1198_v24, %v1118_v23 }
 0x10a   : > { %763 = vmatpush.bf16.msra.mxu0 %v1119_v31  ;;  %1220 = vmatpush.bf16.msra.mxu3 %v1119_v31 }
 0x10d   : > { %v532_v37 = vpop.permute.xlu1 %531 }
 0x10e   : > { %v549_v39 = vadd.f32 %v532_v37, %v469_v38  ;;  %764 = vmatpush.bf16.msra.mxu0 %v1107_v45  ;;  %1221 = vmatpush.bf16.msra.mxu3 %v1107_v45 }
 0x10f   : > { %561 = vxpose.xlu2.b32.cont [12/16] %v545_v30, 128  ;;  %v1199_v30 = vld [vmem:[%s1868_s2 + $0x40] sm:$0xf0] }
 0x110   : > { %v1681_v34 = vor.u32 %v1199_v30, %v1126_v29 }
 0x112   : > { %861 = vmatpush.bf16.msra.mxu2 %v1681_v34 }
 0x116   : > { %862 = vmatpush.bf16.msra.mxu2 %v1703_v51 }
 0x117   : > { %562 = vxpose.xlu2.b32.cont [13/16] %v546_v56, 128  ;;  %v1095_v56 = vor.u32 %v1192_v54, %v1094_v52 }
 0x119   : > { %765 = vmatpush.bf16.msra.mxu0 %v1095_v56  ;;  %1222 = vmatpush.bf16.msra.mxu3 %v1095_v56 }
 0x11a   : > { %863 = vmatpush.bf16.msra.mxu2 %v1724_v61 }
 0x11d   : > { %1223 = vmatpush.bf16.msrb.mxu3 %v1562_v40 }
 0x11f   : > { %563 = vxpose.xlu2.b32.cont [14/16] %v547_v17, 128 }
 0x121   : > { %1224 = vmatpush.bf16.msrb.mxu3 %v1586_v50 }
 0x125   : > { %1225 = vmatpush.bf16.msrb.mxu3 %v1610_v62 }
 0x127   : > { %564 = vxpose.xlu2.b32.cont [15/16] %v548_v32, 128 }
 0x129   : > { %1226 = vmatpush.bf16.msrb.mxu3 %v1634_v8 }
 0x12d   : > { %1227 = vmatpush.bf16.msrb.mxu3 %v1135_v22 }
 0x12f   : > { %565 = vxpose.xlu2.b32.end [16/16] %v549_v39, 128 }
 0x131   : > { %1228 = vmatpush.bf16.msrb.mxu3 %v1123_v33 }
 0x135   : > { %1229 = vmatpush.bf16.msrb.mxu3 %v1111_v49 }
 0x139   : > { %1230 = vmatpush.bf16.msrb.mxu3 %v1099_v60 }
 0x150   : > { %v566_v63 = vpop.trf.xlu2 }
 0x158   : > { %v567_v0 = vpop.trf.xlu2 }
 0x159   : > { %v582_v2 = vpack.c.bf16 %v567_v0, %v566_v63 }
 0x15b   : > { %766 = vmatmul.bf16.vlgmr.msra.gmra.mxu0 %v582_v2  ;;  %815 = vmatmul.bf16.vlgmr.msra.gmra.mxu1 %v582_v2 }
 0x15c   : > { %864 = vmatmul.bf16.vlgmr.msra.gmra.mxu2 %v582_v2 }
 0x160   : > { %v568_v3 = vpop.trf.xlu2 }
 0x168   : > { %v569_v4 = vpop.trf.xlu2 }
 0x169   : > { %v583_v5 = vpack.c.bf16 %v569_v4, %v568_v3 }
 0x16b   : > { %771 = vmatmul.bf16.gmra.mxu0 %v583_v5  ;;  %820 = vmatmul.bf16.gmra.mxu1 %v583_v5 }
 0x16c   : > { %869 = vmatmul.bf16.gmra.mxu2 %v583_v5 }
 0x170   : > { %v570_v40 = vpop.trf.xlu2 }
 0x178   : > { %v571_v50 = vpop.trf.xlu2 }
 0x179   : > { %v584_v62 = vpack.c.bf16 %v571_v50, %v570_v40 }
 0x17b   : > { %776 = vmatmul.bf16.gmra.mxu0 %v584_v62  ;;  %825 = vmatmul.bf16.gmra.mxu1 %v584_v62 }
 0x17c   : > { %874 = vmatmul.bf16.gmra.mxu2 %v584_v62 }
 0x180   : > { %v572_v6 = vpop.trf.xlu2 }
 0x188   : > { %v573_v7 = vpop.trf.xlu2 }
 0x189   : > { %v585_v8 = vpack.c.bf16 %v573_v7, %v572_v6 }
 0x18b   : > { %781 = vmatmul.bf16.gmra.mxu0 %v585_v8  ;;  %830 = vmatmul.bf16.gmra.mxu1 %v585_v8 }
 0x18c   : > { %879 = vmatmul.bf16.gmra.mxu2 %v585_v8 }
 0x190   : > { %v574_v9 = vpop.trf.xlu2 }
 0x198   : > { %v575_v10 = vpop.trf.xlu2 }
 0x199   : > { %v586_v11 = vpack.c.bf16 %v575_v10, %v574_v9 }
 0x19b   : > { %786 = vmatmul.bf16.gmra.mxu0 %v586_v11  ;;  %835 = vmatmul.bf16.gmra.mxu1 %v586_v11 }
 0x19c   : > { %884 = vmatmul.bf16.gmra.mxu2 %v586_v11 }
 0x1a0   : > { %v576_v12 = vpop.trf.xlu2 }
 0x1a8   : > { %v577_v13 = vpop.trf.xlu2 }
 0x1a9   : > { %v587_v15 = vpack.c.bf16 %v577_v13, %v576_v12 }
 0x1ab   : > { %791 = vmatmul.bf16.gmra.mxu0 %v587_v15  ;;  %840 = vmatmul.bf16.gmra.mxu1 %v587_v15 }
 0x1ac   : > { %889 = vmatmul.bf16.gmra.mxu2 %v587_v15 }
 0x1b0   : > { %v578_v16 = vpop.trf.xlu2 }
 0x1b8   : > { %v579_v17 = vpop.trf.xlu2 }
 0x1b9   : > { %v1731_v18 = vpack.c.bf16 %v579_v17, %v578_v16 }
 0x1bb   : > { %796 = vmatmul.bf16.vlgmr.msra.gmra.mxu3 %v1731_v18 }
 0x1bc   : > { %1231 = vmatpush.bf16.msra.mxu3 %v1564_v41  ;;  %v622_v41 = vld [vmem:[%s1869_s3] sm:$0x7] }
 0x1c0   : > { %v580_v19 = vpop.trf.xlu2  ;;  %1232 = vmatpush.bf16.msra.mxu3 %v1594_v53  ;;  %v1749_v53 = vperm.slane %v622_v41, 0 }
 0x1c4   : > { %1233 = vmatpush.bf16.msra.mxu3 %v1619_v1  ;;  %v1751_v1 = vperm.slane %v622_v41, 1 }
 0x1c8   : > { %v581_v20 = vpop.trf.xlu2  ;;  %1234 = vmatpush.bf16.msra.mxu3 %v1644_v14 }
 0x1c9   : > { %v1739_v21 = vpack.c.bf16 %v581_v20, %v580_v19 }
 0x1cb   : > { %801 = vmatmul.bf16.gmra.mxu3 %v1739_v21 }
 0x1cc   : > { %1235 = vmatpush.bf16.msra.mxu3 %v1666_v26  ;;  %v1762_v26 = vperm.slane %v622_v41, 2 }
 0x1d0   : > { %1236 = vmatpush.bf16.msra.mxu3 %v1681_v34 }
 0x1d4   : > { %1237 = vmatpush.bf16.msra.mxu3 %v1703_v51 }
 0x1d8   : > { %v767_v14 = vpop.f32.mrf.mxu0  ;;  %v816_v22 = vpop.f32.mrf.mxu1  ;;  %1238 = vmatpush.bf16.msra.mxu3 %v1724_v61 }
 0x1d9   : > { %v768_v23 = vadd.f32 %v767_v14, %v1749_v53  ;;  %v817_v24 = vadd.f32 %v816_v22, %v1751_v1 }
 0x1db   : > { %v905_v25 = vpack.c.bf16 %v817_v24, %v768_v23  ;;  %845 = vmatmul.bf16.vlgmr.msrb.gmra.mxu3 %v1731_v18 }
 0x1dd   : > { %937 = vst [vmem:[%s1759_s7] sm:$0xff] %v905_v25 }
 0x1df   : > { %v865_v27 = vpop.f32.mrf.mxu2 }
 0x1e0   : > { %v866_v28 = vadd.f32 %v865_v27, %v1762_v26  ;;  %v769_v29 = vpop.f32.mrf.mxu0  ;;  %v818_v30 = vpop.f32.mrf.mxu1 }
 0x1e1   : > { %v770_v31 = vadd.f32 %v769_v29, %v1749_v53  ;;  %v819_v32 = vadd.f32 %v818_v30, %v1751_v1 }
 0x1e2   : > { %v906_v33 = vpack.c.bf16 %v866_v28, %v866_v28 }
 0x1e3   : > { %v907_v34 = vpack.c.bf16 %v819_v32, %v770_v31 }
 0x1e4   : > { %938 = vst [vmem:[%s1759_s7 + $0x8] sm:$0xf] %v906_v33 }
 0x1e5   : > { %939 = vst [vmem:[%s1759_s7 + $0xc] sm:$0xff] %v907_v34 }
 0x1e7   : > { %v867_v35 = vpop.f32.mrf.mxu2 }
 0x1e8   : > { %v868_v36 = vadd.f32 %v867_v35, %v1762_v26  ;;  %v772_v37 = vpop.f32.mrf.mxu0  ;;  %v821_v38 = vpop.f32.mrf.mxu1 }
 0x1e9   : > { %v773_v39 = vadd.f32 %v772_v37, %v1749_v53  ;;  %v822_v42 = vadd.f32 %v821_v38, %v1751_v1 }
 0x1ea   : > { %v908_v43 = vpack.c.bf16 %v868_v36, %v868_v36 }
 0x1eb   : > { %v909_v44 = vpack.c.bf16 %v822_v42, %v773_v39  ;;  %850 = vmatmul.bf16.gmra.mxu3 %v1739_v21 }
 0x1ec   : > { %940 = vst [vmem:[%s1759_s7 + $0x14] sm:$0xf] %v908_v43 }
 0x1ed   : > { %941 = vst [vmem:[%s1759_s7 + $0x18] sm:$0xff] %v909_v44 }
 0x1ef   : > { %v870_v45 = vpop.f32.mrf.mxu2 }
 0x1f0   : > { %v871_v46 = vadd.f32 %v870_v45, %v1762_v26  ;;  %v774_v47 = vpop.f32.mrf.mxu0  ;;  %v823_v48 = vpop.f32.mrf.mxu1 }
 0x1f1   : > { %v775_v49 = vadd.f32 %v774_v47, %v1749_v53  ;;  %v824_v51 = vadd.f32 %v823_v48, %v1751_v1 }
 0x1f2   : > { %v910_v52 = vpack.c.bf16 %v871_v46, %v871_v46 }
 0x1f3   : > { %v911_v54 = vpack.c.bf16 %v824_v51, %v775_v49 }
 0x1f4   : > { %942 = vst [vmem:[%s1759_s7 + $0x20] sm:$0xf] %v910_v52 }
 0x1f5   : > { %943 = vst [vmem:[%s1759_s7 + $0x24] sm:$0xff] %v911_v54 }
 0x1f7   : > { %v872_v55 = vpop.f32.mrf.mxu2 }
 0x1f8   : > { %v873_v56 = vadd.f32 %v872_v55, %v1762_v26  ;;  %v777_v57 = vpop.f32.mrf.mxu0  ;;  %v826_v58 = vpop.f32.mrf.mxu1 }
 0x1f9   : > { %v778_v59 = vadd.f32 %v777_v57, %v1749_v53  ;;  %v827_v60 = vadd.f32 %v826_v58, %v1751_v1 }
 0x1fa   : > { %v912_v61 = vpack.c.bf16 %v873_v56, %v873_v56 }
 0x1fb   : > { %v913_v63 = vpack.c.bf16 %v827_v60, %v778_v59  ;;  %894 = vmatmul.bf16.vlgmr.msra.gmra.mxu3 %v1731_v18 }
 0x1fc   : > { %944 = vst [vmem:[%s1759_s7 + $0x2c] sm:$0xf] %v912_v61 }
 0x1fd   : > { %945 = vst [vmem:[%s1759_s7 + $0x30] sm:$0xff] %v913_v63 }
 0x1ff   : > { %v875_v0 = vpop.f32.mrf.mxu2 }
 0x200   : > { %v876_v2 = vadd.f32 %v875_v0, %v1762_v26  ;;  %v779_v3 = vpop.f32.mrf.mxu0  ;;  %v828_v4 = vpop.f32.mrf.mxu1 }
 0x201   : > { %v780_v5 = vadd.f32 %v779_v3, %v1749_v53  ;;  %v829_v40 = vadd.f32 %v828_v4, %v1751_v1 }
 0x202   : > { %v914_v50 = vpack.c.bf16 %v876_v2, %v876_v2 }
 0x203   : > { %v915_v62 = vpack.c.bf16 %v829_v40, %v780_v5 }
 0x204   : > { %946 = vst [vmem:[%s1759_s7 + $0x38] sm:$0xf] %v914_v50 }
 0x205   : > { %947 = vst [vmem:[%s1759_s7 + $0x3c] sm:$0xff] %v915_v62 }
 0x207   : > { %v877_v6 = vpop.f32.mrf.mxu2 }
 0x208   : > { %v878_v7 = vadd.f32 %v877_v6, %v1762_v26  ;;  %v782_v8 = vpop.f32.mrf.mxu0  ;;  %v831_v9 = vpop.f32.mrf.mxu1 }
 0x209   : > { %v783_v10 = vadd.f32 %v782_v8, %v1749_v53  ;;  %v832_v11 = vadd.f32 %v831_v9, %v1751_v1 }
 0x20a   : > { %v916_v12 = vpack.c.bf16 %v878_v7, %v878_v7 }
 0x20b   : > { %v917_v13 = vpack.c.bf16 %v832_v11, %v783_v10  ;;  %899 = vmatmul.bf16.gmra.mxu3 %v1739_v21 }
 0x20c   : > { %948 = vst [vmem:[%s1759_s7 + $0x44] sm:$0xf] %v916_v12 }
 0x20d   : > { %949 = vst [vmem:[%s1759_s7 + $0x48] sm:$0xff] %v917_v13 }
 0x20f   : > { %v880_v15 = vpop.f32.mrf.mxu2 }
 0x210   : > { %v881_v16 = vadd.f32 %v880_v15, %v1762_v26  ;;  %v784_v17 = vpop.f32.mrf.mxu0  ;;  %v833_v18 = vpop.f32.mrf.mxu1 }
 0x211   : > { %v785_v19 = vadd.f32 %v784_v17, %v1749_v53  ;;  %v834_v20 = vadd.f32 %v833_v18, %v1751_v1 }
 0x212   : > { %v918_v41 = vpack.c.bf16 %v881_v16, %v881_v16 }
 0x213   : > { %v919_v14 = vpack.c.bf16 %v834_v20, %v785_v19 }
 0x214   : > { %950 = vst [vmem:[%s1759_s7 + $0x50] sm:$0xf] %v918_v41 }
 0x215   : > { %951 = vst [vmem:[%s1759_s7 + $0x54] sm:$0xff] %v919_v14 }
 0x217   : > { %v882_v22 = vpop.f32.mrf.mxu2 }
 0x218   : > { %v883_v21 = vadd.f32 %v882_v22, %v1762_v26  ;;  %v787_v23 = vpop.f32.mrf.mxu0  ;;  %v836_v24 = vpop.f32.mrf.mxu1 }
 0x219   : > { %v788_v25 = vadd.f32 %v787_v23, %v1749_v53  ;;  %v837_v27 = vadd.f32 %v836_v24, %v1751_v1 }
 0x21a   : > { %v920_v28 = vpack.c.bf16 %v883_v21, %v883_v21 }
 0x21b   : > { %v921_v29 = vpack.c.bf16 %v837_v27, %v788_v25 }
 0x21c   : > { %952 = vst [vmem:[%s1759_s7 + $0x5c] sm:$0xf] %v920_v28 }
 0x21d   : > { %953 = vst [vmem:[%s1759_s7 + $0x60] sm:$0xff] %v921_v29 }
 0x21f   : > { %v885_v30 = vpop.f32.mrf.mxu2 }
 0x220   : > { %v886_v31 = vadd.f32 %v885_v30, %v1762_v26  ;;  %v789_v32 = vpop.f32.mrf.mxu0  ;;  %v838_v33 = vpop.f32.mrf.mxu1 }
 0x221   : > { %v790_v34 = vadd.f32 %v789_v32, %v1749_v53  ;;  %v839_v35 = vadd.f32 %v838_v33, %v1751_v1 }
 0x222   : > { %v922_v36 = vpack.c.bf16 %v886_v31, %v886_v31 }
 0x223   : > { %v923_v37 = vpack.c.bf16 %v839_v35, %v790_v34 }
 0x224   : > { %954 = vst [vmem:[%s1759_s7 + $0x68] sm:$0xf] %v922_v36 }
 0x225   : > { %955 = vst [vmem:[%s1759_s7 + $0x6c] sm:$0xff] %v923_v37 }
 0x227   : > { %v887_v38 = vpop.f32.mrf.mxu2 }
 0x228   : > { %v888_v39 = vadd.f32 %v887_v38, %v1762_v26  ;;  %v792_v42 = vpop.f32.mrf.mxu0  ;;  %v841_v43 = vpop.f32.mrf.mxu1 }
 0x229   : > { %v793_v44 = vadd.f32 %v792_v42, %v1749_v53  ;;  %v842_v45 = vadd.f32 %v841_v43, %v1751_v1 }
 0x22a   : > { %v924_v46 = vpack.c.bf16 %v888_v39, %v888_v39 }
 0x22b   : > { %v925_v47 = vpack.c.bf16 %v842_v45, %v793_v44 }
 0x22c   : > { %956 = vst [vmem:[%s1759_s7 + $0x74] sm:$0xf] %v924_v46 }
 0x22d   : > { %957 = vst [vmem:[%s1759_s7 + $0x78] sm:$0xff] %v925_v47 }
 0x22f   : > { %v890_v48 = vpop.f32.mrf.mxu2 }
 0x230   : > { %v891_v49 = vadd.f32 %v890_v48, %v1762_v26  ;;  %v794_v51 = vpop.f32.mrf.mxu0  ;;  %v843_v52 = vpop.f32.mrf.mxu1 }
 0x231   : > { %v795_v54 = vadd.f32 %v794_v51, %v1749_v53  ;;  %v844_v55 = vadd.f32 %v843_v52, %v1751_v1 }
 0x232   : > { %v926_v56 = vpack.c.bf16 %v891_v49, %v891_v49 }
 0x233   : > { %v927_v57 = vpack.c.bf16 %v844_v55, %v795_v54 }
 0x234   : > { %958 = vst [vmem:[%s1759_s7 + $0x80] sm:$0xf] %v926_v56 }
 0x235   : > { %959 = vst [vmem:[%s1759_s7 + $0x84] sm:$0xff] %v927_v57 }
 0x237   : > { %v892_v58 = vpop.f32.mrf.mxu2 }
 0x238   : > { %v893_v59 = vadd.f32 %v892_v58, %v1762_v26 }
 0x23a   : > { %v928_v60 = vpack.c.bf16 %v893_v59, %v893_v59 }
 0x23c   : > { %960 = vst [vmem:[%s1759_s7 + $0x8c] sm:$0xf] %v928_v60 }
 0x23e   : > { %v797_v61 = vpop.f32.mrf.mxu3 }
 0x23f   : > { %v798_v4 = vadd.f32 %v797_v61, %v1749_v53 }
 0x246   : > { %v799_v63 = vpop.f32.mrf.mxu3 }
 0x247   : > { %v800_v62 = vadd.f32 %v799_v63, %v1749_v53 }
 0x24e   : > { %v802_v0 = vpop.f32.mrf.mxu3 }
 0x24f   : > { %v803_v9 = vadd.f32 %v802_v0, %v1749_v53 }
 0x256   : > { %v804_v2 = vpop.f32.mrf.mxu3 }
 0x257   : > { %v805_v13 = vadd.f32 %v804_v2, %v1749_v53 }
 0x25e   : > { %v846_v3 = vpop.f32.mrf.mxu3 }
 0x25f   : > { %v847_v5 = vadd.f32 %v846_v3, %v1751_v1 }
 0x261   : > { %v929_v40 = vpack.c.bf16 %v847_v5, %v798_v4 }
 0x263   : > { %961 = vst [vmem:[%s1759_s7 + $0x90] sm:$0xff] %v929_v40 }
 0x266   : > { %v848_v50 = vpop.f32.mrf.mxu3 }
 0x267   : > { %v849_v6 = vadd.f32 %v848_v50, %v1751_v1 }
 0x269   : > { %v931_v7 = vpack.c.bf16 %v849_v6, %v800_v62 }
 0x26b   : > { %963 = vst [vmem:[%s1759_s7 + $0x9c] sm:$0xff] %v931_v7 }
 0x26e   : > { %v851_v8 = vpop.f32.mrf.mxu3 }
 0x26f   : > { %v852_v10 = vadd.f32 %v851_v8, %v1751_v1 }
 0x271   : > { %v933_v11 = vpack.c.bf16 %v852_v10, %v803_v9 }
 0x273   : > { %965 = vst [vmem:[%s1759_s7 + $0xa8] sm:$0xff] %v933_v11 }
 0x276   : > { %v853_v12 = vpop.f32.mrf.mxu3 }
 0x277   : > { %v854_v15 = vadd.f32 %v853_v12, %v1751_v1 }
 0x279   : > { %v935_v16 = vpack.c.bf16 %v854_v15, %v805_v13 }
 0x27b   : > { %967 = vst [vmem:[%s1759_s7 + $0xb4] sm:$0xff] %v935_v16 }
 0x27e   : > { %v895_v17 = vpop.f32.mrf.mxu3 }
 0x27f   : > { %v896_v18 = vadd.f32 %v895_v17, %v1762_v26 }
 0x281   : > { %v930_v19 = vpack.c.bf16 %v896_v18, %v896_v18 }
 0x283   : > { %962 = vst [vmem:[%s1759_s7 + $0x98] sm:$0xf] %v930_v19 }
 0x286   : > { %v897_v20 = vpop.f32.mrf.mxu3 }
 0x287   : > { %v898_v41 = vadd.f32 %v897_v20, %v1762_v26 }
 0x289   : > { %v932_v14 = vpack.c.bf16 %v898_v41, %v898_v41 }
 0x28b   : > { %964 = vst [vmem:[%s1759_s7 + $0xa4] sm:$0xf] %v932_v14 }
 0x28e   : > { %v900_v22 = vpop.f32.mrf.mxu3 }
 0x28f   : > { %v901_v21 = vadd.f32 %v900_v22, %v1762_v26 }
 0x291   : > { %v934_v23 = vpack.c.bf16 %v901_v21, %v901_v21 }
 0x293   : > { %966 = vst [vmem:[%s1759_s7 + $0xb0] sm:$0xf] %v934_v23 }
 0x296   : > { %v902_v53 = vpop.f32.mrf.mxu3 }
 0x297   : > { %v903_v1 = vadd.f32 %v902_v53, %v1762_v26 }
 0x299   : > { %v936_v24 = vpack.c.bf16 %v903_v1, %v903_v1 }
 0x29b   : > { %968 = vst [vmem:[%s1759_s7 + $0xbc] sm:$0xf] %v936_v24 }
 0x29c PF: > { %s14_s21 = sadd.s32 1, %s1373_s21   ;;  %s1871_s15 = smov %s1353_s16 }
 0x29d   : > { %p11_p12 = scmp.ge.s32.totalorder %s14_s21, 6   ;;  %s1872_s16 = smov %s1453_s28 }
 0x29e   : > { %s1873_s17 = smov %s1365_s19  ;;  %s1874_s18 = smov %s1369_s20 }
 0x29f   : > { %s1875_s19 = smov %s1878_s22  ;;  %s1876_s20 = smov %s1882_s23 }
 0x2a0   :  { %13 = sbr.rel (!%p11_p12) target bundleno = 4 (0x4), region = 112 }

// kernel: _lambda_.5
= control target key start
LH: loop header
LB: loop body
LE: loop exit
PB: predicated region body
PF: predicated region fallthrough
CT: control target
= control target key end

     0   :  { %s3521_s0 = inlined_call_operand.vmem [shape: bf16[2,256,384], index: 0, kind: input, shape index: {}, may-alias: {0,1,2}]   ;;  %s3522_s1 = inlined_call_operand.vmem [shape: bf16[2,256,384], index: 1, kind: input, shape index: {}, may-alias: {0,1,2}]   ;;  %s3523_s2 = inlined_call_operand.vmem [shape: bf16[2,256,384], index: 2, kind: input, shape index: {}, may-alias: {0,1,2}]   ;;  %s3524_s3 = inlined_call_operand.vmem [shape: bf16[128,128], index: 3, kind: input, shape index: {}]   ;;  %s3525_s4 = inlined_call_operand.vmem [shape: f32[1,128], index: 4, kind: input, shape index: {}]   ;;  %s3526_s5 = inlined_call_operand.vmem [shape: f32[2,128,256], index: 5, kind: input, shape index: {}]   ;;  %s3527_s6 = inlined_call_operand.vmem [shape: f32[2,128,256], index: 6, kind: output, shape index: {}]  }
   0x1   :  { %3531 = sst [smem:[#allocation14_spill]] %s3527_s6 }
   0x2   :  { %s2790_s21 = smov 0   ;;  %s2792_s22 = smov 0  }
   0x3   :  { %s2794_s23 = smov 0   ;;  %s2796_s24 = smov 0  }
   0x4   :  { %s2798_s25 = smov 0   ;;  %s2800_s26 = smov 0  }
   0x5   :  { %s2802_s27 = smov 0   ;;  %s2804_s28 = smov 0  }
   0x6   :  { %s2806_s29 = smov 0   ;;  %s2808_s30 = smov 0  }
   0x7   :  { %s2810_s7 = smov 0  }
   0x8 LB: > { %3532 = sst [smem:[#allocation10_spill]] %s2729_s26  ;;  %s28_s8 = sadd.s32 1, %s2737_s28  ;;  %s2749_s7 = sphi %s2810_s7, %s16_s7   ;;  %s2745_s30 = sphi %s2808_s30, %s3553_s30   ;;  %s2741_s29 = sphi %s2806_s29, %s3552_s29   ;;  %s2737_s28 = sphi %s2804_s28, %s3551_s28   ;;  %s2733_s27 = sphi %s2802_s27, %s3550_s27   ;;  %s2729_s26 = sphi %s2800_s26, %s3549_s26   ;;  %s2725_s25 = sphi %s2798_s25, %s3548_s25   ;;  %s2721_s24 = sphi %s2796_s24, %s3547_s24   ;;  %s2717_s23 = sphi %s2794_s23, %s3546_s23   ;;  %s2713_s22 = sphi %s2792_s22, %s3545_s22   ;;  %s2709_s21 = sphi %s2790_s21, %s3544_s21  }
   0x9   : > { %p29_p0 = scmp.ge.s32.totalorder %s28_s8, 2  ;;  %s31_s9 = sadd.s32 1, %s2741_s29 }
   0xa   : > { %p51_p1 = scmp.ne.s32.totalorder %s2721_s24, %s2717_s23  ;;  %p52_p2 = scmp.eq.s32.totalorder %s2749_s7, 0 }
   0xb   : > { %s3555_s8 = smov (%p29_p0, %s28_s8), 0  ;;  %s3557_s9 = smov (!%p29_p0, %s31_s9), %s2741_s29 }
   0xc   : > { %3533 = sst [smem:[#allocation11_spill]] %s3555_s8  ;;  %p33_p3 = scmp.ge.s32.totalorder %s3557_s9, 2 }
   0xd   : > { %s35_s10 = sadd.s32 1, %s2745_s30  ;;  %s2206_s11 = sadd.s32 4294967295, %s2749_s7  }
   0xe   : > { %p2858_p4 = por %p52_p2, %p51_p1  ;;  %s3559_s9 = smov (%p33_p3, %s3557_s9), 0 }
   0xf   : > { %3535 = sst [smem:[#allocation12_spill]] %s3559_s9  ;;  %s3561_s10 = smov (!%p33_p3, %s35_s10), %s2745_s30 }
  0x10   : > { %s68_s13 = ssub.s32 %s2737_s28, %s3555_s8  ;;  %p79_p5 = scmp.ne.s32.totalorder %s2713_s22, %s2709_s21 }
  0x11   : > { %p37_p6 = scmp.ge.s32.totalorder %s3561_s10, 2  ;;  %p209_p7 = scmp.eq.s32.totalorder %s2206_s11, 7 }
  0x12   : > { %s40_s14 = ssub.s32 %s2741_s29, %s3559_s9  ;;  %p2871_p8 = por %p79_p5, %p52_p2 }
  0x13   : > { %s3563_s10 = smov (%p37_p6, %s3561_s10), 0  ;;  %s44_s16 = sadd.s32 1, %s2721_s24 }
  0x14   : > { %3537 = sst [smem:[#allocation13_spill]] %s3563_s10  ;;  %p2881_p9 = por %p209_p7, %p51_p1 }
  0x15   : > { %s39_s18 = ssub.s32 %s2745_s30, %s3563_s10  ;;  %s72_s19 = sadd.s32 1, %s2713_s22 }
  0x16   : > { %s41_s20 = sor.u32 %s40_s14, %s39_s18  ;;  %s69_s8 = sor.u32 %s68_s13, %s39_s18 }
  0x17   : > { %p42_p10 = scmp.eq.s32.totalorder %s41_s20, 0  ;;  %p70_p11 = scmp.eq.s32.totalorder %s69_s8, 0 }
  0x18   : > { %p2209_p12 = scmp.ge.s32.totalorder %s2749_s7, 8 }
  0x19   : > { %s2889_s11 = scalar_select %p42_p10, %s2721_s24, %s44_s16  }
  0x1a   : > { %s2892_s9 = scalar_select %p70_p11, %s2713_s22, %s72_s19  }
  0x1b   : > { %237 = sbr.rel (%p2209_p12) target bundleno = 126 (0x7e), region = 24 }
  0x20   : > { %240 = sbr.rel (!%p2858_p4) target bundleno = 56 (0x38), region = 28  ;;  %s242_s6 = sand.u32 (%p2858_p4), 1, %s2721_s24  }
  0x21   : > { %s2466_s10 = smul.u32 (%p2858_p4), 48, %s2741_s29  ;;  %s2210_s26 = sshll.u32 (%p2858_p4), %s242_s6, 6 }
  0x22   : > { %s2467_s14 = smul.u32 (%p2858_p4), 96, %s2745_s30  ;;  %s244_s6 = scalar_lea.vmem (%p2858_p4), [#allocation5], %s2210_s26 }
  0x24   : > { %s248_s13 = sadd.s32 (%p2858_p4), %s2467_s14, %s2466_s10 }
  0x25   : > { %s2213_s18 = sshll.u32 %s248_s13, 2 }
  0x26   : > { %s2903_s19 = scalar_lea.vmem %s3521_s0, %s2213_s18 }
  0x27   : > { %v267_v0 = vld [vmem:[%s2903_s19] sm:$0xf]  ;;  %v269_v1 = vld [vmem:[%s2903_s19 + $0xc] sm:$0xf]  ;;  %v271_v2 = vld [vmem:[%s2903_s19 + $0x18] sm:$0xf] }
  0x28   : > { %268 = vst [vmem:[%s244_s6] sm:$0xf] %v267_v0  ;;  %v273_v3 = vld [vmem:[%s2903_s19 + $0x24] sm:$0xf]  ;;  %v275_v4 = vld [vmem:[%s2903_s19 + $0x30] sm:$0xf] }
  0x29   : > { %270 = vst [vmem:[%s244_s6 + $0x4] sm:$0xf] %v269_v1  ;;  %v277_v5 = vld [vmem:[%s2903_s19 + $0x3c] sm:$0xf]  ;;  %v279_v6 = vld [vmem:[%s2903_s19 + $0x48] sm:$0xf] }
  0x2a   : > { %272 = vst [vmem:[%s244_s6 + $0x8] sm:$0xf] %v271_v2  ;;  %v281_v7 = vld [vmem:[%s2903_s19 + $0x54] sm:$0xf]  ;;  %v283_v8 = vld [vmem:[%s2903_s19 + $0x60] sm:$0xf] }
  0x2b   : > { %274 = vst [vmem:[%s244_s6 + $0xc] sm:$0xf] %v273_v3  ;;  %v285_v9 = vld [vmem:[%s2903_s19 + $0x6c] sm:$0xf]  ;;  %v287_v10 = vld [vmem:[%s2903_s19 + $0x78] sm:$0xf] }
  0x2c   : > { %276 = vst [vmem:[%s244_s6 + $0x10] sm:$0xf] %v275_v4  ;;  %v289_v11 = vld [vmem:[%s2903_s19 + $0x84] sm:$0xf]  ;;  %v291_v12 = vld [vmem:[%s2903_s19 + $0x90] sm:$0xf] }
  0x2d   : > { %278 = vst [vmem:[%s244_s6 + $0x14] sm:$0xf] %v277_v5  ;;  %v293_v13 = vld [vmem:[%s2903_s19 + $0x9c] sm:$0xf]  ;;  %v295_v14 = vld [vmem:[%s2903_s19 + $0xa8] sm:$0xf] }
  0x2e   : > { %280 = vst [vmem:[%s244_s6 + $0x18] sm:$0xf] %v279_v6  ;;  %v297_v15 = vld [vmem:[%s2903_s19 + $0xb4] sm:$0xf] }
  0x2f   : > { %282 = vst [vmem:[%s244_s6 + $0x1c] sm:$0xf] %v281_v7 }
  0x30   : > { %284 = vst [vmem:[%s244_s6 + $0x20] sm:$0xf] %v283_v8 }
  0x31   : > { %286 = vst [vmem:[%s244_s6 + $0x24] sm:$0xf] %v285_v9 }
  0x32   : > { %288 = vst [vmem:[%s244_s6 + $0x28] sm:$0xf] %v287_v10 }
  0x33   : > { %290 = vst [vmem:[%s244_s6 + $0x2c] sm:$0xf] %v289_v11 }
  0x34   : > { %292 = vst [vmem:[%s244_s6 + $0x30] sm:$0xf] %v291_v12 }
  0x35   : > { %294 = vst [vmem:[%s244_s6 + $0x34] sm:$0xf] %v293_v13 }
  0x36   : > { %296 = vst [vmem:[%s244_s6 + $0x38] sm:$0xf] %v295_v14 }
  0x37   : > { %298 = vst [vmem:[%s244_s6 + $0x3c] sm:$0xf] %v297_v15 }
  0x38 PF: > { %354 = sbr.rel (!%p2871_p8) target bundleno = 80 (0x50), region = 69  ;;  %s356_s26 = sand.u32 (%p2871_p8), 1, %s2713_s22  }
  0x39   : > { %s2084_s10 = smul.u32 (%p2871_p8), 48, %s2737_s28  ;;  %s2214_s20 = sshll.u32 (%p2871_p8), %s356_s26, 6 }
  0x3a   : > { %s2085_s14 = smul.u32 (%p2871_p8), 96, %s2745_s30  ;;  %s358_s6 = scalar_lea.vmem (%p2871_p8), [#allocation6], %s2214_s20 }
  0x3c   : > { %s2086_s13 = sadd.s32 (%p2871_p8), %s2085_s14, %s2084_s10 }
  0x3d   : > { %s2215_s18 = sshll.u32 %s2086_s13, 2 }
  0x3e   : > { %s2929_s19 = scalar_lea.vmem %s3522_s1, %s2215_s18 }
  0x3f   : > { %v2216_v16 = vld [vmem:[%s2929_s19 + $0x4] sm:$0xf]  ;;  %v2217_v17 = vld [vmem:[%s2929_s19 + $0x10] sm:$0xf]  ;;  %v2218_v18 = vld [vmem:[%s2929_s19 + $0x1c] sm:$0xf] }
  0x40   : > { %383 = vst [vmem:[%s358_s6] sm:$0xf] %v2216_v16  ;;  %v2219_v19 = vld [vmem:[%s2929_s19 + $0x28] sm:$0xf]  ;;  %v2220_v20 = vld [vmem:[%s2929_s19 + $0x34] sm:$0xf] }
  0x41   : > { %385 = vst [vmem:[%s358_s6 + $0x4] sm:$0xf] %v2217_v17  ;;  %v2221_v21 = vld [vmem:[%s2929_s19 + $0x40] sm:$0xf]  ;;  %v2222_v22 = vld [vmem:[%s2929_s19 + $0x4c] sm:$0xf] }
  0x42   : > { %387 = vst [vmem:[%s358_s6 + $0x8] sm:$0xf] %v2218_v18  ;;  %v2223_v23 = vld [vmem:[%s2929_s19 + $0x58] sm:$0xf]  ;;  %v2224_v24 = vld [vmem:[%s2929_s19 + $0x64] sm:$0xf] }
  0x43   : > { %389 = vst [vmem:[%s358_s6 + $0xc] sm:$0xf] %v2219_v19  ;;  %v2225_v25 = vld [vmem:[%s2929_s19 + $0x70] sm:$0xf]  ;;  %v2226_v26 = vld [vmem:[%s2929_s19 + $0x7c] sm:$0xf] }
  0x44   : > { %391 = vst [vmem:[%s358_s6 + $0x10] sm:$0xf] %v2220_v20  ;;  %v2227_v27 = vld [vmem:[%s2929_s19 + $0x88] sm:$0xf]  ;;  %v2228_v28 = vld [vmem:[%s2929_s19 + $0x94] sm:$0xf] }
  0x45   : > { %393 = vst [vmem:[%s358_s6 + $0x14] sm:$0xf] %v2221_v21  ;;  %v2229_v29 = vld [vmem:[%s2929_s19 + $0xa0] sm:$0xf]  ;;  %v2230_v30 = vld [vmem:[%s2929_s19 + $0xac] sm:$0xf] }
  0x46   : > { %395 = vst [vmem:[%s358_s6 + $0x18] sm:$0xf] %v2222_v22  ;;  %v2231_v31 = vld [vmem:[%s2929_s19 + $0xb8] sm:$0xf] }
  0x47   : > { %397 = vst [vmem:[%s358_s6 + $0x1c] sm:$0xf] %v2223_v23 }
  0x48   : > { %399 = vst [vmem:[%s358_s6 + $0x20] sm:$0xf] %v2224_v24 }
  0x49   : > { %401 = vst [vmem:[%s358_s6 + $0x24] sm:$0xf] %v2225_v25 }
  0x4a   : > { %403 = vst [vmem:[%s358_s6 + $0x28] sm:$0xf] %v2226_v26 }
  0x4b   : > { %405 = vst [vmem:[%s358_s6 + $0x2c] sm:$0xf] %v2227_v27 }
  0x4c   : > { %407 = vst [vmem:[%s358_s6 + $0x30] sm:$0xf] %v2228_v28 }
  0x4d   : > { %409 = vst [vmem:[%s358_s6 + $0x34] sm:$0xf] %v2229_v29 }
  0x4e   : > { %411 = vst [vmem:[%s358_s6 + $0x38] sm:$0xf] %v2230_v30 }
  0x4f   : > { %413 = vst [vmem:[%s358_s6 + $0x3c] sm:$0xf] %v2231_v31 }
  0x50 PF: > { %469 = sbr.rel (!%p2871_p8) target bundleno = 104 (0x68), region = 110  ;;  %s471_s26 = sand.u32 (%p2871_p8), 1, %s2713_s22  }
  0x51   : > { %s2092_s10 = smul.u32 (%p2871_p8), 48, %s2737_s28  ;;  %s2232_s20 = sshll.u32 (%p2871_p8), %s471_s26, 6 }
  0x52   : > { %s2093_s14 = smul.u32 (%p2871_p8), 96, %s2745_s30  ;;  %s473_s15 = scalar_lea.vmem (%p2871_p8), [#allocation7], %s2232_s20 }
  0x54   : > { %s2094_s13 = sadd.s32 (%p2871_p8), %s2093_s14, %s2092_s10 }
  0x55   : > { %s2233_s18 = sshll.u32 %s2094_s13, 2 }
  0x56   : > { %s2955_s19 = scalar_lea.vmem %s3523_s2, %s2233_s18 }
  0x57   : > { %v2234_v32 = vld [vmem:[%s2955_s19 + $0x8] sm:$0xf]  ;;  %v2235_v33 = vld [vmem:[%s2955_s19 + $0x14] sm:$0xf]  ;;  %v2236_v34 = vld [vmem:[%s2955_s19 + $0x20] sm:$0xf] }
  0x58   : > { %498 = vst [vmem:[%s473_s15] sm:$0xf] %v2234_v32  ;;  %v2237_v35 = vld [vmem:[%s2955_s19 + $0x2c] sm:$0xf]  ;;  %v2238_v36 = vld [vmem:[%s2955_s19 + $0x38] sm:$0xf] }
  0x59   : > { %500 = vst [vmem:[%s473_s15 + $0x4] sm:$0xf] %v2235_v33  ;;  %v2239_v37 = vld [vmem:[%s2955_s19 + $0x44] sm:$0xf]  ;;  %v2240_v38 = vld [vmem:[%s2955_s19 + $0x50] sm:$0xf] }
  0x5a   : > { %502 = vst [vmem:[%s473_s15 + $0x8] sm:$0xf] %v2236_v34  ;;  %v2241_v39 = vld [vmem:[%s2955_s19 + $0x5c] sm:$0xf]  ;;  %v2242_v40 = vld [vmem:[%s2955_s19 + $0x68] sm:$0xf] }
  0x5b   : > { %504 = vst [vmem:[%s473_s15 + $0xc] sm:$0xf] %v2237_v35  ;;  %v2243_v41 = vld [vmem:[%s2955_s19 + $0x74] sm:$0xf]  ;;  %v2244_v42 = vld [vmem:[%s2955_s19 + $0x80] sm:$0xf] }
  0x5c   : > { %506 = vst [vmem:[%s473_s15 + $0x10] sm:$0xf] %v2238_v36  ;;  %v2245_v43 = vld [vmem:[%s2955_s19 + $0x8c] sm:$0xf]  ;;  %v2246_v44 = vld [vmem:[%s2955_s19 + $0x98] sm:$0xf] }
  0x5d   : > { %508 = vst [vmem:[%s473_s15 + $0x14] sm:$0xf] %v2239_v37  ;;  %v2247_v45 = vld [vmem:[%s2955_s19 + $0xa4] sm:$0xf]  ;;  %v2248_v46 = vld [vmem:[%s2955_s19 + $0xb0] sm:$0xf] }
  0x5e   : > { %510 = vst [vmem:[%s473_s15 + $0x18] sm:$0xf] %v2240_v38  ;;  %v2249_v47 = vld [vmem:[%s2955_s19 + $0xbc] sm:$0xf] }
  0x5f   : > { %512 = vst [vmem:[%s473_s15 + $0x1c] sm:$0xf] %v2241_v39 }
  0x60   : > { %514 = vst [vmem:[%s473_s15 + $0x20] sm:$0xf] %v2242_v40 }
  0x61   : > { %516 = vst [vmem:[%s473_s15 + $0x24] sm:$0xf] %v2243_v41 }
  0x62   : > { %518 = vst [vmem:[%s473_s15 + $0x28] sm:$0xf] %v2244_v42 }
  0x63   : > { %520 = vst [vmem:[%s473_s15 + $0x2c] sm:$0xf] %v2245_v43 }
  0x64   : > { %522 = vst [vmem:[%s473_s15 + $0x30] sm:$0xf] %v2246_v44 }
  0x65   : > { %524 = vst [vmem:[%s473_s15 + $0x34] sm:$0xf] %v2247_v45 }
  0x66   : > { %526 = vst [vmem:[%s473_s15 + $0x38] sm:$0xf] %v2248_v46 }
  0x67   : > { %528 = vst [vmem:[%s473_s15 + $0x3c] sm:$0xf] %v2249_v47 }
  0x68 PF: > { %584 = sbr.rel (!%p2858_p4) target bundleno = 126 (0x7e), region = 151  ;;  %s586_s6 = sand.u32 (%p2858_p4), 1, %s2721_s24  }
  0x69   : > { %s2251_s26 = sshll.u32 (%p2858_p4), %s2745_s30, 5  ;;  %s2250_s10 = sshll.u32 (%p2858_p4), %s586_s6, 7 }
  0x6a   : > { %s590_s20 = sadd.s32 (%p2858_p4), %s2741_s29, %s2251_s26  ;;  %s588_s12 = scalar_lea.vmem (%p2858_p4), [#allocation8], %s2250_s10 }
  0x6b   : > { %s2252_s14 = sshll.u32 (%p2858_p4), %s590_s20, 3 }
  0x6c   : > { %s2981_s8 = scalar_lea.vmem (%p2858_p4), %s3526_s5, %s2252_s14 }
  0x6d   : > { %v651_v48 = vld [vmem:[%s2981_s8] sm:$0xff]  ;;  %v653_v49 = vld [vmem:[%s2981_s8 + $0x10] sm:$0xff] }
  0x6e   : > { %v655_v50 = vld [vmem:[%s2981_s8 + $0x20] sm:$0xff]  ;;  %652 = vst [vmem:[%s588_s12] sm:$0xff] %v651_v48  ;;  %v657_v51 = vld [vmem:[%s2981_s8 + $0x30] sm:$0xff] }
  0x6f   : > { %654 = vst [vmem:[%s588_s12 + $0x8] sm:$0xff] %v653_v49  ;;  %v659_v52 = vld [vmem:[%s2981_s8 + $0x40] sm:$0xff]  ;;  %v661_v53 = vld [vmem:[%s2981_s8 + $0x50] sm:$0xff] }
  0x70   : > { %656 = vst [vmem:[%s588_s12 + $0x10] sm:$0xff] %v655_v50  ;;  %v663_v54 = vld [vmem:[%s2981_s8 + $0x60] sm:$0xff]  ;;  %v665_v55 = vld [vmem:[%s2981_s8 + $0x70] sm:$0xff] }
  0x71   : > { %658 = vst [vmem:[%s588_s12 + $0x18] sm:$0xff] %v657_v51  ;;  %v667_v56 = vld [vmem:[%s2981_s8 + $0x80] sm:$0xff]  ;;  %v669_v57 = vld [vmem:[%s2981_s8 + $0x90] sm:$0xff] }
  0x72   : > { %660 = vst [vmem:[%s588_s12 + $0x20] sm:$0xff] %v659_v52  ;;  %v671_v58 = vld [vmem:[%s2981_s8 + $0xa0] sm:$0xff]  ;;  %v673_v59 = vld [vmem:[%s2981_s8 + $0xb0] sm:$0xff] }
  0x73   : > { %662 = vst [vmem:[%s588_s12 + $0x28] sm:$0xff] %v661_v53  ;;  %v675_v60 = vld [vmem:[%s2981_s8 + $0xc0] sm:$0xff]  ;;  %v677_v61 = vld [vmem:[%s2981_s8 + $0xd0] sm:$0xff] }
  0x74   : > { %664 = vst [vmem:[%s588_s12 + $0x30] sm:$0xff] %v663_v54  ;;  %v679_v62 = vld [vmem:[%s2981_s8 + $0xe0] sm:$0xff]  ;;  %v681_v63 = vld [vmem:[%s2981_s8 + $0xf0] sm:$0xff] }
  0x75   : > { %666 = vst [vmem:[%s588_s12 + $0x38] sm:$0xff] %v665_v55 }
  0x76   : > { %668 = vst [vmem:[%s588_s12 + $0x40] sm:$0xff] %v667_v56 }
  0x77   : > { %670 = vst [vmem:[%s588_s12 + $0x48] sm:$0xff] %v669_v57 }
  0x78   : > { %672 = vst [vmem:[%s588_s12 + $0x50] sm:$0xff] %v671_v58 }
  0x79   : > { %674 = vst [vmem:[%s588_s12 + $0x58] sm:$0xff] %v673_v59 }
  0x7a   : > { %676 = vst [vmem:[%s588_s12 + $0x60] sm:$0xff] %v675_v60 }
  0x7b   : > { %678 = vst [vmem:[%s588_s12 + $0x68] sm:$0xff] %v677_v61 }
  0x7c   : > { %680 = vst [vmem:[%s588_s12 + $0x70] sm:$0xff] %v679_v62 }
  0x7d   : > { %682 = vst [vmem:[%s588_s12 + $0x78] sm:$0xff] %v681_v63 }
  0x7e PF: > { %p2253_p13 = scmp.ge.s32.totalorder %s2749_s7, 1  ;;  %p687_p0 = scmp.lt.s32.totalorder %s2749_s7, 9 }
  0x80   : > { %p688_p1 = pnand %p2253_p13, %p687_p0 }
  0x81   : > { %s694_s16 = sand.u32 (!%p688_p1), 1, %s2717_s23   ;;  %s701_s19 = sand.u32 (!%p688_p1), 1, %s2709_s21  }
  0x82   : > { %691 = sbr.rel (%p688_p1) target bundleno = 1435 (0x59b), region = 189  ;;  %s2254_s15 = sshll.u32 (!%p688_p1), %s694_s16, 6 }
  0x83   : > { %s2255_s6 = sshll.u32 (!%p688_p1), %s701_s19, 6  ;;  %s2257_s26 = sshll.u32 (!%p688_p1), %s694_s16, 7 }
  0x84   : > { %s3003_s10 = scalar_lea.vmem (!%p688_p1), [#allocation5], %s2254_s15  ;;  %s3005_s20 = scalar_lea.vmem (!%p688_p1), [#allocation6], %s2255_s6 }
  0x85   : > { %s3007_s14 = scalar_lea.vmem (!%p688_p1), [#allocation7], %s2255_s6  ;;  %s3009_s13 = scalar_lea.vmem (!%p688_p1), [#allocation8], %s2257_s26 }
  0x86   : > { %s3011_s18 = scalar_lea.vmem (!%p688_p1), [#allocation9], %s2257_s26  ;;  %p2259_p2 = scmp.ne.s32.totalorder (!%p688_p1), %s2725_s25, 0 }
  0x88   : > { %761 = sbr.rel (%p2259_p2) target bundleno = 190 (0xbe), region = 209 }
  0x8d   : > { %vm762_vm0 = vcmask 7168   ;;  %v2751_v0 = vmov -inf   ;;  %v2752_v1 = vmov 0.0  }
  0x8e   : > { %763 = vst.msk [vmem:[#allocation2] sm:$0xff] %vm762_vm0, %v2751_v0 }
  0x8f   : > { %764 = vst.msk [vmem:[#allocation2 + $0x8] sm:$0xff] %vm762_vm0, %v2751_v0 }
  0x90   : > { %765 = vst.msk [vmem:[#allocation2 + $0x10] sm:$0xff] %vm762_vm0, %v2751_v0 }
  0x91   : > { %766 = vst.msk [vmem:[#allocation2 + $0x18] sm:$0xff] %vm762_vm0, %v2751_v0 }
  0x92   : > { %767 = vst.msk [vmem:[#allocation2 + $0x20] sm:$0xff] %vm762_vm0, %v2751_v0 }
  0x93   : > { %768 = vst.msk [vmem:[#allocation2 + $0x28] sm:$0xff] %vm762_vm0, %v2751_v0 }
  0x94   : > { %769 = vst.msk [vmem:[#allocation2 + $0x30] sm:$0xff] %vm762_vm0, %v2751_v0 }
  0x95   : > { %770 = vst.msk [vmem:[#allocation2 + $0x38] sm:$0xff] %vm762_vm0, %v2751_v0 }
  0x96   : > { %771 = vst.msk [vmem:[#allocation2 + $0x40] sm:$0xff] %vm762_vm0, %v2751_v0 }
  0x97   : > { %772 = vst.msk [vmem:[#allocation2 + $0x48] sm:$0xff] %vm762_vm0, %v2751_v0 }
  0x98   : > { %773 = vst.msk [vmem:[#allocation2 + $0x50] sm:$0xff] %vm762_vm0, %v2751_v0 }
  0x99   : > { %774 = vst.msk [vmem:[#allocation2 + $0x58] sm:$0xff] %vm762_vm0, %v2751_v0 }
  0x9a   : > { %775 = vst.msk [vmem:[#allocation2 + $0x60] sm:$0xff] %vm762_vm0, %v2751_v0 }
  0x9b   : > { %776 = vst.msk [vmem:[#allocation2 + $0x68] sm:$0xff] %vm762_vm0, %v2751_v0 }
  0x9c   : > { %777 = vst.msk [vmem:[#allocation2 + $0x70] sm:$0xff] %vm762_vm0, %v2751_v0 }
  0x9d   : > { %778 = vst.msk [vmem:[#allocation2 + $0x78] sm:$0xff] %vm762_vm0, %v2751_v0 }
  0x9e   : > { %779 = vst.msk [vmem:[#allocation3] sm:$0xff] %vm762_vm0, %v2752_v1 }
  0x9f   : > { %780 = vst.msk [vmem:[#allocation3 + $0x8] sm:$0xff] %vm762_vm0, %v2752_v1 }
  0xa0   : > { %781 = vst.msk [vmem:[#allocation3 + $0x10] sm:$0xff] %vm762_vm0, %v2752_v1 }
  0xa1   : > { %782 = vst.msk [vmem:[#allocation3 + $0x18] sm:$0xff] %vm762_vm0, %v2752_v1 }
  0xa2   : > { %783 = vst.msk [vmem:[#allocation3 + $0x20] sm:$0xff] %vm762_vm0, %v2752_v1 }
  0xa3   : > { %784 = vst.msk [vmem:[#allocation3 + $0x28] sm:$0xff] %vm762_vm0, %v2752_v1 }
  0xa4   : > { %785 = vst.msk [vmem:[#allocation3 + $0x30] sm:$0xff] %vm762_vm0, %v2752_v1 }
  0xa5   : > { %786 = vst.msk [vmem:[#allocation3 + $0x38] sm:$0xff] %vm762_vm0, %v2752_v1 }
  0xa6   : > { %787 = vst.msk [vmem:[#allocation3 + $0x40] sm:$0xff] %vm762_vm0, %v2752_v1 }
  0xa7   : > { %788 = vst.msk [vmem:[#allocation3 + $0x48] sm:$0xff] %vm762_vm0, %v2752_v1 }
  0xa8   : > { %789 = vst.msk [vmem:[#allocation3 + $0x50] sm:$0xff] %vm762_vm0, %v2752_v1 }
  0xa9   : > { %790 = vst.msk [vmem:[#allocation3 + $0x58] sm:$0xff] %vm762_vm0, %v2752_v1 }
  0xaa   : > { %791 = vst.msk [vmem:[#allocation3 + $0x60] sm:$0xff] %vm762_vm0, %v2752_v1 }
  0xab   : > { %792 = vst.msk [vmem:[#allocation3 + $0x68] sm:$0xff] %vm762_vm0, %v2752_v1 }
  0xac   : > { %793 = vst.msk [vmem:[#allocation3 + $0x70] sm:$0xff] %vm762_vm0, %v2752_v1 }
  0xad   : > { %794 = vst.msk [vmem:[#allocation3 + $0x78] sm:$0xff] %vm762_vm0, %v2752_v1 }
  0xae   : > { %795 = vst [vmem:[#allocation4 + $0x30] sm:$0xff] %v2752_v1 }
  0xaf   : > { %796 = vst [vmem:[#allocation4] sm:$0xff] %v2752_v1 }
  0xb0   : > { %797 = vst [vmem:[#allocation4 + $0x58] sm:$0xff] %v2752_v1 }
  0xb1   : > { %798 = vst [vmem:[#allocation4 + $0x18] sm:$0xff] %v2752_v1 }
  0xb2   : > { %799 = vst [vmem:[#allocation4 + $0x50] sm:$0xff] %v2752_v1 }
  0xb3   : > { %800 = vst [vmem:[#allocation4 + $0x68] sm:$0xff] %v2752_v1 }
  0xb4   : > { %801 = vst [vmem:[#allocation4 + $0x8] sm:$0xff] %v2752_v1 }
  0xb5   : > { %802 = vst [vmem:[#allocation4 + $0x48] sm:$0xff] %v2752_v1 }
  0xb6   : > { %803 = vst [vmem:[#allocation4 + $0x40] sm:$0xff] %v2752_v1 }
  0xb7   : > { %804 = vst [vmem:[#allocation4 + $0x20] sm:$0xff] %v2752_v1 }
  0xb8   : > { %805 = vst [vmem:[#allocation4 + $0x10] sm:$0xff] %v2752_v1 }
  0xb9   : > { %806 = vst [vmem:[#allocation4 + $0x38] sm:$0xff] %v2752_v1 }
  0xba   : > { %807 = vst [vmem:[#allocation4 + $0x60] sm:$0xff] %v2752_v1 }
  0xbb   : > { %808 = vst [vmem:[#allocation4 + $0x70] sm:$0xff] %v2752_v1 }
  0xbc   : > { %809 = vst [vmem:[#allocation4 + $0x78] sm:$0xff] %v2752_v1 }
  0xbd   : > { %810 = vst [vmem:[#allocation4 + $0x28] sm:$0xff] %v2752_v1 }
  0xbe PF: > { %v2409_v2 = vld [vmem:[%s3005_s20 + $0x38] sm:$0xff]  ;;  %v2408_v3 = vld [vmem:[%s3005_s20 + $0x30] sm:$0xff]  ;;  %v2407_v4 = vld [vmem:[%s3005_s20 + $0x28] sm:$0xff]  ;;  %v2753_v34 = vmov 0   ;;  %vm1308_vm1 = vcmask 7168   ;;  %p2356_p3 = scmp.ne.s32.totalorder %s2725_s25, 1 }
  0xbf   : > { %939 = vmatpush.bf16.xpose.msra.mxu0 %v2409_v2  ;;  %2426 = vmatpush.bf16.xpose.msra.mxu2 %v2409_v2  ;;  %v2406_v5 = vld [vmem:[%s3005_s20 + $0x20] sm:$0xff]  ;;  %v2405_v6 = vld [vmem:[%s3005_s20 + $0x18] sm:$0xff]  ;;  %v2404_v7 = vld [vmem:[%s3005_s20 + $0x10] sm:$0xff] }
  0xc0   : > { %v2403_v8 = vld [vmem:[%s3005_s20 + $0x8] sm:$0xff]  ;;  %v2402_v9 = vld [vmem:[%s3005_s20] sm:$0xff]  ;;  %v2397_v11 = vld [vmem:[%s3003_s10 + $0x18] sm:$0xff]  ;;  %2560 = vset.pattern.permute.xlu1 %v2753_v34  ;;  %2561 = vset.pattern.permute.xlu2 %v2753_v34 }
  0xc1   : > { %v2394_v10 = vld [vmem:[%s3003_s10] sm:$0xff]  ;;  %v2395_v12 = vld [vmem:[%s3003_s10 + $0x8] sm:$0xff]  ;;  %v2396_v14 = vld [vmem:[%s3003_s10 + $0x10] sm:$0xff]  ;;  %2562 = vset.pattern.permute.xlu0 %v2753_v34 }
  0xc2   : > { %v2398_v13 = vld [vmem:[%s3003_s10 + $0x20] sm:$0xff]  ;;  %v2399_v15 = vld [vmem:[%s3003_s10 + $0x28] sm:$0xff]  ;;  %v2400_v16 = vld [vmem:[%s3003_s10 + $0x30] sm:$0xff] }
  0xc3   : > { %v2401_v17 = vld [vmem:[%s3003_s10 + $0x38] sm:$0xff]  ;;  %v3110_v35 = vld [vmem:[#allocation2] sm:$0xff]  ;;  %v3118_v38 = vld [vmem:[#allocation2 + $0x30] sm:$0xff] }
  0xc4   : > { %v3127_v42 = vld [vmem:[#allocation2 + $0x38] sm:$0xff]  ;;  %v3129_v44 = vld [vmem:[#allocation2 + $0x8] sm:$0xff]  ;;  %v3144_v49 = vld [vmem:[#allocation2 + $0x40] sm:$0xff] }
  0xc5   : > { %v3146_v50 = vld [vmem:[#allocation2 + $0x10] sm:$0xff]  ;;  %v3161_v56 = vld [vmem:[#allocation2 + $0x48] sm:$0xff]  ;;  %v991_v57 = vld [vmem:[#allocation2 + $0x18] sm:$0xff] }
  0xc6   : > { %v3163_v60 = vld [vmem:[#allocation2 + $0x20] sm:$0xff]  ;;  %v3177_v1 = vld [vmem:[#allocation2 + $0x50] sm:$0xff] }
  0xc7   : > { %940 = vmatpush.bf16.xpose.msra.mxu0 %v2408_v3  ;;  %2427 = vmatpush.bf16.xpose.msra.mxu2 %v2408_v3  ;;  %v3179_v3 = vld [vmem:[#allocation2 + $0x28] sm:$0xff] }
  0xcf   : > { %941 = vmatpush.bf16.xpose.msra.mxu0 %v2407_v4  ;;  %2428 = vmatpush.bf16.xpose.msra.mxu2 %v2407_v4 }
  0xd7   : > { %942 = vmatpush.bf16.xpose.msra.mxu0 %v2406_v5  ;;  %2429 = vmatpush.bf16.xpose.msra.mxu2 %v2406_v5 }
  0xdf   : > { %943 = vmatpush.bf16.xpose.msra.mxu0 %v2405_v6  ;;  %2430 = vmatpush.bf16.xpose.msra.mxu2 %v2405_v6 }
  0xe7   : > { %944 = vmatpush.bf16.xpose.msra.mxu0 %v2404_v7  ;;  %2431 = vmatpush.bf16.xpose.msra.mxu2 %v2404_v7  ;;  %v3193_v7 = vld [vmem:[#allocation2 + $0x58] sm:$0xff] }
  0xef   : > { %945 = vmatpush.bf16.xpose.msra.mxu0 %v2403_v8  ;;  %2432 = vmatpush.bf16.xpose.msra.mxu2 %v2403_v8 }
  0xf7   : > { %946 = vmatpush.bf16.xpose.msra.mxu0 %v2402_v9  ;;  %2433 = vmatpush.bf16.xpose.msra.mxu2 %v2402_v9 }
  0xfe   : > { %947 = vmatmul.bf16.vlgmr.msra.gmra.mxu0 %v2394_v10  ;;  %962 = vmatmul.bf16.vlgmr.msra.gmra.mxu2 %v2397_v11  ;;  %v3202_v10 = vld [vmem:[#allocation2 + $0x60] sm:$0xff] }
 0x10e   : > { %952 = vmatmul.bf16.gmra.mxu0 %v2395_v12  ;;  %967 = vmatmul.bf16.gmra.mxu2 %v2398_v13 }
 0x11e   : > { %957 = vmatmul.bf16.gmra.mxu0 %v2396_v14  ;;  %972 = vmatmul.bf16.gmra.mxu2 %v2399_v15  ;;  %v3213_v14 = vld [vmem:[#allocation2 + $0x68] sm:$0xff] }
 0x12e   : > { %977 = vmatmul.bf16.gmra.mxu2 %v2400_v16 }
 0x13e   : > { %982 = vmatmul.bf16.gmra.mxu2 %v2401_v17 }
 0x17b   : > { %v3062_v18 = vpop.f32.mrf.mxu0 }
 0x17c   : > { %1004 = vmax.xlane.f32.xlu0 %v3062_v18 }
 0x181   : > { %v3065_v19 = vpop.f32.mrf.mxu2 }
 0x183   : > { %v3067_v20 = vpop.f32.mrf.mxu0 }
 0x184   : > { %1016 = vmax.xlane.f32.xlu0 %v3065_v19 }
 0x189   : > { %v3070_v21 = vpop.f32.mrf.mxu2 }
 0x18a   : > { %1018 = vmax.xlane.f32.xlu1 %v3070_v21 }
 0x18b   : > { %v3073_v22 = vpop.f32.mrf.mxu0 }
 0x18c   : > { %1006 = vmax.xlane.f32.xlu0 %v3067_v20 }
 0x191   : > { %v3076_v23 = vpop.f32.mrf.mxu2 }
 0x192   : > { %1020 = vmax.xlane.f32.xlu2 %v3076_v23  ;;  %1008 = vmax.xlane.f32.xlu1 %v3073_v22 }
 0x193   : > { %v3080_v24 = vpop.f32.mrf.mxu0 }
 0x199   : > { %v3082_v25 = vpop.f32.mrf.mxu2 }
 0x19a   : > { %1022 = vmax.xlane.f32.xlu0 %v3082_v25  ;;  %1010 = vmax.xlane.f32.xlu1 %v3080_v24 }
 0x19b   : > { %v3086_v26 = vpop.f32.mrf.mxu0 }
 0x19c   : > { %1012 = vmax.xlane.f32.xlu2 %v3086_v26 }
 0x1a1   : > { %v3089_v27 = vpop.f32.mrf.mxu2 }
 0x1a2   : > { %1024 = vmax.xlane.f32.xlu1 %v3089_v27 }
 0x1a3   : > { %v3092_v28 = vpop.f32.mrf.mxu0 }
 0x1a4   : > { %1014 = vmax.xlane.f32.xlu2 %v3092_v28 }
 0x1a9   : > { %v3095_v29 = vpop.f32.mrf.mxu2 }
 0x1ac   : > { %1026 = vmax.xlane.f32.xlu2 %v3095_v29 }
 0x1b1   : > { %v3098_v30 = vpop.f32.mrf.mxu2 }
 0x1b2   : > { %1028 = vmax.xlane.f32.xlu0 %v3098_v30 }
 0x1b9   : > { %v3101_v31 = vpop.f32.mrf.mxu2 }
 0x1ba   : > { %1030 = vmax.xlane.f32.xlu1 %v3101_v31 }
 0x1c1   : > { %v3104_v32 = vpop.f32.mrf.mxu2 }
 0x1c2   : > { %1032 = vmax.xlane.f32.xlu2 %v3104_v32 }
 0x1c9   : > { %v3107_v33 = vpop.f32.mrf.mxu2 }
 0x1ca   : > { %1034 = vmax.xlane.f32.xlu0 %v3107_v33 }
 0x1ef   : > { %v1005_v36 = vpop.xlane.xlu0 %1004 }
 0x1f0   : > { %v3113_v37 = vmax.f32 %v3110_v35, %v1005_v36  ;;  %v2417_v36 = vld [vmem:[%s3007_s14 + $0x38] sm:$0xff] }
 0x1f1   : > { %1509 = vmatpush.bf16.msra.mxu1 %v2417_v36  ;;  %2434 = vmatpush.bf16.msra.mxu3 %v2417_v36 }
 0x1f2   : > { %1590 = vst.msk [vmem:[#allocation2] sm:$0xff] %vm1308_vm1, %v3113_v37  ;;  %1102 = vperm.xlu1 %2560, %v3113_v37   ;;  %v1052_v13 = vsub.f32 %v3110_v35, %v3113_v37  ;;  %v3225_v37 = vld [vmem:[#allocation2 + $0x70] sm:$0xff] }
 0x1f4   : > { %v1068_v17 = vmul.f32 1.442695, %v1052_v13 }
 0x1f6   : > { %2563 = vpow2.f32 %v1068_v17  ;;  %v2412_v17 = vld [vmem:[%s3007_s14 + $0x10] sm:$0xff] }
 0x1f7   : > { %v1017_v39 = vpop.xlane.xlu0 %1016 }
 0x1f8   : > { %v3121_v40 = vmax.f32 %v3118_v38, %v1017_v39  ;;  %v2416_v39 = vld [vmem:[%s3007_s14 + $0x30] sm:$0xff] }
 0x1f9   : > { %1510 = vmatpush.bf16.msra.mxu1 %v2416_v39  ;;  %2435 = vmatpush.bf16.msra.mxu3 %v2416_v39 }
 0x1fa   : > { %v1058_v41 = vsub.f32 %v3118_v38, %v3121_v40  ;;  %1596 = vst.msk [vmem:[#allocation2 + $0x30] sm:$0xff] %vm1308_vm1, %v3121_v40 }
 0x1fd   : > { %v1019_v43 = vpop.xlane.xlu1 %1018 }
 0x1fe   : > { %v3132_v45 = vmax.f32 %v3127_v42, %v1019_v43 }
 0x1ff   : > { %v1007_v46 = vpop.xlane.xlu0 %1006 }
 0x200   : > { %v1059_v47 = vsub.f32 %v3127_v42, %v3132_v45  ;;  %1597 = vst.msk [vmem:[#allocation2 + $0x38] sm:$0xff] %vm1308_vm1, %v3132_v45  ;;  %v3139_v48 = vmax.f32 %v3129_v44, %v1007_v46 }
 0x202   : > { %1591 = vst.msk [vmem:[#allocation2 + $0x8] sm:$0xff] %vm1308_vm1, %v3139_v48  ;;  %1107 = vperm.xlu2 %2561, %v3139_v48  }
 0x205   : > { %v1021_v51 = vpop.xlane.xlu2 %1020  ;;  %v1009_v52 = vpop.xlane.xlu1 %1008 }
 0x206   : > { %v3149_v53 = vmax.f32 %v3144_v49, %v1021_v51  ;;  %v3152_v54 = vmax.f32 %v3146_v50, %v1009_v52  ;;  %v1053_v52 = vsub.f32 %v3129_v44, %v3139_v48  ;;  %v3244_v44 = vld [vmem:[#allocation2 + $0x78] sm:$0xff] }
 0x208   : > { %v1060_v55 = vsub.f32 %v3144_v49, %v3149_v53  ;;  %1598 = vst.msk [vmem:[#allocation2 + $0x40] sm:$0xff] %vm1308_vm1, %v3149_v53  ;;  %1112 = vperm.xlu0 %2562, %v3152_v54   ;;  %v1070_v48 = vmul.f32 1.442695, %v1053_v52 }
 0x209   : > { %1592 = vst.msk [vmem:[#allocation2 + $0x10] sm:$0xff] %vm1308_vm1, %v3152_v54 }
 0x20a   : > { %v1084_v39 = vmul.f32 1.442695, %v1060_v55 }
 0x20d   : > { %v1023_v58 = vpop.xlane.xlu0 %1022  ;;  %v1011_v59 = vpop.xlane.xlu1 %1010 }
 0x20e   : > { %v3166_v61 = vmax.f32 %v3161_v56, %v1023_v58  ;;  %v1039_v62 = vmax.f32 %v991_v57, %v1011_v59  ;;  %v1054_v59 = vsub.f32 %v3146_v50, %v3152_v54  ;;  %v1080_v50 = vmul.f32 1.442695, %v1058_v41 }
 0x20f   : > { %v1013_v63 = vpop.xlane.xlu2 %1012 }
 0x210   : > { %1599 = vst.msk [vmem:[#allocation2 + $0x48] sm:$0xff] %vm1308_vm1, %v3166_v61  ;;  %v3171_v0 = vmax.f32 %v3163_v60, %v1013_v63  ;;  %1117 = vperm.xlu2 %2561, %v1039_v62   ;;  %v1055_v35 = vsub.f32 %v991_v57, %v1039_v62  ;;  %v3238_v57 = vpop.eup %2563  ;;  %v1072_v63 = vmul.f32 1.442695, %v1054_v59  ;;  %v1061_v41 = vsub.f32 %v3161_v56, %v3166_v61  ;;  %v2411_v56 = vld [vmem:[%s3007_s14 + $0x8] sm:$0xff] }
 0x211   : > { %1593 = vst.msk [vmem:[#allocation2 + $0x18] sm:$0xff] %vm1308_vm1, %v1039_v62  ;;  %v2415_v62 = vld [vmem:[%s3007_s14 + $0x28] sm:$0xff] }
 0x212   : > { %1594 = vst.msk [vmem:[#allocation2 + $0x20] sm:$0xff] %vm1308_vm1, %v3171_v0  ;;  %1122 = vperm.xlu1 %2560, %v3171_v0   ;;  %v1074_v51 = vmul.f32 1.442695, %v1055_v35  ;;  %1511 = vmatpush.bf16.msra.mxu1 %v2415_v62  ;;  %v1056_v54 = vsub.f32 %v3163_v60, %v3171_v0  ;;  %v1082_v35 = vmul.f32 1.442695, %v1059_v47 }
 0x213   : > { %2436 = vmatpush.bf16.msra.mxu3 %v2415_v62 }
 0x214   : > { %2565 = vpow2.f32 %v1074_v51  ;;  %v1076_v60 = vmul.f32 1.442695, %v1056_v54  ;;  %v2410_v51 = vld [vmem:[%s3007_s14] sm:$0xff] }
 0x215   : > { %v1025_v2 = vpop.xlane.xlu1 %1024  ;;  %2567 = vpow2.f32 %v1070_v48 }
 0x216   : > { %v3182_v4 = vmax.f32 %v3177_v1, %v1025_v2  ;;  %2569 = vpow2.f32 %v1072_v63 }
 0x217   : > { %v1015_v5 = vpop.xlane.xlu2 %1014  ;;  %2571 = vpow2.f32 %v1080_v50 }
 0x218   : > { %1600 = vst.msk [vmem:[#allocation2 + $0x50] sm:$0xff] %vm1308_vm1, %v3182_v4  ;;  %v3187_v6 = vmax.f32 %v3179_v3, %v1015_v5  ;;  %2573 = vpow2.f32 %v1076_v60 }
 0x21a   : > { %1595 = vst.msk [vmem:[#allocation2 + $0x28] sm:$0xff] %vm1308_vm1, %v3187_v6  ;;  %1152 = vperm.xlu1 %2560, %v3182_v4   ;;  %1127 = vperm.xlu2 %2561, %v3187_v6   ;;  %v3261_v13 = vpop.eup %2565  ;;  %v1057_v38 = vsub.f32 %v3179_v3, %v3187_v6  ;;  %v1086_v3 = vmul.f32 1.442695, %v1061_v41 }
 0x21c   : > { %v1078_v0 = vmul.f32 1.442695, %v1057_v38 }
 0x21e   : > { %2575 = vpow2.f32 %v1078_v0 }
 0x21f   : > { %v1027_v8 = vpop.xlane.xlu2 %1026  ;;  %2577 = vpow2.f32 %v1086_v3 }
 0x220   : > { %v3196_v9 = vmax.f32 %v3193_v7, %v1027_v8  ;;  %v2414_v8 = vld [vmem:[%s3007_s14 + $0x20] sm:$0xff]  ;;  %2579 = vpow2.f32 %v1082_v35 }
 0x221   : > { %1512 = vmatpush.bf16.msra.mxu1 %v2414_v8  ;;  %2437 = vmatpush.bf16.msra.mxu3 %v2414_v8  ;;  %2581 = vpow2.f32 %v1084_v39 }
 0x222   : > { %1601 = vst.msk [vmem:[#allocation2 + $0x58] sm:$0xff] %vm1308_vm1, %v3196_v9  ;;  %1132 = vperm.xlu1 %2560, %v3121_v40   ;;  %1157 = vperm.xlu2 %2561, %v3196_v9   ;;  %v2413_v40 = vld [vmem:[%s3007_s14 + $0x18] sm:$0xff] }
 0x225   : > { %v1029_v11 = vpop.xlane.xlu0 %1028  ;;  %1513 = vmatpush.bf16.msra.mxu1 %v2413_v40  ;;  %2438 = vmatpush.bf16.msra.mxu3 %v2413_v40 }
 0x226   : > { %v3205_v12 = vmax.f32 %v3202_v10, %v1029_v11 }
 0x228   : > { %1602 = vst.msk [vmem:[#allocation2 + $0x60] sm:$0xff] %vm1308_vm1, %v3205_v12  ;;  %1162 = vperm.xlu0 %2562, %v3205_v12  }
 0x229   : > { %1514 = vmatpush.bf16.msra.mxu1 %v2412_v17  ;;  %2439 = vmatpush.bf16.msra.mxu3 %v2412_v17 }
 0x22a   : > { %1137 = vperm.xlu1 %2560, %v3132_v45   ;;  %v1063_v45 = vsub.f32 %v3193_v7, %v3196_v9 }
 0x22c   : > { %v1090_v49 = vmul.f32 1.442695, %v1063_v45 }
 0x22d   : > { %v1031_v15 = vpop.xlane.xlu1 %1030  ;;  %1515 = vmatpush.bf16.msra.mxu1 %v2411_v56  ;;  %2440 = vmatpush.bf16.msra.mxu3 %v2411_v56 }
 0x22e   : > { %v3216_v16 = vmax.f32 %v3213_v14, %v1031_v15  ;;  %v3269_v15 = vpop.eup %2567 }
 0x22f   : > { %v3272_v36 = vpop.eup %2569 }
 0x230   : > { %v1065_v34 = vsub.f32 %v3213_v14, %v3216_v16  ;;  %1603 = vst.msk [vmem:[#allocation2 + $0x68] sm:$0xff] %vm1308_vm1, %v3216_v16  ;;  %1167 = vperm.xlu2 %2561, %v3216_v16   ;;  %v3276_v6 = vpop.eup %2571 }
 0x231   : > { %1516 = vmatpush.bf16.msra.mxu1 %v2410_v51  ;;  %2441 = vmatpush.bf16.msra.mxu3 %v2410_v51 }
 0x232   : > { %1142 = vperm.xlu1 %2560, %v3149_v53  }
 0x235   : > { %v1033_v43 = vpop.xlane.xlu2 %1032 }
 0x236   : > { %v3229_v46 = vmax.f32 %v3225_v37, %v1033_v43  ;;  %v3288_v43 = vpop.eup %2573 }
 0x237   : > { %v3291_v52 = vpop.eup %2575 }
 0x238   : > { %v1066_v58 = vsub.f32 %v3225_v37, %v3229_v46  ;;  %1604 = vst.msk [vmem:[#allocation2 + $0x70] sm:$0xff] %vm1308_vm1, %v3229_v46  ;;  %1172 = vperm.xlu0 %2562, %v3229_v46   ;;  %v3297_v42 = vpop.eup %2577 }
 0x239   : > { %v3302_v53 = vpop.eup %2579 }
 0x23a   : > { %1343 = vperm.xlu1 %2560, %v3238_v57   ;;  %v3304_v55 = vpop.eup %2581 }
 0x23d   : > { %v1035_v2 = vpop.xlane.xlu0 %1034 }
 0x23e   : > { %v3247_v5 = vmax.f32 %v3244_v44, %v1035_v2 }
 0x240   : > { %v1067_v11 = vsub.f32 %v3244_v44, %v3247_v5  ;;  %1605 = vst.msk [vmem:[#allocation2 + $0x78] sm:$0xff] %vm1308_vm1, %v3247_v5  ;;  %1177 = vperm.xlu2 %2561, %v3247_v5   ;;  %1147 = vperm.xlu0 %2562, %v3166_v61   ;;  %v1064_v61 = vsub.f32 %v3202_v10, %v3205_v12  ;;  %v1096_v44 = vmul.f32 1.442695, %v1066_v58  ;;  %v1326_v58 = vld [vmem:[#allocation4] sm:$0xff] }
 0x241   : > { %v1062_v10 = vsub.f32 %v3177_v1, %v3182_v4 }
 0x242   : > { %1358 = vperm.xlu1 %2560, %v3261_v13   ;;  %v1092_v59 = vmul.f32 1.442695, %v1064_v61 }
 0x243   : > { %v1088_v47 = vmul.f32 1.442695, %v1062_v10 }
 0x244   : > { %2583 = vpow2.f32 %v1092_v59 }
 0x245   : > { %2585 = vpow2.f32 %v1088_v47 }
 0x246   : > { %2587 = vpow2.f32 %v1090_v49 }
 0x248   : > { %1348 = vperm.xlu2 %2561, %v3269_v15   ;;  %1353 = vperm.xlu0 %2562, %v3272_v36  }
 0x24a   : > { %1373 = vperm.xlu1 %2560, %v3276_v6   ;;  %v3308_v1 = vpop.eup %2583 }
 0x24b   : > { %v3311_v7 = vpop.eup %2585 }
 0x24c   : > { %v3313_v9 = vpop.eup %2587 }
 0x250   : > { %1368 = vperm.xlu2 %2561, %v3291_v52   ;;  %1363 = vperm.xlu0 %2562, %v3288_v43  }
 0x252   : > { %1388 = vperm.xlu1 %2560, %v3297_v42  }
 0x258   : > { %1383 = vperm.xlu2 %2561, %v3304_v55   ;;  %1378 = vperm.xlu0 %2562, %v3302_v53  }
 0x25a   : > { %1403 = vperm.xlu1 %2560, %v3308_v1  }
 0x25c   : > { %v1108_v4 = vpop.permute.xlu2 %1107 }
 0x25d   : > { %v1181_v12 = vsub.f32 %v3067_v20, %v1108_v4 }
 0x25f   : > { %v1198_v62 = vmul.f32 1.442695, %v1181_v12 }
 0x260   : > { %1398 = vperm.xlu2 %2561, %v3313_v9   ;;  %1393 = vperm.xlu0 %2562, %v3311_v7  }
 0x261   : > { %2589 = vpow2.f32 %v1198_v62 }
 0x264   : > { %v1103_v48 = vpop.permute.xlu1 %1102 }
 0x265   : > { %v1180_v63 = vsub.f32 %v3062_v18, %v1103_v48 }
 0x267   : > { %v1196_v2 = vmul.f32 1.442695, %v1180_v63  ;;  %v2590_v8 = vpop.eup %2589 }
 0x269   : > { %2591 = vpow2.f32 %v1196_v2 }
 0x26a   : > { %v1118_v38 = vpop.permute.xlu2 %1117 }
 0x26b   : > { %v1183_v40 = vsub.f32 %v3080_v24, %v1118_v38 }
 0x26d   : > { %v1202_v41 = vmul.f32 1.442695, %v1183_v40 }
 0x26f   : > { %v2592_v50 = vpop.eup %2591  ;;  %2593 = vpow2.f32 %v1202_v41 }
 0x270   : > { %v1437_v54 = vpack.c.bf16 %v2590_v8, %v2592_v50 }
 0x272   : > { %1517 = vmatmul.bf16.vlgmr.msra.gmra.mxu1 %v1437_v54 }
 0x274   : > { %v1128_v60 = vpop.permute.xlu2 %1127 }
 0x275   : > { %v3321_v3 = vpop.eup %2593  ;;  %v1185_v24 = vsub.f32 %v3092_v28, %v1128_v60 }
 0x27a   : > { %v1113_v20 = vpop.permute.xlu0 %1112 }
 0x27b   : > { %v1182_v0 = vsub.f32 %v3073_v22, %v1113_v20  ;;  %v1206_v22 = vmul.f32 1.442695, %v1185_v24 }
 0x27c   : > { %v1158_v61 = vpop.permute.xlu2 %1157 }
 0x27d   : > { %v1200_v17 = vmul.f32 1.442695, %v1182_v0  ;;  %v1191_v51 = vsub.f32 %v3095_v29, %v1158_v61 }
 0x27f   : > { %2595 = vpow2.f32 %v1200_v17  ;;  %v1218_v10 = vmul.f32 1.442695, %v1191_v51 }
 0x284   : > { %v1123_v18 = vpop.permute.xlu1 %1122  ;;  %1262 = vadd.xlane.f32.xlu1 %v2590_v8 }
 0x285   : > { %v2596_v56 = vpop.eup %2595  ;;  %v1184_v35 = vsub.f32 %v3086_v26, %v1123_v18 }
 0x286   : > { %v1438_v39 = vpack.c.bf16 %v3321_v3, %v2596_v56 }
 0x287   : > { %v1204_v59 = vmul.f32 1.442695, %v1184_v35 }
 0x288   : > { %1522 = vmatmul.bf16.gmra.mxu1 %v1438_v39 }
 0x289   : > { %1260 = vadd.xlane.f32.xlu2 %v2592_v50  ;;  %2597 = vpow2.f32 %v1204_v59 }
 0x28a   : > { %2599 = vpow2.f32 %v1206_v22  ;;  %v1168_v62 = vpop.permute.xlu2 %1167 }
 0x28b   : > { %2601 = vpow2.f32 %v1218_v10  ;;  %v1193_v8 = vsub.f32 %v3101_v31, %v1168_v62 }
 0x28c   : > { %v1153_v45 = vpop.permute.xlu1 %1152 }
 0x28d   : > { %v1190_v47 = vsub.f32 %v3089_v27, %v1153_v45  ;;  %v1222_v38 = vmul.f32 1.442695, %v1193_v8 }
 0x28f   : > { %v1216_v49 = vmul.f32 1.442695, %v1190_v47  ;;  %v2598_v26 = vpop.eup %2597 }
 0x290   : > { %v2600_v12 = vpop.eup %2599 }
 0x291   : > { %2603 = vpow2.f32 %v1216_v49  ;;  %v2602_v29 = vpop.eup %2601  ;;  %v1439_v48 = vpack.c.bf16 %v2600_v12, %v2598_v26 }
 0x294   : > { %v1133_v4 = vpop.permute.xlu1 %1132 }
 0x295   : > { %v1186_v28 = vsub.f32 %v3065_v19, %v1133_v4 }
 0x297   : > { %v2604_v63 = vpop.eup %2603  ;;  %v1208_v2 = vmul.f32 1.442695, %v1186_v28 }
 0x298   : > { %1527 = vmatmul.bf16.gmra.mxu1 %v1439_v48  ;;  %v1442_v50 = vpack.c.bf16 %v2602_v29, %v2604_v63  ;;  %v1094_v48 = vmul.f32 1.442695, %v1065_v34  ;;  %v1325_v34 = vld [vmem:[#allocation4 + $0x30] sm:$0xff] }
 0x299   : > { %2605 = vpow2.f32 %v1208_v2 }
 0x29a   : > { %v1163_v27 = vpop.permute.xlu0 %1162  ;;  %1542 = vmatmul.bf16.vlgmr.msra.gmra.mxu3 %v1442_v50  ;;  %v1178_v61 = vpop.permute.xlu2 %1177 }
 0x29b   : > { %v1192_v54 = vsub.f32 %v3098_v30, %v1163_v27  ;;  %v1229_v27 = vld [vmem:[#allocation3 + $0x8] sm:$0xff] }
 0x29c   : > { %v1138_v40 = vpop.permute.xlu1 %1137 }
 0x29d   : > { %v1220_v41 = vmul.f32 1.442695, %v1192_v54  ;;  %v1187_v20 = vsub.f32 %v3070_v21, %v1138_v40  ;;  %v1195_v21 = vsub.f32 %v3107_v33, %v1178_v61 }
 0x29f   : > { %v2606_v60 = vpop.eup %2605  ;;  %2607 = vpow2.f32 %v1220_v41  ;;  %v1210_v19 = vmul.f32 1.442695, %v1187_v20  ;;  %v1226_v22 = vmul.f32 1.442695, %v1195_v21  ;;  %v1245_v41 = vmul.f32 %v3269_v15, %v1229_v27  ;;  %v1328_v21 = vld [vmem:[#allocation4 + $0x18] sm:$0xff] }
 0x2a0   : > { %2609 = vpow2.f32 %v1222_v38  ;;  %1272 = vadd.xlane.f32.xlu0 %v2606_v60 }
 0x2a1   : > { %2611 = vpow2.f32 %v1210_v19 }
 0x2a4   : > { %v1143_v0 = vpop.permute.xlu1 %1142 }
 0x2a5   : > { %v2608_v31 = vpop.eup %2607  ;;  %v1188_v17 = vsub.f32 %v3076_v23, %v1143_v0 }
 0x2a6   : > { %v2610_v18 = vpop.eup %2609 }
 0x2a7   : > { %v2612_v35 = vpop.eup %2611  ;;  %v1212_v39 = vmul.f32 1.442695, %v1188_v17  ;;  %v1443_v24 = vpack.c.bf16 %v2610_v18, %v2608_v31 }
 0x2a8   : > { %1264 = vadd.xlane.f32.xlu0 %v2596_v56  ;;  %1274 = vadd.xlane.f32.xlu1 %v2612_v35  ;;  %v1440_v30 = vpack.c.bf16 %v2612_v35, %v2606_v60  ;;  %v1327_v35 = vld [vmem:[#allocation4 + $0x58] sm:$0xff] }
 0x2a9   : > { %2613 = vpow2.f32 %v1212_v39 }
 0x2aa   : > { %v1173_v51 = vpop.permute.xlu0 %1172  ;;  %1532 = vmatmul.bf16.gmra.mxu1 %v1440_v30  ;;  %1547 = vmatmul.bf16.gmra.mxu3 %v1443_v24 }
 0x2ab   : > { %v1194_v59 = vsub.f32 %v3104_v32, %v1173_v51 }
 0x2ad   : > { %v1224_v10 = vmul.f32 1.442695, %v1194_v59 }
 0x2af   : > { %v2614_v45 = vpop.eup %2613  ;;  %2615 = vpow2.f32 %v1224_v10 }
 0x2b0   : > { %1276 = vadd.xlane.f32.xlu2 %v2614_v45  ;;  %1268 = vadd.xlane.f32.xlu1 %v2598_v26  ;;  %2617 = vpow2.f32 %v1226_v22  ;;  %v1344_v26 = vpop.permute.xlu1 %1343 }
 0x2b1   : > { %v1421_v8 = vmul.f32 %v1344_v26, %v1325_v34  ;;  %v1330_v26 = vld [vmem:[#allocation4 + $0x68] sm:$0xff] }
 0x2b2   : > { %v1148_v23 = vpop.permute.xlu0 %1147 }
 0x2b3   : > { %v1189_v56 = vsub.f32 %v3082_v25, %v1148_v23  ;;  %v1098_v25 = vmul.f32 1.442695, %v1067_v11  ;;  %v1329_v23 = vld [vmem:[#allocation4 + $0x50] sm:$0xff] }
 0x2b5   : > { %v2616_v47 = vpop.eup %2615  ;;  %v1214_v49 = vmul.f32 1.442695, %v1189_v56 }
 0x2b6   : > { %v2618_v4 = vpop.eup %2617 }
 0x2b7   : > { %2619 = vpow2.f32 %v1214_v49  ;;  %v1444_v33 = vpack.c.bf16 %v2618_v4, %v2616_v47 }
 0x2b8   : > { %1280 = vadd.xlane.f32.xlu1 %v2604_v63  ;;  %1266 = vadd.xlane.f32.xlu2 %v3321_v3  ;;  %v1359_v28 = vpop.permute.xlu1 %1358  ;;  %2621 = vpow2.f32 %v1098_v25  ;;  %v1349_v3 = vpop.permute.xlu2 %1348  ;;  %v1335_v25 = vld [vmem:[#allocation4 + $0x10] sm:$0xff] }
 0x2b9   : > { %2623 = vpow2.f32 %v1094_v48  ;;  %v1422_v38 = vmul.f32 %v1349_v3, %v1326_v58  ;;  %v1424_v59 = vmul.f32 %v1359_v28, %v1328_v21  ;;  %v1332_v21 = vld [vmem:[#allocation4 + $0x48] sm:$0xff] }
 0x2ba   : > { %1552 = vmatmul.bf16.gmra.mxu3 %v1444_v33  ;;  %2625 = vpow2.f32 %v1096_v44  ;;  %v1354_v2 = vpop.permute.xlu0 %1353 }
 0x2bb   : > { %v1423_v30 = vmul.f32 %v1354_v2, %v1327_v35 }
 0x2bd   : > { %v2620_v32 = vpop.eup %2619 }
 0x2be   : > { %1278 = vadd.xlane.f32.xlu0 %v2620_v32  ;;  %v1441_v62 = vpack.c.bf16 %v2620_v32, %v2614_v45  ;;  %v3343_v63 = vpop.eup %2621  ;;  %v1234_v45 = vld [vmem:[#allocation3 + $0x30] sm:$0xff] }
 0x2bf   : > { %v3351_v11 = vpop.eup %2623  ;;  %v1230_v32 = vld [vmem:[#allocation3 + $0x10] sm:$0xff] }
 0x2c0   : > { %1270 = vadd.xlane.f32.xlu2 %v2600_v12  ;;  %1537 = vmatmul.bf16.gmra.mxu1 %v1441_v62  ;;  %v3346_v12 = vpop.permute.xlu1 %1373  ;;  %v1369_v5 = vpop.permute.xlu2 %1368  ;;  %v1235_v62 = vld [vmem:[#allocation3 + $0x38] sm:$0xff]  ;;  %v1246_v28 = vmul.f32 %v3272_v36, %v1230_v32 }
 0x2c1   : > { %1286 = vadd.xlane.f32.xlu1 %v2610_v18  ;;  %v3356_v14 = vpop.eup %2625  ;;  %v1251_v3 = vmul.f32 %v3302_v53, %v1235_v62  ;;  %v1426_v34 = vmul.f32 %v1369_v5, %v1330_v26  ;;  %v1336_v36 = vld [vmem:[#allocation4 + $0x38] sm:$0xff] }
 0x2c2   : > { %v1364_v40 = vpop.permute.xlu0 %1363 }
 0x2c6   : > { %1284 = vadd.xlane.f32.xlu0 %v2608_v31  ;;  %v1228_v31 = vld [vmem:[#allocation3] sm:$0xff] }
 0x2c7   : > { %v1244_v17 = vmul.f32 %v3238_v57, %v1228_v31  ;;  %v1250_v57 = vmul.f32 %v3276_v6, %v1234_v45 }
 0x2c8   : > { %1282 = vadd.xlane.f32.xlu2 %v2602_v29  ;;  %v3354_v29 = vpop.permute.xlu1 %1388  ;;  %v3359_v16 = vpop.permute.xlu2 %1383 }
 0x2ca   : > { %v3369_v39 = vpop.permute.xlu0 %1378 }
 0x2ce   : > { %1290 = vadd.xlane.f32.xlu0 %v2618_v4 }
 0x2d0   : > { %1288 = vadd.xlane.f32.xlu2 %v2616_v47  ;;  %v3361_v50 = vpop.permute.xlu1 %1403  ;;  %v3363_v54 = vpop.permute.xlu2 %1398  ;;  %v1425_v47 = vmul.f32 %v1364_v40, %v1329_v23  ;;  %v1236_v40 = vld [vmem:[#allocation3 + $0x40] sm:$0xff]  ;;  %v1237_v23 = vld [vmem:[#allocation3 + $0x48] sm:$0xff] }
 0x2d1   : > { %v1252_v5 = vmul.f32 %v3304_v55, %v1236_v40  ;;  %v1334_v40 = vld [vmem:[#allocation4 + $0x20] sm:$0xff] }
 0x2d2   : > { %v1394_v51 = vpop.permute.xlu0 %1393 }
 0x2d3   : > { %v1431_v6 = vmul.f32 %v1394_v51, %v1335_v25 }
 0x2da   : > { %1418 = vperm.xlu1 %2560, %v3343_v63  }
 0x2e2   : > { %1408 = vperm.xlu0 %2562, %v3351_v11  }
 0x2e8   : > { %1413 = vperm.xlu2 %2561, %v3356_v14  }
 0x2ef   : > { %v1518_v37 = vpop.f32.mrf.mxu1 }
 0x2f0   : > { %v1558_v46 = vadd.f32 %v1518_v37, %v1421_v8 }
 0x2f2   : > { %1574 = vst [vmem:[#allocation4 + $0x30] sm:$0xff] %v1558_v46 }
 0x2f7   : > { %v1263_v20 = vpop.xlane.xlu1 %1262  ;;  %v1520_v60 = vpop.f32.mrf.mxu1 }
 0x2f8   : > { %v1293_v19 = vadd.f32 %v1263_v20, %v1245_v41  ;;  %v1559_v0 = vadd.f32 %v1520_v60, %v1422_v38  ;;  %v1232_v38 = vld [vmem:[#allocation3 + $0x20] sm:$0xff]  ;;  %v1331_v41 = vld [vmem:[#allocation4 + $0x8] sm:$0xff] }
 0x2f9   : > { %v1248_v53 = vmul.f32 %v3288_v43, %v1232_v38  ;;  %v1231_v43 = vld [vmem:[#allocation3 + $0x18] sm:$0xff]  ;;  %v1242_v38 = vld [vmem:[#allocation3 + $0x70] sm:$0xff] }
 0x2fa   : > { %1310 = vst.msk [vmem:[#allocation3 + $0x8] sm:$0xff] %vm1308_vm1, %v1293_v19  ;;  %v1432_v19 = vmul.f32 %v3363_v54, %v1336_v36  ;;  %v1247_v54 = vmul.f32 %v3261_v13, %v1231_v43 }
 0x2fb   : > { %1575 = vst [vmem:[#allocation4] sm:$0xff] %v1559_v0 }
 0x2fc   : > { %v1261_v18 = vpop.xlane.xlu2 %1260 }
 0x2fd   : > { %v1292_v61 = vadd.f32 %v1261_v18, %v1244_v17  ;;  %v1427_v18 = vmul.f32 %v3346_v12, %v1331_v41 }
 0x2ff   : > { %1309 = vst.msk [vmem:[#allocation3] sm:$0xff] %vm1308_vm1, %v1292_v61 }
 0x305   : > { %v1523_v24 = vpop.f32.mrf.mxu1 }
 0x306   : > { %v1560_v15 = vadd.f32 %v1523_v24, %v1423_v30  ;;  %v1238_v30 = vld [vmem:[#allocation3 + $0x50] sm:$0xff]  ;;  %v1337_v24 = vld [vmem:[#allocation4 + $0x60] sm:$0xff] }
 0x307   : > { %v1433_v12 = vmul.f32 %v3361_v50, %v1337_v24 }
 0x308   : > { %1576 = vst [vmem:[#allocation4 + $0x58] sm:$0xff] %v1560_v15  ;;  %v1254_v15 = vmul.f32 %v3311_v7, %v1238_v30  ;;  %v1233_v7 = vld [vmem:[#allocation3 + $0x28] sm:$0xff] }
 0x309   : > { %v1249_v32 = vmul.f32 %v3291_v52, %v1233_v7 }
 0x30d   : > { %v1525_v22 = vpop.f32.mrf.mxu1 }
 0x30e   : > { %v1561_v10 = vadd.f32 %v1525_v22, %v1424_v59 }
 0x310   : > { %1577 = vst [vmem:[#allocation4 + $0x18] sm:$0xff] %v1561_v10 }
 0x313   : > { %v1273_v56 = vpop.xlane.xlu0 %1272 }
 0x314   : > { %v1298_v49 = vadd.f32 %v1273_v56, %v1250_v57  ;;  %v1428_v57 = vmul.f32 %v3369_v39, %v1332_v21 }
 0x315   : > { %v1528_v4 = vpop.f32.mrf.mxu1 }
 0x316   : > { %1315 = vst.msk [vmem:[#allocation3 + $0x30] sm:$0xff] %vm1308_vm1, %v1298_v49  ;;  %v1562_v33 = vadd.f32 %v1528_v4, %v1425_v47  ;;  %v1253_v49 = vmul.f32 %v3297_v42, %v1237_v23  ;;  %v1241_v4 = vld [vmem:[#allocation3 + $0x68] sm:$0xff]  ;;  %v1239_v42 = vld [vmem:[#allocation3 + $0x58] sm:$0xff] }
 0x317   : > { %v1257_v62 = vmul.f32 %v3351_v11, %v1241_v4  ;;  %v1255_v11 = vmul.f32 %v3313_v9, %v1239_v42  ;;  %v1258_v9 = vmul.f32 %v3356_v14, %v1242_v38 }
 0x318   : > { %1578 = vst [vmem:[#allocation4 + $0x50] sm:$0xff] %v1562_v33 }
 0x31b   : > { %v1265_v48 = vpop.xlane.xlu0 %1264  ;;  %v1275_v44 = vpop.xlane.xlu1 %1274 }
 0x31c   : > { %v1294_v2 = vadd.f32 %v1265_v48, %v1246_v28  ;;  %v1299_v8 = vadd.f32 %v1275_v44, %v1251_v3  ;;  %v1240_v3 = vld [vmem:[#allocation3 + $0x60] sm:$0xff] }
 0x31d   : > { %v1530_v37 = vpop.f32.mrf.mxu1  ;;  %v1543_v46 = vpop.f32.mrf.mxu3  ;;  %v1256_v48 = vmul.f32 %v3308_v1, %v1240_v3  ;;  %v1333_v44 = vld [vmem:[#allocation4 + $0x40] sm:$0xff] }
 0x31e   : > { %1311 = vst.msk [vmem:[#allocation3 + $0x10] sm:$0xff] %vm1308_vm1, %v1294_v2  ;;  %v1563_v58 = vadd.f32 %v1530_v37, %v1426_v34  ;;  %v1568_v27 = vadd.f32 %v1543_v46, %v1431_v6 }
 0x31f   : > { %1316 = vst.msk [vmem:[#allocation3 + $0x38] sm:$0xff] %vm1308_vm1, %v1299_v8  ;;  %v1429_v8 = vmul.f32 %v3359_v16, %v1333_v44  ;;  %v1430_v16 = vmul.f32 %v3354_v29, %v1334_v40  ;;  %v1338_v29 = vld [vmem:[#allocation4 + $0x70] sm:$0xff] }
 0x320   : > { %1579 = vst [vmem:[#allocation4 + $0x68] sm:$0xff] %v1563_v58  ;;  %v1243_v58 = vld [vmem:[#allocation3 + $0x78] sm:$0xff] }
 0x321   : > { %1584 = vst [vmem:[#allocation4 + $0x10] sm:$0xff] %v1568_v27  ;;  %v1259_v1 = vmul.f32 %v3343_v63, %v1243_v58 }
 0x323   : > { %v1269_v20 = vpop.xlane.xlu1 %1268  ;;  %v1277_v60 = vpop.xlane.xlu2 %1276 }
 0x324   : > { %v1296_v0 = vadd.f32 %v1269_v20, %v1248_v53  ;;  %v1300_v31 = vadd.f32 %v1277_v60, %v1252_v5 }
 0x325   : > { %v1545_v17 = vpop.f32.mrf.mxu3 }
 0x326   : > { %1313 = vst.msk [vmem:[#allocation3 + $0x20] sm:$0xff] %vm1308_vm1, %v1296_v0  ;;  %v1569_v61 = vadd.f32 %v1545_v17, %v1432_v19  ;;  %v1339_v0 = vld [vmem:[#allocation4 + $0x78] sm:$0xff] }
 0x327   : > { %1317 = vst.msk [vmem:[#allocation3 + $0x40] sm:$0xff] %vm1308_vm1, %v1300_v31  ;;  %v1533_v35 = vpop.f32.mrf.mxu1  ;;  %v1340_v31 = vld [vmem:[#allocation4 + $0x28] sm:$0xff] }
 0x328   : > { %1585 = vst [vmem:[#allocation4 + $0x38] sm:$0xff] %v1569_v61  ;;  %v1564_v55 = vadd.f32 %v1533_v35, %v1427_v18 }
 0x32a   : > { %1580 = vst [vmem:[#allocation4 + $0x8] sm:$0xff] %v1564_v55 }
 0x32b   : > { %v1281_v51 = vpop.xlane.xlu1 %1280  ;;  %v1267_v59 = vpop.xlane.xlu2 %1266 }
 0x32c   : > { %v1302_v22 = vadd.f32 %v1281_v51, %v1254_v15  ;;  %v1295_v10 = vadd.f32 %v1267_v59, %v1247_v54 }
 0x32d   : > { %v1548_v45 = vpop.f32.mrf.mxu3 }
 0x32e   : > { %1319 = vst.msk [vmem:[#allocation3 + $0x50] sm:$0xff] %vm1308_vm1, %v1302_v22  ;;  %v1570_v56 = vadd.f32 %v1548_v45, %v1433_v12 }
 0x32f   : > { %1312 = vst.msk [vmem:[#allocation3 + $0x18] sm:$0xff] %vm1308_vm1, %v1295_v10  ;;  %v1535_v47 = vpop.f32.mrf.mxu1 }
 0x330   : > { %1586 = vst [vmem:[#allocation4 + $0x60] sm:$0xff] %v1570_v56  ;;  %v1565_v13 = vadd.f32 %v1535_v47, %v1428_v57 }
 0x331   : > { %v1279_v33 = vpop.xlane.xlu0 %1278 }
 0x332   : > { %1581 = vst [vmem:[#allocation4 + $0x48] sm:$0xff] %v1565_v13  ;;  %v1301_v50 = vadd.f32 %v1279_v33, %v1253_v49 }
 0x333   : > { %v1271_v39 = vpop.xlane.xlu2 %1270 }
 0x334   : > { %1318 = vst.msk [vmem:[#allocation3 + $0x48] sm:$0xff] %vm1308_vm1, %v1301_v50  ;;  %v1287_v26 = vpop.xlane.xlu1 %1286  ;;  %v1297_v25 = vadd.f32 %v1271_v39, %v1249_v32 }
 0x335   : > { %v1305_v28 = vadd.f32 %v1287_v26, %v1257_v62  ;;  %v1550_v6 = vpop.f32.mrf.mxu3 }
 0x336   : > { %1314 = vst.msk [vmem:[#allocation3 + $0x28] sm:$0xff] %vm1308_vm1, %v1297_v25 }
 0x337   : > { %1322 = vst.msk [vmem:[#allocation3 + $0x68] sm:$0xff] %vm1308_vm1, %v1305_v28 }
 0x339   : > { %v1285_v34 = vpop.xlane.xlu0 %1284 }
 0x33a   : > { %v1304_v52 = vadd.f32 %v1285_v34, %v1256_v48 }
 0x33b   : > { %v1283_v2 = vpop.xlane.xlu2 %1282 }
 0x33c   : > { %1321 = vst.msk [vmem:[#allocation3 + $0x60] sm:$0xff] %vm1308_vm1, %v1304_v52  ;;  %v1303_v37 = vadd.f32 %v1283_v2, %v1255_v11 }
 0x33d   : > { %v1538_v46 = vpop.f32.mrf.mxu1  ;;  %v1553_v41 = vpop.f32.mrf.mxu3 }
 0x33e   : > { %1320 = vst.msk [vmem:[#allocation3 + $0x58] sm:$0xff] %vm1308_vm1, %v1303_v37  ;;  %v1566_v27 = vadd.f32 %v1538_v46, %v1429_v8 }
 0x340   : > { %1582 = vst [vmem:[#allocation4 + $0x40] sm:$0xff] %v1566_v27 }
 0x341   : > { %v1291_v36 = vpop.xlane.xlu0 %1290 }
 0x342   : > { %v1307_v53 = vadd.f32 %v1291_v36, %v1259_v1 }
 0x343   : > { %v1289_v5 = vpop.xlane.xlu2 %1288 }
 0x344   : > { %1324 = vst.msk [vmem:[#allocation3 + $0x78] sm:$0xff] %vm1308_vm1, %v1307_v53  ;;  %v1306_v20 = vadd.f32 %v1289_v5, %v1258_v9 }
 0x345   : > { %v1540_v60 = vpop.f32.mrf.mxu1  ;;  %v1555_v35 = vpop.f32.mrf.mxu3 }
 0x346   : > { %1323 = vst.msk [vmem:[#allocation3 + $0x70] sm:$0xff] %vm1308_vm1, %v1306_v20  ;;  %v1567_v19 = vadd.f32 %v1540_v60, %v1430_v16 }
 0x348   : > { %1583 = vst [vmem:[#allocation4 + $0x20] sm:$0xff] %v1567_v19 }
 0x34b   : > { %v1414_v63 = vpop.permute.xlu2 %1413 }
 0x34c   : > { %v1419_v17 = vpop.permute.xlu1 %1418  ;;  %v1435_v18 = vmul.f32 %v1414_v63, %v1339_v0 }
 0x34d   : > { %v1436_v61 = vmul.f32 %v1419_v17, %v1340_v31 }
 0x34e   : > { %v1572_v14 = vadd.f32 %v1553_v41, %v1435_v18 }
 0x34f   : > { %v1573_v30 = vadd.f32 %v1555_v35, %v1436_v61 }
 0x350   : > { %1588 = vst [vmem:[#allocation4 + $0x78] sm:$0xff] %v1572_v14 }
 0x351   : > { %1589 = vst [vmem:[#allocation4 + $0x28] sm:$0xff] %v1573_v30 }
 0x354   : > { %v1409_v43 = vpop.permute.xlu0 %1408 }
 0x355   : > { %v1434_v55 = vmul.f32 %v1409_v43, %v1338_v29  ;;  %1609 = sbr.rel (%p2356_p3) target bundleno = 1410 (0x582), region = 213 }
 0x357   : > { %v1571_v24 = vadd.f32 %v1550_v6, %v1434_v55 }
 0x359   : > { %1587 = vst [vmem:[#allocation4 + $0x70] sm:$0xff] %v1571_v24 }
 0x35a   : > { %v1630_v15 = vld [vmem:[#allocation3 + $0x20] sm:$0xff]  ;;  %v2754_v21 = vmov 0   ;;  %v1628_v51 = vld [vmem:[#allocation3 + $0x10] sm:$0xff]  ;;  %v1631_v59 = vld [vmem:[#allocation3 + $0x28] sm:$0xff] }
 0x35b   : > { %v1626_v54 = vld [vmem:[#allocation3] sm:$0xff]  ;;  %2628 = vset.pattern.permute.xlu1 %v2754_v21  ;;  %2627 = vset.pattern.permute.xlu0 %v2754_v21  ;;  %2631 = vrcp.f32 %v1630_v15  ;;  %v1627_v12 = vld [vmem:[#allocation3 + $0x8] sm:$0xff]  ;;  %v1629_v10 = vld [vmem:[#allocation3 + $0x18] sm:$0xff] }
 0x35c   : > { %2633 = vrcp.f32 %v1626_v54  ;;  %2629 = vset.pattern.permute.xlu2 %v2754_v21  ;;  %v1635_v57 = vld [vmem:[#allocation3 + $0x48] sm:$0xff]  ;;  %v1634_v47 = vld [vmem:[#allocation3 + $0x40] sm:$0xff]  ;;  %v1632_v13 = vld [vmem:[#allocation3 + $0x30] sm:$0xff] }
 0x35d   : > { %2635 = vrcp.f32 %v1628_v51  ;;  %v2425_v4 = vld [vmem:[%s3524_s3 + $0x38] sm:$0xff]  ;;  %v1638_v33 = vld [vmem:[#allocation3 + $0x60] sm:$0xff]  ;;  %v1639_v39 = vld [vmem:[#allocation3 + $0x68] sm:$0xff] }
 0x35e   : > { %2637 = vrcp.f32 %v1631_v59  ;;  %1830 = vmatpush.bf16.msra.mxu0 %v2425_v4  ;;  %2442 = vmatpush.bf16.msra.mxu1 %v2425_v4  ;;  %v1633_v32 = vld [vmem:[#allocation3 + $0x38] sm:$0xff]  ;;  %v1636_v3 = vld [vmem:[#allocation3 + $0x50] sm:$0xff]  ;;  %v2423_v37 = vld [vmem:[%s3524_s3 + $0x28] sm:$0xff] }
 0x35f   : > { %2639 = vrcp.f32 %v1627_v12  ;;  %2443 = vmatpush.bf16.msra.mxu2 %v2425_v4  ;;  %2444 = vmatpush.bf16.msra.mxu3 %v2425_v4  ;;  %v1637_v25 = vld [vmem:[#allocation3 + $0x58] sm:$0xff]  ;;  %v1640_v48 = vld [vmem:[#allocation3 + $0x70] sm:$0xff]  ;;  %v2422_v46 = vld [vmem:[%s3524_s3 + $0x20] sm:$0xff] }
 0x360   : > { %2641 = vrcp.f32 %v1629_v10  ;;  %v1641_v6 = vld [vmem:[#allocation3 + $0x78] sm:$0xff]  ;;  %v2424_v8 = vld [vmem:[%s3524_s3 + $0x30] sm:$0xff]  ;;  %v2419_v38 = vld [vmem:[%s3524_s3 + $0x8] sm:$0xff] }
 0x361   : > { %v2632_v22 = vpop.eup %2631  ;;  %2643 = vrcp.f32 %v1635_v57  ;;  %v2421_v58 = vld [vmem:[%s3524_s3 + $0x18] sm:$0xff]  ;;  %v2420_v27 = vld [vmem:[%s3524_s3 + $0x10] sm:$0xff]  ;;  %v2418_v1 = vld [vmem:[%s3524_s3] sm:$0xff] }
 0x362   : > { %v2634_v45 = vpop.eup %2633  ;;  %1680 = vperm.xlu1 %2628, %v2632_v22   ;;  %2645 = vrcp.f32 %v1634_v47  ;;  %1831 = vmatpush.bf16.msra.mxu0 %v2424_v8  ;;  %v1614_v5 = vld [vmem:[#allocation4 + $0x50] sm:$0xff]  ;;  %v1615_v16 = vld [vmem:[#allocation4 + $0x68] sm:$0xff]  ;;  %v1611_v60 = vld [vmem:[#allocation4] sm:$0xff] }
 0x363   : > { %1660 = vperm.xlu0 %2627, %v2634_v45   ;;  %v2636_v23 = vpop.eup %2635  ;;  %2647 = vrcp.f32 %v1632_v13  ;;  %2445 = vmatpush.bf16.msra.mxu1 %v2424_v8  ;;  %v1610_v20 = vld [vmem:[#allocation4 + $0x30] sm:$0xff]  ;;  %v1619_v14 = vld [vmem:[#allocation4 + $0x20] sm:$0xff]  ;;  %v1612_v54 = vld [vmem:[#allocation4 + $0x58] sm:$0xff] }
 0x364   : > { %1670 = vperm.xlu2 %2629, %v2636_v23   ;;  %v2638_v56 = vpop.eup %2637  ;;  %2649 = vrcp.f32 %v1638_v33  ;;  %2446 = vmatpush.bf16.msra.mxu2 %v2424_v8  ;;  %v1618_v30 = vld [vmem:[#allocation4 + $0x40] sm:$0xff]  ;;  %v1613_v21 = vld [vmem:[#allocation4 + $0x18] sm:$0xff]  ;;  %v1623_v51 = vld [vmem:[#allocation4 + $0x70] sm:$0xff] }
 0x365   : > { %v2640_v7 = vpop.eup %2639  ;;  %2651 = vrcp.f32 %v1633_v32  ;;  %2447 = vmatpush.bf16.msra.mxu3 %v2424_v8  ;;  %v1622_v59 = vld [vmem:[#allocation4 + $0x60] sm:$0xff]  ;;  %v1616_v12 = vld [vmem:[#allocation4 + $0x8] sm:$0xff]  ;;  %v1621_v32 = vld [vmem:[#allocation4 + $0x38] sm:$0xff] }
 0x366   : > { %v2642_v49 = vpop.eup %2641  ;;  %2653 = vrcp.f32 %v1639_v39  ;;  %1832 = vmatpush.bf16.msra.mxu0 %v2423_v37  ;;  %v1617_v22 = vld [vmem:[#allocation4 + $0x48] sm:$0xff] }
 0x367   : > { %v2644_v50 = vpop.eup %2643  ;;  %2655 = vrcp.f32 %v1637_v25  ;;  %2448 = vmatpush.bf16.msra.mxu1 %v2423_v37 }
 0x368   : > { %v2646_v62 = vpop.eup %2645  ;;  %2657 = vrcp.f32 %v1636_v3  ;;  %2449 = vmatpush.bf16.msra.mxu2 %v2423_v37 }
 0x369   : > { %v2648_v26 = vpop.eup %2647  ;;  %2659 = vrcp.f32 %v1640_v48  ;;  %2450 = vmatpush.bf16.msra.mxu3 %v2423_v37  ;;  %v1624_v48 = vld [vmem:[#allocation4 + $0x78] sm:$0xff] }
 0x36a   : > { %1685 = vperm.xlu1 %2628, %v2638_v56   ;;  %v2650_v28 = vpop.eup %2649  ;;  %2661 = vrcp.f32 %v1641_v6  ;;  %1833 = vmatpush.bf16.msra.mxu0 %v2422_v46 }
 0x36b   : > { %1665 = vperm.xlu0 %2627, %v2640_v7   ;;  %v2652_v42 = vpop.eup %2651  ;;  %2451 = vmatpush.bf16.msra.mxu1 %v2422_v46 }
 0x36c   : > { %1675 = vperm.xlu2 %2629, %v2642_v49   ;;  %v2654_v44 = vpop.eup %2653  ;;  %2452 = vmatpush.bf16.msra.mxu2 %v2422_v46 }
 0x36d   : > { %v2656_v34 = vpop.eup %2655  ;;  %2453 = vmatpush.bf16.msra.mxu3 %v2422_v46 }
 0x36e   : > { %v2658_v52 = vpop.eup %2657  ;;  %1834 = vmatpush.bf16.msra.mxu0 %v2421_v58 }
 0x36f   : > { %v2660_v11 = vpop.eup %2659  ;;  %2454 = vmatpush.bf16.msra.mxu1 %v2421_v58 }
 0x370   : > { %v2662_v2 = vpop.eup %2661  ;;  %2455 = vmatpush.bf16.msra.mxu2 %v2421_v58 }
 0x371   : > { %2456 = vmatpush.bf16.msra.mxu3 %v2421_v58 }
 0x372   : > { %1705 = vperm.xlu1 %2628, %v2644_v50   ;;  %1835 = vmatpush.bf16.msra.mxu0 %v2420_v27 }
 0x373   : > { %1700 = vperm.xlu0 %2627, %v2646_v62   ;;  %2457 = vmatpush.bf16.msra.mxu1 %v2420_v27  ;;  %v1620_v62 = vld [vmem:[#allocation4 + $0x10] sm:$0xff] }
 0x374   : > { %1690 = vperm.xlu2 %2629, %v2648_v26   ;;  %2458 = vmatpush.bf16.msra.mxu2 %v2420_v27 }
 0x375   : > { %2459 = vmatpush.bf16.msra.mxu3 %v2420_v27 }
 0x376   : > { %1836 = vmatpush.bf16.msra.mxu0 %v2419_v38 }
 0x377   : > { %2460 = vmatpush.bf16.msra.mxu1 %v2419_v38 }
 0x378   : > { %2461 = vmatpush.bf16.msra.mxu2 %v2419_v38 }
 0x379   : > { %2462 = vmatpush.bf16.msra.mxu3 %v2419_v38 }
 0x37a   : > { %1720 = vperm.xlu1 %2628, %v2650_v28   ;;  %1837 = vmatpush.bf16.msra.mxu0 %v2418_v1 }
 0x37b   : > { %1695 = vperm.xlu0 %2627, %v2652_v42   ;;  %2463 = vmatpush.bf16.msra.mxu1 %v2418_v1 }
 0x37c   : > { %1725 = vperm.xlu2 %2629, %v2654_v44   ;;  %2464 = vmatpush.bf16.msra.mxu2 %v2418_v1  ;;  %v1625_v44 = vld [vmem:[#allocation4 + $0x28] sm:$0xff] }
 0x37d   : > { %2465 = vmatpush.bf16.msra.mxu3 %v2418_v1 }
 0x382   : > { %1715 = vperm.xlu1 %2628, %v2656_v34  }
 0x383   : > { %1710 = vperm.xlu0 %2627, %v2658_v52  }
 0x384   : > { %1730 = vperm.xlu2 %2629, %v2660_v11  }
 0x38b   : > { %1735 = vperm.xlu0 %2627, %v2662_v2   ;;  %v2630_v2 = vld [vmem:[%s3525_s4] ss:$0 sm:$0xff] }
 0x3be   : > { %v1671_v40 = vpop.permute.xlu2 %1670 }
 0x3bf   : > { %v1740_v10 = vmul.f32 %v1671_v40, %v1612_v54 }
 0x3c6   : > { %v1676_v9 = vpop.permute.xlu2 %1675 }
 0x3c7   : > { %v1741_v45 = vmul.f32 %v1676_v9, %v1613_v21  ;;  %v1911_v21 = vld [vmem:[%s3009_s13] sm:$0xff] }
 0x3c9   : > { %v1755_v33 = vpack.c.bf16 %v1741_v45, %v1740_v10  ;;  %v1913_v45 = vld [vmem:[%s3009_s13 + $0x10] sm:$0xff] }
 0x3ce   : > { %v1691_v35 = vpop.permute.xlu2 %1690 }
 0x3cf   : > { %v1744_v13 = vmul.f32 %v1691_v35, %v1616_v12  ;;  %v1912_v12 = vld [vmem:[%s3009_s13 + $0x8] sm:$0xff] }
 0x3d4   : > { %v1681_v36 = vpop.permute.xlu1 %1680 }
 0x3d5   : > { %v1661_v53 = vpop.permute.xlu0 %1660  ;;  %v1742_v41 = vmul.f32 %v1681_v36, %v1614_v5 }
 0x3d6   : > { %v1738_v63 = vmul.f32 %v1661_v53, %v1610_v20  ;;  %v1726_v23 = vpop.permute.xlu2 %1725 }
 0x3d7   : > { %v1751_v56 = vmul.f32 %v1726_v23, %v1623_v51 }
 0x3dc   : > { %v1686_v19 = vpop.permute.xlu1 %1685 }
 0x3dd   : > { %v1743_v0 = vmul.f32 %v1686_v19, %v1615_v16  ;;  %v1666_v31 = vpop.permute.xlu0 %1665 }
 0x3de   : > { %v1739_v17 = vmul.f32 %v1666_v31, %v1611_v60  ;;  %v1731_v42 = vpop.permute.xlu2 %1730 }
 0x3df   : > { %v1756_v18 = vpack.c.bf16 %v1743_v0, %v1742_v41  ;;  %v1752_v6 = vmul.f32 %v1731_v42, %v1624_v48  ;;  %v1919_v42 = vld [vmem:[%s3009_s13 + $0x40] sm:$0xff] }
 0x3e0   : > { %v1754_v61 = vpack.c.bf16 %v1739_v17, %v1738_v63 }
 0x3e1   : > { %1848 = vmatmul.bf16.vlgmr.msra.gmra.mxu1 %v1756_v18 }
 0x3e2   : > { %1838 = vmatmul.bf16.vlgmr.msra.gmra.mxu0 %v1754_v61 }
 0x3e4   : > { %v1706_v29 = vpop.permute.xlu1 %1705 }
 0x3e5   : > { %v1747_v43 = vmul.f32 %v1706_v29, %v1619_v14  ;;  %v1701_v55 = vpop.permute.xlu0 %1700 }
 0x3e6   : > { %v1746_v24 = vmul.f32 %v1701_v55, %v1618_v30 }
 0x3e8   : > { %v1758_v15 = vpack.c.bf16 %v1747_v43, %v1746_v24 }
 0x3ea   : > { %1858 = vmatmul.bf16.vlgmr.msra.gmra.mxu2 %v1758_v15 }
 0x3ec   : > { %v1721_v57 = vpop.permute.xlu1 %1720 }
 0x3ed   : > { %v1750_v47 = vmul.f32 %v1721_v57, %v1622_v59  ;;  %v1696_v7 = vpop.permute.xlu0 %1695 }
 0x3ee   : > { %v1745_v49 = vmul.f32 %v1696_v7, %v1617_v22 }
 0x3ef   : > { %v1760_v4 = vpack.c.bf16 %v1751_v56, %v1750_v47  ;;  %v1914_v56 = vld [vmem:[%s3009_s13 + $0x18] sm:$0xff] }
 0x3f0   : > { %v1757_v50 = vpack.c.bf16 %v1745_v49, %v1744_v13  ;;  %v1915_v13 = vld [vmem:[%s3009_s13 + $0x20] sm:$0xff] }
 0x3f1   : > { %1868 = vmatmul.bf16.vlgmr.msra.gmra.mxu3 %v1760_v4 }
 0x3f2   : > { %1843 = vmatmul.bf16.gmra.mxu0 %v1755_v33  ;;  %1853 = vmatmul.bf16.gmra.mxu1 %v1757_v50  ;;  %v1916_v33 = vld [vmem:[%s3009_s13 + $0x28] sm:$0xff] }
 0x3f4   : > { %v1716_v39 = vpop.permute.xlu1 %1715 }
 0x3f5   : > { %v1749_v26 = vmul.f32 %v1716_v39, %v1621_v32  ;;  %v1711_v25 = vpop.permute.xlu0 %1710 }
 0x3f6   : > { %v1748_v28 = vmul.f32 %v1711_v25, %v1620_v62  ;;  %v1917_v62 = vld [vmem:[%s3009_s13 + $0x30] sm:$0xff]  ;;  %v1918_v25 = vld [vmem:[%s3009_s13 + $0x38] sm:$0xff] }
 0x3f8   : > { %v1759_v3 = vpack.c.bf16 %v1749_v26, %v1748_v28 }
 0x3fa   : > { %1863 = vmatmul.bf16.gmra.mxu2 %v1759_v3 }
 0x3fd   : > { %v1736_v34 = vpop.permute.xlu0 %1735 }
 0x3fe   : > { %v1753_v52 = vmul.f32 %v1736_v34, %v1625_v44  ;;  %v1920_v34 = vld [vmem:[%s3009_s13 + $0x48] sm:$0xff] }
 0x400   : > { %v1761_v11 = vpack.c.bf16 %v1753_v52, %v1752_v6 }
 0x402   : > { %1873 = vmatmul.bf16.gmra.mxu3 %v1761_v11  ;;  %v1921_v11 = vld [vmem:[%s3009_s13 + $0x50] sm:$0xff] }
 0x45e   : > { %v1849_v1 = vpop.f32.mrf.mxu1 }
 0x45f   : > { %v1839_v8 = vpop.f32.mrf.mxu0  ;;  %v1850_v53 = vadd.f32 %v2630_v2, %v1849_v1 }
 0x460   : > { %v1840_v37 = vadd.f32 %v2630_v2, %v1839_v8 }
 0x462   : > { %1879 = vxpose.xlu1.b32.start [1/16] %v1840_v37, 128  ;;  %v1922_v37 = vld [vmem:[%s3009_s13 + $0x58] sm:$0xff] }
 0x466   : > { %v1851_v9 = vpop.f32.mrf.mxu1 }
 0x467   : > { %v1841_v46 = vpop.f32.mrf.mxu0  ;;  %v1852_v5 = vadd.f32 %v2630_v2, %v1851_v9  ;;  %v1925_v9 = vld [vmem:[%s3009_s13 + $0x70] sm:$0xff] }
 0x468   : > { %v1842_v58 = vadd.f32 %v2630_v2, %v1841_v46 }
 0x46a   : > { %1880 = vxpose.xlu1.b32.cont [2/16] %v1842_v58, 128 }
 0x46d   : > { %v1859_v60 = vpop.f32.mrf.mxu2 }
 0x46e   : > { %v1860_v0 = vadd.f32 %v2630_v2, %v1859_v60 }
 0x46f   : > { %v1844_v27 = vpop.f32.mrf.mxu0  ;;  %v1854_v16 = vpop.f32.mrf.mxu1 }
 0x470   : > { %v1845_v38 = vadd.f32 %v2630_v2, %v1844_v27  ;;  %v1855_v41 = vadd.f32 %v2630_v2, %v1854_v16  ;;  %v1923_v27 = vld [vmem:[%s3009_s13 + $0x60] sm:$0xff] }
 0x472   : > { %1881 = vxpose.xlu1.b32.cont [3/16] %v1845_v38, 128 }
 0x474   : > { %v1869_v35 = vpop.f32.mrf.mxu3 }
 0x475   : > { %v1861_v31 = vpop.f32.mrf.mxu2  ;;  %v1870_v30 = vadd.f32 %v2630_v2, %v1869_v35 }
 0x476   : > { %v1862_v63 = vadd.f32 %v2630_v2, %v1861_v31 }
 0x477   : > { %v1846_v40 = vpop.f32.mrf.mxu0  ;;  %v1856_v20 = vpop.f32.mrf.mxu1 }
 0x478   : > { %v1847_v36 = vadd.f32 %v2630_v2, %v1846_v40  ;;  %v1857_v19 = vadd.f32 %v2630_v2, %v1856_v20  ;;  %v1924_v40 = vld [vmem:[%s3009_s13 + $0x68] sm:$0xff] }
 0x47a   : > { %1882 = vxpose.xlu1.b32.cont [4/16] %v1847_v36, 128 }
 0x47c   : > { %v1871_v29 = vpop.f32.mrf.mxu3 }
 0x47d   : > { %v1864_v17 = vpop.f32.mrf.mxu2  ;;  %v1872_v43 = vadd.f32 %v2630_v2, %v1871_v29 }
 0x47e   : > { %v1865_v18 = vadd.f32 %v2630_v2, %v1864_v17 }
 0x482   : > { %1883 = vxpose.xlu1.b32.cont [5/16] %v1850_v53, 128 }
 0x485   : > { %v1866_v61 = vpop.f32.mrf.mxu2  ;;  %v1874_v55 = vpop.f32.mrf.mxu3 }
 0x486   : > { %v1867_v14 = vadd.f32 %v2630_v2, %v1866_v61  ;;  %v1875_v24 = vadd.f32 %v2630_v2, %v1874_v55 }
 0x48a   : > { %1884 = vxpose.xlu1.b32.cont [6/16] %v1852_v5, 128 }
 0x48d   : > { %v1876_v15 = vpop.f32.mrf.mxu3 }
 0x48e   : > { %v1877_v54 = vadd.f32 %v2630_v2, %v1876_v15 }
 0x492   : > { %1885 = vxpose.xlu1.b32.cont [7/16] %v1855_v41, 128  ;;  %v1926_v41 = vld [vmem:[%s3009_s13 + $0x78] sm:$0xff] }
 0x49a   : > { %1886 = vxpose.xlu1.b32.cont [8/16] %v1857_v19, 128 }
 0x4a2   : > { %1887 = vxpose.xlu1.b32.cont [9/16] %v1860_v0, 128 }
 0x4aa   : > { %1888 = vxpose.xlu1.b32.cont [10/16] %v1862_v63, 128 }
 0x4b2   : > { %1889 = vxpose.xlu1.b32.cont [11/16] %v1865_v18, 128 }
 0x4ba   : > { %1890 = vxpose.xlu1.b32.cont [12/16] %v1867_v14, 128 }
 0x4c2   : > { %1891 = vxpose.xlu1.b32.cont [13/16] %v1870_v30, 128 }
 0x4ca   : > { %1892 = vxpose.xlu1.b32.cont [14/16] %v1872_v43, 128 }
 0x4d2   : > { %1893 = vxpose.xlu1.b32.cont [15/16] %v1875_v24, 128 }
 0x4da   : > { %1894 = vxpose.xlu1.b32.end [16/16] %v1877_v54, 128 }
 0x506   : > { %v1895_v51 = vpop.trf.xlu1 }
 0x507   : > { %v1927_v59 = vadd.f32 %v1911_v21, %v1895_v51 }
 0x509   : > { %1943 = vst [vmem:[%s3011_s18] sm:$0xff] %v1927_v59 }
 0x50e   : > { %v1896_v22 = vpop.trf.xlu1 }
 0x50f   : > { %v1928_v10 = vadd.f32 %v1912_v12, %v1896_v22 }
 0x511   : > { %1944 = vst [vmem:[%s3011_s18 + $0x8] sm:$0xff] %v1928_v10 }
 0x516   : > { %v1897_v23 = vpop.trf.xlu1 }
 0x517   : > { %v1929_v57 = vadd.f32 %v1913_v45, %v1897_v23 }
 0x519   : > { %1945 = vst [vmem:[%s3011_s18 + $0x10] sm:$0xff] %v1929_v57 }
 0x51e   : > { %v1898_v47 = vpop.trf.xlu1 }
 0x51f   : > { %v1930_v7 = vadd.f32 %v1914_v56, %v1898_v47 }
 0x521   : > { %1946 = vst [vmem:[%s3011_s18 + $0x18] sm:$0xff] %v1930_v7 }
 0x526   : > { %v1899_v49 = vpop.trf.xlu1 }
 0x527   : > { %v1931_v4 = vadd.f32 %v1915_v13, %v1899_v49 }
 0x529   : > { %1947 = vst [vmem:[%s3011_s18 + $0x20] sm:$0xff] %v1931_v4 }
 0x52e   : > { %v1900_v50 = vpop.trf.xlu1 }
 0x52f   : > { %v1932_v32 = vadd.f32 %v1916_v33, %v1900_v50 }
 0x531   : > { %1948 = vst [vmem:[%s3011_s18 + $0x28] sm:$0xff] %v1932_v32 }
 0x536   : > { %v1901_v39 = vpop.trf.xlu1 }
 0x537   : > { %v1933_v26 = vadd.f32 %v1917_v62, %v1901_v39 }
 0x539   : > { %1949 = vst [vmem:[%s3011_s18 + $0x30] sm:$0xff] %v1933_v26 }
 0x53e   : > { %v1902_v28 = vpop.trf.xlu1 }
 0x53f   : > { %v1934_v3 = vadd.f32 %v1918_v25, %v1902_v28 }
 0x541   : > { %1950 = vst [vmem:[%s3011_s18 + $0x38] sm:$0xff] %v1934_v3 }
 0x546   : > { %v1903_v48 = vpop.trf.xlu1 }
 0x547   : > { %v1935_v44 = vadd.f32 %v1919_v42, %v1903_v48 }
 0x549   : > { %1951 = vst [vmem:[%s3011_s18 + $0x40] sm:$0xff] %v1935_v44 }
 0x54e   : > { %v1904_v6 = vpop.trf.xlu1 }
 0x54f   : > { %v1936_v52 = vadd.f32 %v1920_v34, %v1904_v6 }
 0x551   : > { %1952 = vst [vmem:[%s3011_s18 + $0x48] sm:$0xff] %v1936_v52 }
 0x556   : > { %v1905_v2 = vpop.trf.xlu1 }
 0x557   : > { %v1937_v8 = vadd.f32 %v1921_v11, %v1905_v2 }
 0x559   : > { %1953 = vst [vmem:[%s3011_s18 + $0x50] sm:$0xff] %v1937_v8 }
 0x55e   : > { %v1906_v46 = vpop.trf.xlu1 }
 0x55f   : > { %v1938_v58 = vadd.f32 %v1922_v37, %v1906_v46 }
 0x561   : > { %1954 = vst [vmem:[%s3011_s18 + $0x58] sm:$0xff] %v1938_v58 }
 0x566   : > { %v1907_v38 = vpop.trf.xlu1 }
 0x567   : > { %v1939_v1 = vadd.f32 %v1923_v27, %v1907_v38 }
 0x569   : > { %1955 = vst [vmem:[%s3011_s18 + $0x60] sm:$0xff] %v1939_v1 }
 0x56e   : > { %v1908_v36 = vpop.trf.xlu1 }
 0x56f   : > { %v1940_v53 = vadd.f32 %v1924_v40, %v1908_v36 }
 0x571   : > { %1956 = vst [vmem:[%s3011_s18 + $0x68] sm:$0xff] %v1940_v53 }
 0x576   : > { %v1909_v5 = vpop.trf.xlu1 }
 0x577   : > { %v1941_v16 = vadd.f32 %v1925_v9, %v1909_v5 }
 0x579   : > { %1957 = vst [vmem:[%s3011_s18 + $0x70] sm:$0xff] %v1941_v16 }
 0x57e   : > { %v1910_v20 = vpop.trf.xlu1 }
 0x57f   : > { %v1942_v60 = vadd.f32 %v1926_v41, %v1910_v20 }
 0x581   : > { %1958 = vst [vmem:[%s3011_s18 + $0x78] sm:$0xff] %v1942_v60 }
 0x582 PF: > { %1965 = sbr.rel (!%p2881_p9) target bundleno = 1435 (0x59b), region = 217  ;;  %s3539_s16 = sld [smem:[#allocation10_spill]] (%p2881_p9)  ;;  %v2028_v19 = vld [vmem:[%s3011_s18] sm:$0xff] (%p2881_p9)  ;;  %v2030_v0 = vld [vmem:[%s3011_s18 + $0x8] sm:$0xff] (%p2881_p9)  ;;  %v2032_v31 = vld [vmem:[%s3011_s18 + $0x10] sm:$0xff] (%p2881_p9) }
 0x583   : > { %s2390_s19 = sshll.u32 (%p2881_p9), %s2733_s27, 5  ;;  %s3540_s17 = sld [smem:[#allocation14_spill]] (%p2881_p9)  ;;  %v2034_v63 = vld [vmem:[%s3011_s18 + $0x18] sm:$0xff] (%p2881_p9)  ;;  %v2036_v17 = vld [vmem:[%s3011_s18 + $0x20] sm:$0xff] (%p2881_p9)  ;;  %v2038_v18 = vld [vmem:[%s3011_s18 + $0x28] sm:$0xff] (%p2881_p9) }
 0x584   : > { %v2040_v61 = vld [vmem:[%s3011_s18 + $0x30] sm:$0xff] (%p2881_p9)  ;;  %v2042_v35 = vld [vmem:[%s3011_s18 + $0x38] sm:$0xff] (%p2881_p9)  ;;  %v2044_v14 = vld [vmem:[%s3011_s18 + $0x40] sm:$0xff] (%p2881_p9) }
 0x585   : > { %v2046_v30 = vld [vmem:[%s3011_s18 + $0x48] sm:$0xff] (%p2881_p9)  ;;  %v2048_v29 = vld [vmem:[%s3011_s18 + $0x50] sm:$0xff] (%p2881_p9)  ;;  %v2050_v43 = vld [vmem:[%s3011_s18 + $0x58] sm:$0xff] (%p2881_p9) }
 0x586   : > { %v2052_v55 = vld [vmem:[%s3011_s18 + $0x60] sm:$0xff] (%p2881_p9)  ;;  %v2054_v24 = vld [vmem:[%s3011_s18 + $0x68] sm:$0xff] (%p2881_p9)  ;;  %v2056_v15 = vld [vmem:[%s3011_s18 + $0x70] sm:$0xff] (%p2881_p9) }
 0x588   : > { %s1967_s15 = sadd.s32 %s3539_s16, %s2390_s19  ;;  %v2058_v54 = vld [vmem:[%s3011_s18 + $0x78] sm:$0xff] }
 0x589   : > { %s2391_s13 = sshll.u32 %s1967_s15, 3 }
 0x58a   : > { %s1969_s10 = scalar_lea.vmem %s3540_s17, %s2391_s13 }
 0x58b   : > { %2029 = vst [vmem:[%s1969_s10] sm:$0xff] %v2028_v19 }
 0x58c   : > { %2031 = vst [vmem:[%s1969_s10 + $0x10] sm:$0xff] %v2030_v0 }
 0x58d   : > { %2033 = vst [vmem:[%s1969_s10 + $0x20] sm:$0xff] %v2032_v31 }
 0x58e   : > { %2035 = vst [vmem:[%s1969_s10 + $0x30] sm:$0xff] %v2034_v63 }
 0x58f   : > { %2037 = vst [vmem:[%s1969_s10 + $0x40] sm:$0xff] %v2036_v17 }
 0x590   : > { %2039 = vst [vmem:[%s1969_s10 + $0x50] sm:$0xff] %v2038_v18 }
 0x591   : > { %2041 = vst [vmem:[%s1969_s10 + $0x60] sm:$0xff] %v2040_v61 }
 0x592   : > { %2043 = vst [vmem:[%s1969_s10 + $0x70] sm:$0xff] %v2042_v35 }
 0x593   : > { %2045 = vst [vmem:[%s1969_s10 + $0x80] sm:$0xff] %v2044_v14 }
 0x594   : > { %2047 = vst [vmem:[%s1969_s10 + $0x90] sm:$0xff] %v2046_v30 }
 0x595   : > { %2049 = vst [vmem:[%s1969_s10 + $0xa0] sm:$0xff] %v2048_v29 }
 0x596   : > { %2051 = vst [vmem:[%s1969_s10 + $0xb0] sm:$0xff] %v2050_v43 }
 0x597   : > { %2053 = vst [vmem:[%s1969_s10 + $0xc0] sm:$0xff] %v2052_v55 }
 0x598   : > { %2055 = vst [vmem:[%s1969_s10 + $0xd0] sm:$0xff] %v2054_v24 }
 0x599   : > { %2057 = vst [vmem:[%s1969_s10 + $0xe0] sm:$0xff] %v2056_v15 }
 0x59a   : > { %2059 = vst [vmem:[%s1969_s10 + $0xf0] sm:$0xff] %v2058_v54 }
 0x59b PF: > { %s16_s7 = sadd.s32 1, %s2749_s7   ;;  %s3541_s20 = sld [smem:[#allocation11_spill]] }
 0x59c   : > { %p13_p4 = scmp.ge.s32.totalorder %s16_s7, 10   ;;  %s3542_s14 = sld [smem:[#allocation12_spill]] }
 0x59d   : > { %s3543_s8 = sld [smem:[#allocation13_spill]]  ;;  %s3544_s21 = smov %s2713_s22 }
 0x59e   : > { %s3545_s22 = smov %s2892_s9  ;;  %s3546_s23 = smov %s2721_s24 }
 0x59f   : > { %s3547_s24 = smov %s2889_s11  ;;  %s3548_s25 = smov %s2737_s28 }
 0x5a0   : > { %s3549_s26 = smov %s2741_s29  ;;  %s3550_s27 = smov %s2745_s30 }
 0x5a1   : > { %s3551_s28 = smov %s3541_s20  ;;  %15 = sbr.rel (!%p13_p4) target bundleno = 8 (0x8), region = 310 }
 0x5a2   : > { %s3552_s29 = smov %s3542_s14 }
 0x5a3   : > { %s3553_s30 = smov %s3543_s8 }

</bundles_post_ra>
